<compile_context>
chip_gen: v7x
topology: tpu7x:2x2x1
jax: 0.10.0
libtpu: 0.0.40
codegen_flags: <defaults>
</compile_context>

<pallas_src>
import functools

import jax
import jax.numpy as jnp
from jax.experimental import pallas as pl
from jax.experimental.pallas import tpu as pltpu


def _gates_to_state(gates, c_prev, H):
    """gates: (RB, 4H) f32 with columns pre-permuted to [i, f, o, g]."""
    sig = jax.nn.sigmoid(gates[:, : 3 * H])        # one EUP slab: i, f, o
    i = sig[:, 0:H]
    f = sig[:, H:2 * H]
    o = sig[:, 2 * H:3 * H]
    g = jnp.tanh(gates[:, 3 * H:])                 # one tanh slab
    c_new = f * c_prev + i * g
    h_new = o * jnp.tanh(c_new)
    return h_new, c_new


def lstm_block_kernel(
    x_ref,      # (T*RB, F)  bf16  block rows: t major, b minor
    wih1_ref,   # (F, 4H)    bf16  layer-0 input->gates  (resident)
    whh1_ref,   # (H, 4H)    bf16  layer-0 hidden->gates (resident)
    wih2_ref,   # (H, 4H)    bf16  layer-1 input->gates  (resident)
    whh2_ref,   # (H, 4H)    bf16  layer-1 hidden->gates (resident)
    b1_ref,     # (1, 4H)    f32   b_ih_l0 + b_hh_l0     (resident)
    b2_ref,     # (1, 4H)    f32   b_ih_l1 + b_hh_l1     (resident)
    out_ref,    # (RB, H)    f32   last-timestep layer-1 hidden state
    proj_ref,   # (T*RB, 4H) f32   VMEM scratch for the hoisted projection
    *, T, RB,
):
    H = whh1_ref.shape[0]

    # Layer-0 input projection for all timesteps at once (no serial dependence),
    # bf16 x bf16 -> f32, with b1 folded in.  Staged in VMEM scratch.
    proj_ref[...] = (
        jnp.dot(x_ref[...], wih1_ref[...], preferred_element_type=jnp.float32)
        + b1_ref[...]
    )

    b2b = jnp.broadcast_to(b2_ref[...], (RB, 4 * H))     # hoisted once

    h1 = jnp.zeros((RB, H), jnp.float32)
    c1 = jnp.zeros((RB, H), jnp.float32)
    h2 = jnp.zeros((RB, H), jnp.float32)
    c2 = jnp.zeros((RB, H), jnp.float32)

    # h2_0 == 0, so the W_hh2 contribution to the first step is just the bias.
    g2_hh = b2b

    # Fully-unrolled recurrence (T is static & tiny): states live in vregs,
    # all slices are static and sublane-tile aligned (RB == 8).
    for t in range(T):
        # Layer 0: only the recurrent K=H matmul sits on the serial chain.
        g1 = proj_ref[t * RB:(t + 1) * RB, :] + jnp.dot(
            h1.astype(jnp.bfloat16), whh1_ref[...],
            preferred_element_type=jnp.float32)
        h1, c1 = _gates_to_state(g1, c1, H)

        # TODO(synk): inter-layer dropout (p=0.5) is train-only; eval-mode
        # identity semantics are implemented here.

        # Layer 1: only the K=H W_ih2 matmul depends on h1_t; the W_hh2 half
        # (g2_hh) was computed right after h2_{t-1}, off this chain.
        g2 = g2_hh + jnp.dot(
            h1.astype(jnp.bfloat16), wih2_ref[...],
            preferred_element_type=jnp.float32)
        h2, c2 = _gates_to_state(g2, c2, H)

        if t + 1 < T:
            g2_hh = b2b + jnp.dot(
                h2.astype(jnp.bfloat16), whh2_ref[...],
                preferred_element_type=jnp.float32)

    # Lane-dense (RB, 128) f32 output slab; FC(128->2) runs in the wrapper.
    out_ref[...] = h2


def lstm_pose_classifier(x, params, *, block_batch=8):
    """x: (B, T, F) batch-first like the PyTorch module. Returns (B, C) f32 logits."""
    B, T, F = x.shape
    H = params["whh1_T"].shape[0]
    RB = block_batch

    num_blocks = -(-B // RB)
    B_pad = num_blocks * RB
    xp = x if B_pad == B else jnp.pad(x, ((0, B_pad - B), (0, 0), (0, 0)))

    # Pack so each grid block owns a contiguous (T*RB, F) time-major slab:
    # (B_pad, T, F) -> (nb, RB, T, F) -> (nb, T, RB, F) -> (nb*T*RB, F), bf16.
    x_blk = (
        xp.reshape(num_blocks, RB, T, F)
          .transpose(0, 2, 1, 3)
          .reshape(num_blocks * T * RB, F)
          .astype(jnp.bfloat16)
    )

    def resident(shape):
        # Same block index for every grid step -> DMA'd once, stays in VMEM.
        return pl.BlockSpec(shape, lambda i: (0, 0))

    h_last = pl.pallas_call(
        functools.partial(lstm_block_kernel, T=T, RB=RB),
        out_shape=jax.ShapeDtypeStruct((B_pad, H), jnp.float32),
        grid=(num_blocks,),
        in_specs=[
            pl.BlockSpec((T * RB, F), lambda i: (i, 0)),     # x streams + pipelines
            resident(params["wih1_T"].shape),
            resident(params["whh1_T"].shape),
            resident(params["wih2_T"].shape),
            resident(params["whh2_T"].shape),
            resident(params["b1"].shape),
            resident(params["b2"].shape),
        ],
        out_specs=pl.BlockSpec((RB, H), lambda i: (i, 0)),
        scratch_shapes=[pltpu.VMEM((T * RB, 4 * H), jnp.float32)],
        compiler_params=pltpu.CompilerParams(
            dimension_semantics=("parallel",)),
    )(
        x_blk,
        params["wih1_T"], params["whh1_T"],
        params["wih2_T"], params["whh2_T"],
        params["b1"], params["b2"],
    )

    # out = fc(dropout(out[:, -1, :])); dropout is identity in eval mode.
    return h_last[:B] @ params["wfc_T"] + params["bfc"]


def _permute_gates(w_or_b, H):
    """PyTorch gate order [i, f, g, o] -> kernel order [i, f, o, g] (axis 0)."""
    blocks = jnp.split(w_or_b, 4, axis=0)
    return jnp.concatenate([blocks[0], blocks[1], blocks[3], blocks[2]], axis=0)


def init_params(key, input_size=34, hidden_size=128, num_classes=2):
    """Deterministic init mimicking PyTorch's uniform(-1/sqrt(H), 1/sqrt(H))."""
    H = hidden_size
    k = 1.0 / jnp.sqrt(jnp.float32(H))
    keys = jax.random.split(key, 10)

    def u(kk, shape):
        return jax.random.uniform(kk, shape, jnp.float32, -k, k)

    # PyTorch layout: weight_ih_l0 is (4H, F) etc., gate rows ordered [i,f,g,o].
    wih1 = u(keys[0], (4 * H, input_size))
    whh1 = u(keys[1], (4 * H, H))
    b1 = u(keys[2], (4 * H,)) + u(keys[3], (4 * H,))      # b_ih_l0 + b_hh_l0
    wih2 = u(keys[4], (4 * H, H))
    whh2 = u(keys[5], (4 * H, H))
    b2 = u(keys[6], (4 * H,)) + u(keys[7], (4 * H,))      # b_ih_l1 + b_hh_l1
    wfc = u(keys[8], (num_classes, H))
    bfc = u(keys[9], (num_classes,))

    return {
        "wih1_T": _permute_gates(wih1, H).T.astype(jnp.bfloat16),   # (F, 4H)
        "whh1_T": _permute_gates(whh1, H).T.astype(jnp.bfloat16),   # (H, 4H)
        "wih2_T": _permute_gates(wih2, H).T.astype(jnp.bfloat16),   # (H, 4H)
        "whh2_T": _permute_gates(whh2, H).T.astype(jnp.bfloat16),   # (H, 4H)
        "b1": _permute_gates(b1, H).reshape(1, 4 * H),
        "b2": _permute_gates(b2, H).reshape(1, 4 * H),
        "wfc_T": wfc.T,                                             # (H, C) f32
        "bfc": bfc.reshape(1, num_classes),
    }


def lstm_reference(x, params):
    """Pure-JAX f32 reference using the same (permuted/folded) parameters."""
    B, T, F = x.shape
    H = params["whh1_T"].shape[0]
    wih1 = params["wih1_T"].astype(jnp.float32)
    whh1 = params["whh1_T"].astype(jnp.float32)
    wih2 = params["wih2_T"].astype(jnp.float32)
    whh2 = params["whh2_T"].astype(jnp.float32)

    def cell(x_t, h, c, wih, whh, b):
        g = x_t @ wih + h @ whh + b
        i = jax.nn.sigmoid(g[:, :H])
        f = jax.nn.sigmoid(g[:, H:2 * H])
        o = jax.nn.sigmoid(g[:, 2 * H:3 * H])
        gg = jnp.tanh(g[:, 3 * H:])
        c = f * c + i * gg
        return o * jnp.tanh(c), c

    h1 = c1 = h2 = c2 = jnp.zeros((B, H), jnp.float32)
    for t in range(T):
        h1, c1 = cell(x[:, t, :], h1, c1, wih1, whh1, params["b1"])
        h2, c2 = cell(h1, h2, c2, wih2, whh2, params["b2"])
    return h2 @ params["wfc_T"] + params["bfc"]


if __name__ == "__main__":
    key = jax.random.PRNGKey(0)
    k_x, k_p = jax.random.split(key)

    B, T, F, H, C = 2, 8, 34, 128, 2
    x = jax.random.normal(k_x, (B, T, F), jnp.float32)
    params = init_params(k_p, input_size=F, hidden_size=H, num_classes=C)

    logits = jax.jit(lstm_pose_classifier)(x, params)
    jax.block_until_ready(logits)
    assert logits.shape == (B, C)

    ref = lstm_reference(x, params)
    err = float(jnp.max(jnp.abs(logits - ref)))
    assert err < 5e-2, f"max abs error vs f32 reference: {err}"
    print("KERNEL_OK")
</pallas_src>

<mosaic_0001>
module attributes {stable_mosaic.version = 11 : i64} {
  func.func @lstm_block_kernel(%arg0: i32, %arg1: memref<64x34xbf16, #tpu.memory_space<vmem>>, %arg2: memref<34x512xbf16, #tpu.memory_space<vmem>>, %arg3: memref<128x512xbf16, #tpu.memory_space<vmem>>, %arg4: memref<128x512xbf16, #tpu.memory_space<vmem>>, %arg5: memref<128x512xbf16, #tpu.memory_space<vmem>>, %arg6: memref<1x512xf32, #tpu.memory_space<vmem>>, %arg7: memref<1x512xf32, #tpu.memory_space<vmem>>, %arg8: memref<8x128xf32, #tpu.memory_space<vmem>>, %arg9: memref<64x512xf32, #tpu.memory_space<vmem>>) attributes {dimension_semantics = [#tpu.dimension_semantics<parallel>], iteration_bounds = array<i64: 1>, scalar_prefetch = 0 : i64, scratch_operands = 1 : i64, tpu.core_type = #tpu.core_type<tc>, window_params = [{transform_indices = @transform_0, window_bounds = array<i64: 64, 34>}, {pipeline_mode = #tpu.pipeline_mode<synchronous>, transform_indices = @transform_1, window_bounds = array<i64: 34, 512>}, {pipeline_mode = #tpu.pipeline_mode<synchronous>, transform_indices = @transform_2, window_bounds = array<i64: 128, 512>}, {pipeline_mode = #tpu.pipeline_mode<synchronous>, transform_indices = @transform_3, window_bounds = array<i64: 128, 512>}, {pipeline_mode = #tpu.pipeline_mode<synchronous>, transform_indices = @transform_4, window_bounds = array<i64: 128, 512>}, {pipeline_mode = #tpu.pipeline_mode<synchronous>, transform_indices = @transform_5, window_bounds = array<i64: 1, 512>}, {pipeline_mode = #tpu.pipeline_mode<synchronous>, transform_indices = @transform_6, window_bounds = array<i64: 1, 512>}, {transform_indices = @transform_7, window_bounds = array<i64: 8, 128>}]} {
    %c0 = arith.constant 0 : index
    %c0_0 = arith.constant 0 : index
    %0 = vector.load %arg1[%c0, %c0_0] : memref<64x34xbf16, #tpu.memory_space<vmem>>, vector<64x34xbf16>
    %c0_1 = arith.constant 0 : index
    %c0_2 = arith.constant 0 : index
    %1 = vector.load %arg2[%c0_1, %c0_2] : memref<34x512xbf16, #tpu.memory_space<vmem>>, vector<34x512xbf16>
    %cst = arith.constant dense<0.000000e+00> : vector<64x512xf32>
    %2 = tpu.matmul %0, %1, %cst {dimension_numbers = #tpu.dot_dimension_numbers<[1], [0], [0], [1], [0, 0, 1, 1], [], []>} : vector<64x34xbf16>, vector<34x512xbf16>, vector<64x512xf32> -> vector<64x512xf32>
    %c0_3 = arith.constant 0 : index
    %c0_4 = arith.constant 0 : index
    %3 = vector.load %arg6[%c0_3, %c0_4] : memref<1x512xf32, #tpu.memory_space<vmem>>, vector<1x512xf32>
    %4 = vector.broadcast %3 : vector<1x512xf32> to vector<64x512xf32>
    %5 = arith.addf %2, %4 : vector<64x512xf32>
    %c0_5 = arith.constant 0 : index
    %c0_6 = arith.constant 0 : index
    %6 = vector.load %arg9[%c0_5, %c0_6] : memref<64x512xf32, #tpu.memory_space<vmem>>, vector<64x512xf32>
    tpu.vector_store %arg9[%c0_5, %c0_6], %5 {strides = array<i32>} : memref<64x512xf32, #tpu.memory_space<vmem>>, vector<64x512xf32>,
    %c0_7 = arith.constant 0 : index
    %c0_8 = arith.constant 0 : index
    %7 = vector.load %arg7[%c0_7, %c0_8] : memref<1x512xf32, #tpu.memory_space<vmem>>, vector<1x512xf32>
    %8 = vector.shape_cast %7 : vector<1x512xf32> to vector<1x512xf32>
    %9 = vector.broadcast %8 : vector<1x512xf32> to vector<8x512xf32>
    %cst_9 = arith.constant 0.000000e+00 : f32
    %10 = vector.broadcast %cst_9 : f32 to vector<8x128xf32>
    %cst_10 = arith.constant 0.000000e+00 : f32
    %11 = vector.broadcast %cst_10 : f32 to vector<8x128xf32>
    %cst_11 = arith.constant 0.000000e+00 : f32
    %12 = vector.broadcast %cst_11 : f32 to vector<8x128xf32>
    %c0_12 = arith.constant 0 : index
    %c0_13 = arith.constant 0 : index
    %13 = vector.load %arg9[%c0_12, %c0_13] : memref<64x512xf32, #tpu.memory_space<vmem>>, vector<8x512xf32>
    %14 = arith.truncf %10 : vector<8x128xf32> to vector<8x128xbf16>
    %c0_14 = arith.constant 0 : index
    %c0_15 = arith.constant 0 : index
    %15 = vector.load %arg3[%c0_14, %c0_15] : memref<128x512xbf16, #tpu.memory_space<vmem>>, vector<128x512xbf16>
    %cst_16 = arith.constant dense<0.000000e+00> : vector<8x512xf32>
    %16 = tpu.matmul %14, %15, %cst_16 {dimension_numbers = #tpu.dot_dimension_numbers<[1], [0], [0], [1], [0, 0, 1, 1], [], []>} : vector<8x128xbf16>, vector<128x512xbf16>, vector<8x512xf32> -> vector<8x512xf32>
    %17 = arith.addf %13, %16 : vector<8x512xf32>
    %18 = vector.extract_strided_slice %17 {offsets = [0, 0], sizes = [8, 384], strides = [1, 1]} : vector<8x512xf32> to vector<8x384xf32>
    %19 = arith.negf %18 : vector<8x384xf32>
    %20 = math.exp %19 : vector<8x384xf32>
    %cst_17 = arith.constant 1.000000e+00 : f32
    %21 = vector.broadcast %cst_17 : f32 to vector<8x384xf32>
    %22 = arith.addf %21, %20 : vector<8x384xf32>
    %23 = arith.divf %21, %22 : vector<8x384xf32>
    %24 = vector.extract_strided_slice %23 {offsets = [0, 0], sizes = [8, 128], strides = [1, 1]} : vector<8x384xf32> to vector<8x128xf32>
    %25 = vector.extract_strided_slice %23 {offsets = [0, 128], sizes = [8, 128], strides = [1, 1]} : vector<8x384xf32> to vector<8x128xf32>
    %26 = vector.extract_strided_slice %23 {offsets = [0, 256], sizes = [8, 128], strides = [1, 1]} : vector<8x384xf32> to vector<8x128xf32>
    %27 = vector.extract_strided_slice %17 {offsets = [0, 384], sizes = [8, 128], strides = [1, 1]} : vector<8x512xf32> to vector<8x128xf32>
    %28 = math.tanh %27 : vector<8x128xf32>
    %29 = arith.mulf %25, %11 : vector<8x128xf32>
    %30 = arith.mulf %24, %28 : vector<8x128xf32>
    %31 = arith.addf %29, %30 : vector<8x128xf32>
    %32 = math.tanh %31 : vector<8x128xf32>
    %33 = arith.mulf %26, %32 : vector<8x128xf32>
    %34 = arith.truncf %33 : vector<8x128xf32> to vector<8x128xbf16>
    %c0_18 = arith.constant 0 : index
    %c0_19 = arith.constant 0 : index
    %35 = vector.load %arg4[%c0_18, %c0_19] : memref<128x512xbf16, #tpu.memory_space<vmem>>, vector<128x512xbf16>
    %cst_20 = arith.constant dense<0.000000e+00> : vector<8x512xf32>
    %36 = tpu.matmul %34, %35, %cst_20 {dimension_numbers = #tpu.dot_dimension_numbers<[1], [0], [0], [1], [0, 0, 1, 1], [], []>} : vector<8x128xbf16>, vector<128x512xbf16>, vector<8x512xf32> -> vector<8x512xf32>
    %37 = arith.addf %9, %36 : vector<8x512xf32>
    %38 = vector.extract_strided_slice %37 {offsets = [0, 0], sizes = [8, 384], strides = [1, 1]} : vector<8x512xf32> to vector<8x384xf32>
    %39 = arith.negf %38 : vector<8x384xf32>
    %40 = math.exp %39 : vector<8x384xf32>
    %cst_21 = arith.constant 1.000000e+00 : f32
    %41 = vector.broadcast %cst_21 : f32 to vector<8x384xf32>
    %42 = arith.addf %41, %40 : vector<8x384xf32>
    %43 = arith.divf %41, %42 : vector<8x384xf32>
    %44 = vector.extract_strided_slice %43 {offsets = [0, 0], sizes = [8, 128], strides = [1, 1]} : vector<8x384xf32> to vector<8x128xf32>
    %45 = vector.extract_strided_slice %43 {offsets = [0, 128], sizes = [8, 128], strides = [1, 1]} : vector<8x384xf32> to vector<8x128xf32>
    %46 = vector.extract_strided_slice %43 {offsets = [0, 256], sizes = [8, 128], strides = [1, 1]} : vector<8x384xf32> to vector<8x128xf32>
    %47 = vector.extract_strided_slice %37 {offsets = [0, 384], sizes = [8, 128], strides = [1, 1]} : vector<8x512xf32> to vector<8x128xf32>
    %48 = math.tanh %47 : vector<8x128xf32>
    %49 = arith.mulf %45, %12 : vector<8x128xf32>
    %50 = arith.mulf %44, %48 : vector<8x128xf32>
    %51 = arith.addf %49, %50 : vector<8x128xf32>
    %52 = math.tanh %51 : vector<8x128xf32>
    %53 = arith.mulf %46, %52 : vector<8x128xf32>
    %54 = arith.truncf %53 : vector<8x128xf32> to vector<8x128xbf16>
    %c0_22 = arith.constant 0 : index
    %c0_23 = arith.constant 0 : index
    %55 = vector.load %arg5[%c0_22, %c0_23] : memref<128x512xbf16, #tpu.memory_space<vmem>>, vector<128x512xbf16>
    %cst_24 = arith.constant dense<0.000000e+00> : vector<8x512xf32>
    %56 = tpu.matmul %54, %55, %cst_24 {dimension_numbers = #tpu.dot_dimension_numbers<[1], [0], [0], [1], [0, 0, 1, 1], [], []>} : vector<8x128xbf16>, vector<128x512xbf16>, vector<8x512xf32> -> vector<8x512xf32>
    %57 = arith.addf %9, %56 : vector<8x512xf32>
    %c8 = arith.constant 8 : index
    %c0_25 = arith.constant 0 : index
    %58 = vector.load %arg9[%c8, %c0_25] : memref<64x512xf32, #tpu.memory_space<vmem>>, vector<8x512xf32>
    %59 = arith.truncf %33 : vector<8x128xf32> to vector<8x128xbf16>
    %c0_26 = arith.constant 0 : index
    %c0_27 = arith.constant 0 : index
    %60 = vector.load %arg3[%c0_26, %c0_27] : memref<128x512xbf16, #tpu.memory_space<vmem>>, vector<128x512xbf16>
    %cst_28 = arith.constant dense<0.000000e+00> : vector<8x512xf32>
    %61 = tpu.matmul %59, %60, %cst_28 {dimension_numbers = #tpu.dot_dimension_numbers<[1], [0], [0], [1], [0, 0, 1, 1], [], []>} : vector<8x128xbf16>, vector<128x512xbf16>, vector<8x512xf32> -> vector<8x512xf32>
    %62 = arith.addf %58, %61 : vector<8x512xf32>
    %63 = vector.extract_strided_slice %62 {offsets = [0, 0], sizes = [8, 384], strides = [1, 1]} : vector<8x512xf32> to vector<8x384xf32>
    %64 = arith.negf %63 : vector<8x384xf32>
    %65 = math.exp %64 : vector<8x384xf32>
    %cst_29 = arith.constant 1.000000e+00 : f32
    %66 = vector.broadcast %cst_29 : f32 to vector<8x384xf32>
    %67 = arith.addf %66, %65 : vector<8x384xf32>
    %68 = arith.divf %66, %67 : vector<8x384xf32>
    %69 = vector.extract_strided_slice %68 {offsets = [0, 0], sizes = [8, 128], strides = [1, 1]} : vector<8x384xf32> to vector<8x128xf32>
    %70 = vector.extract_strided_slice %68 {offsets = [0, 128], sizes = [8, 128], strides = [1, 1]} : vector<8x384xf32> to vector<8x128xf32>
    %71 = vector.extract_strided_slice %68 {offsets = [0, 256], sizes = [8, 128], strides = [1, 1]} : vector<8x384xf32> to vector<8x128xf32>
    %72 = vector.extract_strided_slice %62 {offsets = [0, 384], sizes = [8, 128], strides = [1, 1]} : vector<8x512xf32> to vector<8x128xf32>
    %73 = math.tanh %72 : vector<8x128xf32>
    %74 = arith.mulf %70, %31 : vector<8x128xf32>
    %75 = arith.mulf %69, %73 : vector<8x128xf32>
    %76 = arith.addf %74, %75 : vector<8x128xf32>
    %77 = math.tanh %76 : vector<8x128xf32>
    %78 = arith.mulf %71, %77 : vector<8x128xf32>
    %79 = arith.truncf %78 : vector<8x128xf32> to vector<8x128xbf16>
    %c0_30 = arith.constant 0 : index
    %c0_31 = arith.constant 0 : index
    %80 = vector.load %arg4[%c0_30, %c0_31] : memref<128x512xbf16, #tpu.memory_space<vmem>>, vector<128x512xbf16>
    %cst_32 = arith.constant dense<0.000000e+00> : vector<8x512xf32>
    %81 = tpu.matmul %79, %80, %cst_32 {dimension_numbers = #tpu.dot_dimension_numbers<[1], [0], [0], [1], [0, 0, 1, 1], [], []>} : vector<8x128xbf16>, vector<128x512xbf16>, vector<8x512xf32> -> vector<8x512xf32>
    %82 = arith.addf %57, %81 : vector<8x512xf32>
    %83 = vector.extract_strided_slice %82 {offsets = [0, 0], sizes = [8, 384], strides = [1, 1]} : vector<8x512xf32> to vector<8x384xf32>
    %84 = arith.negf %83 : vector<8x384xf32>
    %85 = math.exp %84 : vector<8x384xf32>
    %cst_33 = arith.constant 1.000000e+00 : f32
    %86 = vector.broadcast %cst_33 : f32 to vector<8x384xf32>
    %87 = arith.addf %86, %85 : vector<8x384xf32>
    %88 = arith.divf %86, %87 : vector<8x384xf32>
    %89 = vector.extract_strided_slice %88 {offsets = [0, 0], sizes = [8, 128], strides = [1, 1]} : vector<8x384xf32> to vector<8x128xf32>
    %90 = vector.extract_strided_slice %88 {offsets = [0, 128], sizes = [8, 128], strides = [1, 1]} : vector<8x384xf32> to vector<8x128xf32>
    %91 = vector.extract_strided_slice %88 {offsets = [0, 256], sizes = [8, 128], strides = [1, 1]} : vector<8x384xf32> to vector<8x128xf32>
    %92 = vector.extract_strided_slice %82 {offsets = [0, 384], sizes = [8, 128], strides = [1, 1]} : vector<8x512xf32> to vector<8x128xf32>
    %93 = math.tanh %92 : vector<8x128xf32>
    %94 = arith.mulf %90, %51 : vector<8x128xf32>
    %95 = arith.mulf %89, %93 : vector<8x128xf32>
    %96 = arith.addf %94, %95 : vector<8x128xf32>
    %97 = math.tanh %96 : vector<8x128xf32>
    %98 = arith.mulf %91, %97 : vector<8x128xf32>
    %99 = arith.truncf %98 : vector<8x128xf32> to vector<8x128xbf16>
    %c0_34 = arith.constant 0 : index
    %c0_35 = arith.constant 0 : index
    %100 = vector.load %arg5[%c0_34, %c0_35] : memref<128x512xbf16, #tpu.memory_space<vmem>>, vector<128x512xbf16>
    %cst_36 = arith.constant dense<0.000000e+00> : vector<8x512xf32>
    %101 = tpu.matmul %99, %100, %cst_36 {dimension_numbers = #tpu.dot_dimension_numbers<[1], [0], [0], [1], [0, 0, 1, 1], [], []>} : vector<8x128xbf16>, vector<128x512xbf16>, vector<8x512xf32> -> vector<8x512xf32>
    %102 = arith.addf %9, %101 : vector<8x512xf32>
    %c16 = arith.constant 16 : index
    %c0_37 = arith.constant 0 : index
    %103 = vector.load %arg9[%c16, %c0_37] : memref<64x512xf32, #tpu.memory_space<vmem>>, vector<8x512xf32>
    %104 = arith.truncf %78 : vector<8x128xf32> to vector<8x128xbf16>
    %c0_38 = arith.constant 0 : index
    %c0_39 = arith.constant 0 : index
    %105 = vector.load %arg3[%c0_38, %c0_39] : memref<128x512xbf16, #tpu.memory_space<vmem>>, vector<128x512xbf16>
    %cst_40 = arith.constant dense<0.000000e+00> : vector<8x512xf32>
    %106 = tpu.matmul %104, %105, %cst_40 {dimension_numbers = #tpu.dot_dimension_numbers<[1], [0], [0], [1], [0, 0, 1, 1], [], []>} : vector<8x128xbf16>, vector<128x512xbf16>, vector<8x512xf32> -> vector<8x512xf32>
    %107 = arith.addf %103, %106 : vector<8x512xf32>
    %108 = vector.extract_strided_slice %107 {offsets = [0, 0], sizes = [8, 384], strides = [1, 1]} : vector<8x512xf32> to vector<8x384xf32>
    %109 = arith.negf %108 : vector<8x384xf32>
    %110 = math.exp %109 : vector<8x384xf32>
    %cst_41 = arith.constant 1.000000e+00 : f32
    %111 = vector.broadcast %cst_41 : f32 to vector<8x384xf32>
    %112 = arith.addf %111, %110 : vector<8x384xf32>
    %113 = arith.divf %111, %112 : vector<8x384xf32>
    %114 = vector.extract_strided_slice %113 {offsets = [0, 0], sizes = [8, 128], strides = [1, 1]} : vector<8x384xf32> to vector<8x128xf32>
    %115 = vector.extract_strided_slice %113 {offsets = [0, 128], sizes = [8, 128], strides = [1, 1]} : vector<8x384xf32> to vector<8x128xf32>
    %116 = vector.extract_strided_slice %113 {offsets = [0, 256], sizes = [8, 128], strides = [1, 1]} : vector<8x384xf32> to vector<8x128xf32>
    %117 = vector.extract_strided_slice %107 {offsets = [0, 384], sizes = [8, 128], strides = [1, 1]} : vector<8x512xf32> to vector<8x128xf32>
    %118 = math.tanh %117 : vector<8x128xf32>
    %119 = arith.mulf %115, %76 : vector<8x128xf32>
    %120 = arith.mulf %114, %118 : vector<8x128xf32>
    %121 = arith.addf %119, %120 : vector<8x128xf32>
    %122 = math.tanh %121 : vector<8x128xf32>
    %123 = arith.mulf %116, %122 : vector<8x128xf32>
    %124 = arith.truncf %123 : vector<8x128xf32> to vector<8x128xbf16>
    %c0_42 = arith.constant 0 : index
    %c0_43 = arith.constant 0 : index
    %125 = vector.load %arg4[%c0_42, %c0_43] : memref<128x512xbf16, #tpu.memory_space<vmem>>, vector<128x512xbf16>
    %cst_44 = arith.constant dense<0.000000e+00> : vector<8x512xf32>
    %126 = tpu.matmul %124, %125, %cst_44 {dimension_numbers = #tpu.dot_dimension_numbers<[1], [0], [0], [1], [0, 0, 1, 1], [], []>} : vector<8x128xbf16>, vector<128x512xbf16>, vector<8x512xf32> -> vector<8x512xf32>
    %127 = arith.addf %102, %126 : vector<8x512xf32>
    %128 = vector.extract_strided_slice %127 {offsets = [0, 0], sizes = [8, 384], strides = [1, 1]} : vector<8x512xf32> to vector<8x384xf32>
    %129 = arith.negf %128 : vector<8x384xf32>
    %130 = math.exp %129 : vector<8x384xf32>
    %cst_45 = arith.constant 1.000000e+00 : f32
    %131 = vector.broadcast %cst_45 : f32 to vector<8x384xf32>
    %132 = arith.addf %131, %130 : vector<8x384xf32>
    %133 = arith.divf %131, %132 : vector<8x384xf32>
    %134 = vector.extract_strided_slice %133 {offsets = [0, 0], sizes = [8, 128], strides = [1, 1]} : vector<8x384xf32> to vector<8x128xf32>
    %135 = vector.extract_strided_slice %133 {offsets = [0, 128], sizes = [8, 128], strides = [1, 1]} : vector<8x384xf32> to vector<8x128xf32>
    %136 = vector.extract_strided_slice %133 {offsets = [0, 256], sizes = [8, 128], strides = [1, 1]} : vector<8x384xf32> to vector<8x128xf32>
    %137 = vector.extract_strided_slice %127 {offsets = [0, 384], sizes = [8, 128], strides = [1, 1]} : vector<8x512xf32> to vector<8x128xf32>
    %138 = math.tanh %137 : vector<8x128xf32>
    %139 = arith.mulf %135, %96 : vector<8x128xf32>
    %140 = arith.mulf %134, %138 : vector<8x128xf32>
    %141 = arith.addf %139, %140 : vector<8x128xf32>
    %142 = math.tanh %141 : vector<8x128xf32>
    %143 = arith.mulf %136, %142 : vector<8x128xf32>
    %144 = arith.truncf %143 : vector<8x128xf32> to vector<8x128xbf16>
    %c0_46 = arith.constant 0 : index
    %c0_47 = arith.constant 0 : index
    %145 = vector.load %arg5[%c0_46, %c0_47] : memref<128x512xbf16, #tpu.memory_space<vmem>>, vector<128x512xbf16>
    %cst_48 = arith.constant dense<0.000000e+00> : vector<8x512xf32>
    %146 = tpu.matmul %144, %145, %cst_48 {dimension_numbers = #tpu.dot_dimension_numbers<[1], [0], [0], [1], [0, 0, 1, 1], [], []>} : vector<8x128xbf16>, vector<128x512xbf16>, vector<8x512xf32> -> vector<8x512xf32>
    %147 = arith.addf %9, %146 : vector<8x512xf32>
    %c24 = arith.constant 24 : index
    %c0_49 = arith.constant 0 : index
    %148 = vector.load %arg9[%c24, %c0_49] : memref<64x512xf32, #tpu.memory_space<vmem>>, vector<8x512xf32>
    %149 = arith.truncf %123 : vector<8x128xf32> to vector<8x128xbf16>
    %c0_50 = arith.constant 0 : index
    %c0_51 = arith.constant 0 : index
    %150 = vector.load %arg3[%c0_50, %c0_51] : memref<128x512xbf16, #tpu.memory_space<vmem>>, vector<128x512xbf16>
    %cst_52 = arith.constant dense<0.000000e+00> : vector<8x512xf32>
    %151 = tpu.matmul %149, %150, %cst_52 {dimension_numbers = #tpu.dot_dimension_numbers<[1], [0], [0], [1], [0, 0, 1, 1], [], []>} : vector<8x128xbf16>, vector<128x512xbf16>, vector<8x512xf32> -> vector<8x512xf32>
    %152 = arith.addf %148, %151 : vector<8x512xf32>
    %153 = vector.extract_strided_slice %152 {offsets = [0, 0], sizes = [8, 384], strides = [1, 1]} : vector<8x512xf32> to vector<8x384xf32>
    %154 = arith.negf %153 : vector<8x384xf32>
    %155 = math.exp %154 : vector<8x384xf32>
    %cst_53 = arith.constant 1.000000e+00 : f32
    %156 = vector.broadcast %cst_53 : f32 to vector<8x384xf32>
    %157 = arith.addf %156, %155 : vector<8x384xf32>
    %158 = arith.divf %156, %157 : vector<8x384xf32>
    %159 = vector.extract_strided_slice %158 {offsets = [0, 0], sizes = [8, 128], strides = [1, 1]} : vector<8x384xf32> to vector<8x128xf32>
    %160 = vector.extract_strided_slice %158 {offsets = [0, 128], sizes = [8, 128], strides = [1, 1]} : vector<8x384xf32> to vector<8x128xf32>
    %161 = vector.extract_strided_slice %158 {offsets = [0, 256], sizes = [8, 128], strides = [1, 1]} : vector<8x384xf32> to vector<8x128xf32>
    %162 = vector.extract_strided_slice %152 {offsets = [0, 384], sizes = [8, 128], strides = [1, 1]} : vector<8x512xf32> to vector<8x128xf32>
    %163 = math.tanh %162 : vector<8x128xf32>
    %164 = arith.mulf %160, %121 : vector<8x128xf32>
    %165 = arith.mulf %159, %163 : vector<8x128xf32>
    %166 = arith.addf %164, %165 : vector<8x128xf32>
    %167 = math.tanh %166 : vector<8x128xf32>
    %168 = arith.mulf %161, %167 : vector<8x128xf32>
    %169 = arith.truncf %168 : vector<8x128xf32> to vector<8x128xbf16>
    %c0_54 = arith.constant 0 : index
    %c0_55 = arith.constant 0 : index
    %170 = vector.load %arg4[%c0_54, %c0_55] : memref<128x512xbf16, #tpu.memory_space<vmem>>, vector<128x512xbf16>
    %cst_56 = arith.constant dense<0.000000e+00> : vector<8x512xf32>
    %171 = tpu.matmul %169, %170, %cst_56 {dimension_numbers = #tpu.dot_dimension_numbers<[1], [0], [0], [1], [0, 0, 1, 1], [], []>} : vector<8x128xbf16>, vector<128x512xbf16>, vector<8x512xf32> -> vector<8x512xf32>
    %172 = arith.addf %147, %171 : vector<8x512xf32>
    %173 = vector.extract_strided_slice %172 {offsets = [0, 0], sizes = [8, 384], strides = [1, 1]} : vector<8x512xf32> to vector<8x384xf32>
    %174 = arith.negf %173 : vector<8x384xf32>
    %175 = math.exp %174 : vector<8x384xf32>
    %cst_57 = arith.constant 1.000000e+00 : f32
    %176 = vector.broadcast %cst_57 : f32 to vector<8x384xf32>
    %177 = arith.addf %176, %175 : vector<8x384xf32>
    %178 = arith.divf %176, %177 : vector<8x384xf32>
    %179 = vector.extract_strided_slice %178 {offsets = [0, 0], sizes = [8, 128], strides = [1, 1]} : vector<8x384xf32> to vector<8x128xf32>
    %180 = vector.extract_strided_slice %178 {offsets = [0, 128], sizes = [8, 128], strides = [1, 1]} : vector<8x384xf32> to vector<8x128xf32>
    %181 = vector.extract_strided_slice %178 {offsets = [0, 256], sizes = [8, 128], strides = [1, 1]} : vector<8x384xf32> to vector<8x128xf32>
    %182 = vector.extract_strided_slice %172 {offsets = [0, 384], sizes = [8, 128], strides = [1, 1]} : vector<8x512xf32> to vector<8x128xf32>
    %183 = math.tanh %182 : vector<8x128xf32>
    %184 = arith.mulf %180, %141 : vector<8x128xf32>
    %185 = arith.mulf %179, %183 : vector<8x128xf32>
    %186 = arith.addf %184, %185 : vector<8x128xf32>
    %187 = math.tanh %186 : vector<8x128xf32>
    %188 = arith.mulf %181, %187 : vector<8x128xf32>
    %189 = arith.truncf %188 : vector<8x128xf32> to vector<8x128xbf16>
    %c0_58 = arith.constant 0 : index
    %c0_59 = arith.constant 0 : index
    %190 = vector.load %arg5[%c0_58, %c0_59] : memref<128x512xbf16, #tpu.memory_space<vmem>>, vector<128x512xbf16>
    %cst_60 = arith.constant dense<0.000000e+00> : vector<8x512xf32>
    %191 = tpu.matmul %189, %190, %cst_60 {dimension_numbers = #tpu.dot_dimension_numbers<[1], [0], [0], [1], [0, 0, 1, 1], [], []>} : vector<8x128xbf16>, vector<128x512xbf16>, vector<8x512xf32> -> vector<8x512xf32>
    %192 = arith.addf %9, %191 : vector<8x512xf32>
    %c32 = arith.constant 32 : index
    %c0_61 = arith.constant 0 : index
    %193 = vector.load %arg9[%c32, %c0_61] : memref<64x512xf32, #tpu.memory_space<vmem>>, vector<8x512xf32>
    %194 = arith.truncf %168 : vector<8x128xf32> to vector<8x128xbf16>
    %c0_62 = arith.constant 0 : index
    %c0_63 = arith.constant 0 : index
    %195 = vector.load %arg3[%c0_62, %c0_63] : memref<128x512xbf16, #tpu.memory_space<vmem>>, vector<128x512xbf16>
    %cst_64 = arith.constant dense<0.000000e+00> : vector<8x512xf32>
    %196 = tpu.matmul %194, %195, %cst_64 {dimension_numbers = #tpu.dot_dimension_numbers<[1], [0], [0], [1], [0, 0, 1, 1], [], []>} : vector<8x128xbf16>, vector<128x512xbf16>, vector<8x512xf32> -> vector<8x512xf32>
    %197 = arith.addf %193, %196 : vector<8x512xf32>
    %198 = vector.extract_strided_slice %197 {offsets = [0, 0], sizes = [8, 384], strides = [1, 1]} : vector<8x512xf32> to vector<8x384xf32>
    %199 = arith.negf %198 : vector<8x384xf32>
    %200 = math.exp %199 : vector<8x384xf32>
    %cst_65 = arith.constant 1.000000e+00 : f32
    %201 = vector.broadcast %cst_65 : f32 to vector<8x384xf32>
    %202 = arith.addf %201, %200 : vector<8x384xf32>
    %203 = arith.divf %201, %202 : vector<8x384xf32>
    %204 = vector.extract_strided_slice %203 {offsets = [0, 0], sizes = [8, 128], strides = [1, 1]} : vector<8x384xf32> to vector<8x128xf32>
    %205 = vector.extract_strided_slice %203 {offsets = [0, 128], sizes = [8, 128], strides = [1, 1]} : vector<8x384xf32> to vector<8x128xf32>
    %206 = vector.extract_strided_slice %203 {offsets = [0, 256], sizes = [8, 128], strides = [1, 1]} : vector<8x384xf32> to vector<8x128xf32>
    %207 = vector.extract_strided_slice %197 {offsets = [0, 384], sizes = [8, 128], strides = [1, 1]} : vector<8x512xf32> to vector<8x128xf32>
    %208 = math.tanh %207 : vector<8x128xf32>
    %209 = arith.mulf %205, %166 : vector<8x128xf32>
    %210 = arith.mulf %204, %208 : vector<8x128xf32>
    %211 = arith.addf %209, %210 : vector<8x128xf32>
    %212 = math.tanh %211 : vector<8x128xf32>
    %213 = arith.mulf %206, %212 : vector<8x128xf32>
    %214 = arith.truncf %213 : vector<8x128xf32> to vector<8x128xbf16>
    %c0_66 = arith.constant 0 : index
    %c0_67 = arith.constant 0 : index
    %215 = vector.load %arg4[%c0_66, %c0_67] : memref<128x512xbf16, #tpu.memory_space<vmem>>, vector<128x512xbf16>
    %cst_68 = arith.constant dense<0.000000e+00> : vector<8x512xf32>
    %216 = tpu.matmul %214, %215, %cst_68 {dimension_numbers = #tpu.dot_dimension_numbers<[1], [0], [0], [1], [0, 0, 1, 1], [], []>} : vector<8x128xbf16>, vector<128x512xbf16>, vector<8x512xf32> -> vector<8x512xf32>
    %217 = arith.addf %192, %216 : vector<8x512xf32>
    %218 = vector.extract_strided_slice %217 {offsets = [0, 0], sizes = [8, 384], strides = [1, 1]} : vector<8x512xf32> to vector<8x384xf32>
    %219 = arith.negf %218 : vector<8x384xf32>
    %220 = math.exp %219 : vector<8x384xf32>
    %cst_69 = arith.constant 1.000000e+00 : f32
    %221 = vector.broadcast %cst_69 : f32 to vector<8x384xf32>
    %222 = arith.addf %221, %220 : vector<8x384xf32>
    %223 = arith.divf %221, %222 : vector<8x384xf32>
    %224 = vector.extract_strided_slice %223 {offsets = [0, 0], sizes = [8, 128], strides = [1, 1]} : vector<8x384xf32> to vector<8x128xf32>
    %225 = vector.extract_strided_slice %223 {offsets = [0, 128], sizes = [8, 128], strides = [1, 1]} : vector<8x384xf32> to vector<8x128xf32>
    %226 = vector.extract_strided_slice %223 {offsets = [0, 256], sizes = [8, 128], strides = [1, 1]} : vector<8x384xf32> to vector<8x128xf32>
    %227 = vector.extract_strided_slice %217 {offsets = [0, 384], sizes = [8, 128], strides = [1, 1]} : vector<8x512xf32> to vector<8x128xf32>
    %228 = math.tanh %227 : vector<8x128xf32>
    %229 = arith.mulf %225, %186 : vector<8x128xf32>
    %230 = arith.mulf %224, %228 : vector<8x128xf32>
    %231 = arith.addf %229, %230 : vector<8x128xf32>
    %232 = math.tanh %231 : vector<8x128xf32>
    %233 = arith.mulf %226, %232 : vector<8x128xf32>
    %234 = arith.truncf %233 : vector<8x128xf32> to vector<8x128xbf16>
    %c0_70 = arith.constant 0 : index
    %c0_71 = arith.constant 0 : index
    %235 = vector.load %arg5[%c0_70, %c0_71] : memref<128x512xbf16, #tpu.memory_space<vmem>>, vector<128x512xbf16>
    %cst_72 = arith.constant dense<0.000000e+00> : vector<8x512xf32>
    %236 = tpu.matmul %234, %235, %cst_72 {dimension_numbers = #tpu.dot_dimension_numbers<[1], [0], [0], [1], [0, 0, 1, 1], [], []>} : vector<8x128xbf16>, vector<128x512xbf16>, vector<8x512xf32> -> vector<8x512xf32>
    %237 = arith.addf %9, %236 : vector<8x512xf32>
    %c40 = arith.constant 40 : index
    %c0_73 = arith.constant 0 : index
    %238 = vector.load %arg9[%c40, %c0_73] : memref<64x512xf32, #tpu.memory_space<vmem>>, vector<8x512xf32>
    %239 = arith.truncf %213 : vector<8x128xf32> to vector<8x128xbf16>
    %c0_74 = arith.constant 0 : index
    %c0_75 = arith.constant 0 : index
    %240 = vector.load %arg3[%c0_74, %c0_75] : memref<128x512xbf16, #tpu.memory_space<vmem>>, vector<128x512xbf16>
    %cst_76 = arith.constant dense<0.000000e+00> : vector<8x512xf32>
    %241 = tpu.matmul %239, %240, %cst_76 {dimension_numbers = #tpu.dot_dimension_numbers<[1], [0], [0], [1], [0, 0, 1, 1], [], []>} : vector<8x128xbf16>, vector<128x512xbf16>, vector<8x512xf32> -> vector<8x512xf32>
    %242 = arith.addf %238, %241 : vector<8x512xf32>
    %243 = vector.extract_strided_slice %242 {offsets = [0, 0], sizes = [8, 384], strides = [1, 1]} : vector<8x512xf32> to vector<8x384xf32>
    %244 = arith.negf %243 : vector<8x384xf32>
    %245 = math.exp %244 : vector<8x384xf32>
    %cst_77 = arith.constant 1.000000e+00 : f32
    %246 = vector.broadcast %cst_77 : f32 to vector<8x384xf32>
    %247 = arith.addf %246, %245 : vector<8x384xf32>
    %248 = arith.divf %246, %247 : vector<8x384xf32>
    %249 = vector.extract_strided_slice %248 {offsets = [0, 0], sizes = [8, 128], strides = [1, 1]} : vector<8x384xf32> to vector<8x128xf32>
    %250 = vector.extract_strided_slice %248 {offsets = [0, 128], sizes = [8, 128], strides = [1, 1]} : vector<8x384xf32> to vector<8x128xf32>
    %251 = vector.extract_strided_slice %248 {offsets = [0, 256], sizes = [8, 128], strides = [1, 1]} : vector<8x384xf32> to vector<8x128xf32>
    %252 = vector.extract_strided_slice %242 {offsets = [0, 384], sizes = [8, 128], strides = [1, 1]} : vector<8x512xf32> to vector<8x128xf32>
    %253 = math.tanh %252 : vector<8x128xf32>
    %254 = arith.mulf %250, %211 : vector<8x128xf32>
    %255 = arith.mulf %249, %253 : vector<8x128xf32>
    %256 = arith.addf %254, %255 : vector<8x128xf32>
    %257 = math.tanh %256 : vector<8x128xf32>
    %258 = arith.mulf %251, %257 : vector<8x128xf32>
    %259 = arith.truncf %258 : vector<8x128xf32> to vector<8x128xbf16>
    %c0_78 = arith.constant 0 : index
    %c0_79 = arith.constant 0 : index
    %260 = vector.load %arg4[%c0_78, %c0_79] : memref<128x512xbf16, #tpu.memory_space<vmem>>, vector<128x512xbf16>
    %cst_80 = arith.constant dense<0.000000e+00> : vector<8x512xf32>
    %261 = tpu.matmul %259, %260, %cst_80 {dimension_numbers = #tpu.dot_dimension_numbers<[1], [0], [0], [1], [0, 0, 1, 1], [], []>} : vector<8x128xbf16>, vector<128x512xbf16>, vector<8x512xf32> -> vector<8x512xf32>
    %262 = arith.addf %237, %261 : vector<8x512xf32>
    %263 = vector.extract_strided_slice %262 {offsets = [0, 0], sizes = [8, 384], strides = [1, 1]} : vector<8x512xf32> to vector<8x384xf32>
    %264 = arith.negf %263 : vector<8x384xf32>
    %265 = math.exp %264 : vector<8x384xf32>
    %cst_81 = arith.constant 1.000000e+00 : f32
    %266 = vector.broadcast %cst_81 : f32 to vector<8x384xf32>
    %267 = arith.addf %266, %265 : vector<8x384xf32>
    %268 = arith.divf %266, %267 : vector<8x384xf32>
    %269 = vector.extract_strided_slice %268 {offsets = [0, 0], sizes = [8, 128], strides = [1, 1]} : vector<8x384xf32> to vector<8x128xf32>
    %270 = vector.extract_strided_slice %268 {offsets = [0, 128], sizes = [8, 128], strides = [1, 1]} : vector<8x384xf32> to vector<8x128xf32>
    %271 = vector.extract_strided_slice %268 {offsets = [0, 256], sizes = [8, 128], strides = [1, 1]} : vector<8x384xf32> to vector<8x128xf32>
    %272 = vector.extract_strided_slice %262 {offsets = [0, 384], sizes = [8, 128], strides = [1, 1]} : vector<8x512xf32> to vector<8x128xf32>
    %273 = math.tanh %272 : vector<8x128xf32>
    %274 = arith.mulf %270, %231 : vector<8x128xf32>
    %275 = arith.mulf %269, %273 : vector<8x128xf32>
    %276 = arith.addf %274, %275 : vector<8x128xf32>
    %277 = math.tanh %276 : vector<8x128xf32>
    %278 = arith.mulf %271, %277 : vector<8x128xf32>
    %279 = arith.truncf %278 : vector<8x128xf32> to vector<8x128xbf16>
    %c0_82 = arith.constant 0 : index
    %c0_83 = arith.constant 0 : index
    %280 = vector.load %arg5[%c0_82, %c0_83] : memref<128x512xbf16, #tpu.memory_space<vmem>>, vector<128x512xbf16>
    %cst_84 = arith.constant dense<0.000000e+00> : vector<8x512xf32>
    %281 = tpu.matmul %279, %280, %cst_84 {dimension_numbers = #tpu.dot_dimension_numbers<[1], [0], [0], [1], [0, 0, 1, 1], [], []>} : vector<8x128xbf16>, vector<128x512xbf16>, vector<8x512xf32> -> vector<8x512xf32>
    %282 = arith.addf %9, %281 : vector<8x512xf32>
    %c48 = arith.constant 48 : index
    %c0_85 = arith.constant 0 : index
    %283 = vector.load %arg9[%c48, %c0_85] : memref<64x512xf32, #tpu.memory_space<vmem>>, vector<8x512xf32>
    %284 = arith.truncf %258 : vector<8x128xf32> to vector<8x128xbf16>
    %c0_86 = arith.constant 0 : index
    %c0_87 = arith.constant 0 : index
    %285 = vector.load %arg3[%c0_86, %c0_87] : memref<128x512xbf16, #tpu.memory_space<vmem>>, vector<128x512xbf16>
    %cst_88 = arith.constant dense<0.000000e+00> : vector<8x512xf32>
    %286 = tpu.matmul %284, %285, %cst_88 {dimension_numbers = #tpu.dot_dimension_numbers<[1], [0], [0], [1], [0, 0, 1, 1], [], []>} : vector<8x128xbf16>, vector<128x512xbf16>, vector<8x512xf32> -> vector<8x512xf32>
    %287 = arith.addf %283, %286 : vector<8x512xf32>
    %288 = vector.extract_strided_slice %287 {offsets = [0, 0], sizes = [8, 384], strides = [1, 1]} : vector<8x512xf32> to vector<8x384xf32>
    %289 = arith.negf %288 : vector<8x384xf32>
    %290 = math.exp %289 : vector<8x384xf32>
    %cst_89 = arith.constant 1.000000e+00 : f32
    %291 = vector.broadcast %cst_89 : f32 to vector<8x384xf32>
    %292 = arith.addf %291, %290 : vector<8x384xf32>
    %293 = arith.divf %291, %292 : vector<8x384xf32>
    %294 = vector.extract_strided_slice %293 {offsets = [0, 0], sizes = [8, 128], strides = [1, 1]} : vector<8x384xf32> to vector<8x128xf32>
    %295 = vector.extract_strided_slice %293 {offsets = [0, 128], sizes = [8, 128], strides = [1, 1]} : vector<8x384xf32> to vector<8x128xf32>
    %296 = vector.extract_strided_slice %293 {offsets = [0, 256], sizes = [8, 128], strides = [1, 1]} : vector<8x384xf32> to vector<8x128xf32>
    %297 = vector.extract_strided_slice %287 {offsets = [0, 384], sizes = [8, 128], strides = [1, 1]} : vector<8x512xf32> to vector<8x128xf32>
    %298 = math.tanh %297 : vector<8x128xf32>
    %299 = arith.mulf %295, %256 : vector<8x128xf32>
    %300 = arith.mulf %294, %298 : vector<8x128xf32>
    %301 = arith.addf %299, %300 : vector<8x128xf32>
    %302 = math.tanh %301 : vector<8x128xf32>
    %303 = arith.mulf %296, %302 : vector<8x128xf32>
    %304 = arith.truncf %303 : vector<8x128xf32> to vector<8x128xbf16>
    %c0_90 = arith.constant 0 : index
    %c0_91 = arith.constant 0 : index
    %305 = vector.load %arg4[%c0_90, %c0_91] : memref<128x512xbf16, #tpu.memory_space<vmem>>, vector<128x512xbf16>
    %cst_92 = arith.constant dense<0.000000e+00> : vector<8x512xf32>
    %306 = tpu.matmul %304, %305, %cst_92 {dimension_numbers = #tpu.dot_dimension_numbers<[1], [0], [0], [1], [0, 0, 1, 1], [], []>} : vector<8x128xbf16>, vector<128x512xbf16>, vector<8x512xf32> -> vector<8x512xf32>
    %307 = arith.addf %282, %306 : vector<8x512xf32>
    %308 = vector.extract_strided_slice %307 {offsets = [0, 0], sizes = [8, 384], strides = [1, 1]} : vector<8x512xf32> to vector<8x384xf32>
    %309 = arith.negf %308 : vector<8x384xf32>
    %310 = math.exp %309 : vector<8x384xf32>
    %cst_93 = arith.constant 1.000000e+00 : f32
    %311 = vector.broadcast %cst_93 : f32 to vector<8x384xf32>
    %312 = arith.addf %311, %310 : vector<8x384xf32>
    %313 = arith.divf %311, %312 : vector<8x384xf32>
    %314 = vector.extract_strided_slice %313 {offsets = [0, 0], sizes = [8, 128], strides = [1, 1]} : vector<8x384xf32> to vector<8x128xf32>
    %315 = vector.extract_strided_slice %313 {offsets = [0, 128], sizes = [8, 128], strides = [1, 1]} : vector<8x384xf32> to vector<8x128xf32>
    %316 = vector.extract_strided_slice %313 {offsets = [0, 256], sizes = [8, 128], strides = [1, 1]} : vector<8x384xf32> to vector<8x128xf32>
    %317 = vector.extract_strided_slice %307 {offsets = [0, 384], sizes = [8, 128], strides = [1, 1]} : vector<8x512xf32> to vector<8x128xf32>
    %318 = math.tanh %317 : vector<8x128xf32>
    %319 = arith.mulf %315, %276 : vector<8x128xf32>
    %320 = arith.mulf %314, %318 : vector<8x128xf32>
    %321 = arith.addf %319, %320 : vector<8x128xf32>
    %322 = math.tanh %321 : vector<8x128xf32>
    %323 = arith.mulf %316, %322 : vector<8x128xf32>
    %324 = arith.truncf %323 : vector<8x128xf32> to vector<8x128xbf16>
    %c0_94 = arith.constant 0 : index
    %c0_95 = arith.constant 0 : index
    %325 = vector.load %arg5[%c0_94, %c0_95] : memref<128x512xbf16, #tpu.memory_space<vmem>>, vector<128x512xbf16>
    %cst_96 = arith.constant dense<0.000000e+00> : vector<8x512xf32>
    %326 = tpu.matmul %324, %325, %cst_96 {dimension_numbers = #tpu.dot_dimension_numbers<[1], [0], [0], [1], [0, 0, 1, 1], [], []>} : vector<8x128xbf16>, vector<128x512xbf16>, vector<8x512xf32> -> vector<8x512xf32>
    %327 = arith.addf %9, %326 : vector<8x512xf32>
    %c56 = arith.constant 56 : index
    %c0_97 = arith.constant 0 : index
    %328 = vector.load %arg9[%c56, %c0_97] : memref<64x512xf32, #tpu.memory_space<vmem>>, vector<8x512xf32>
    %329 = arith.truncf %303 : vector<8x128xf32> to vector<8x128xbf16>
    %c0_98 = arith.constant 0 : index
    %c0_99 = arith.constant 0 : index
    %330 = vector.load %arg3[%c0_98, %c0_99] : memref<128x512xbf16, #tpu.memory_space<vmem>>, vector<128x512xbf16>
    %cst_100 = arith.constant dense<0.000000e+00> : vector<8x512xf32>
    %331 = tpu.matmul %329, %330, %cst_100 {dimension_numbers = #tpu.dot_dimension_numbers<[1], [0], [0], [1], [0, 0, 1, 1], [], []>} : vector<8x128xbf16>, vector<128x512xbf16>, vector<8x512xf32> -> vector<8x512xf32>
    %332 = arith.addf %328, %331 : vector<8x512xf32>
    %333 = vector.extract_strided_slice %332 {offsets = [0, 0], sizes = [8, 384], strides = [1, 1]} : vector<8x512xf32> to vector<8x384xf32>
    %334 = arith.negf %333 : vector<8x384xf32>
    %335 = math.exp %334 : vector<8x384xf32>
    %cst_101 = arith.constant 1.000000e+00 : f32
    %336 = vector.broadcast %cst_101 : f32 to vector<8x384xf32>
    %337 = arith.addf %336, %335 : vector<8x384xf32>
    %338 = arith.divf %336, %337 : vector<8x384xf32>
    %339 = vector.extract_strided_slice %338 {offsets = [0, 0], sizes = [8, 128], strides = [1, 1]} : vector<8x384xf32> to vector<8x128xf32>
    %340 = vector.extract_strided_slice %338 {offsets = [0, 128], sizes = [8, 128], strides = [1, 1]} : vector<8x384xf32> to vector<8x128xf32>
    %341 = vector.extract_strided_slice %338 {offsets = [0, 256], sizes = [8, 128], strides = [1, 1]} : vector<8x384xf32> to vector<8x128xf32>
    %342 = vector.extract_strided_slice %332 {offsets = [0, 384], sizes = [8, 128], strides = [1, 1]} : vector<8x512xf32> to vector<8x128xf32>
    %343 = math.tanh %342 : vector<8x128xf32>
    %344 = arith.mulf %340, %301 : vector<8x128xf32>
    %345 = arith.mulf %339, %343 : vector<8x128xf32>
    %346 = arith.addf %344, %345 : vector<8x128xf32>
    %347 = math.tanh %346 : vector<8x128xf32>
    %348 = arith.mulf %341, %347 : vector<8x128xf32>
    %349 = arith.truncf %348 : vector<8x128xf32> to vector<8x128xbf16>
    %c0_102 = arith.constant 0 : index
    %c0_103 = arith.constant 0 : index
    %350 = vector.load %arg4[%c0_102, %c0_103] : memref<128x512xbf16, #tpu.memory_space<vmem>>, vector<128x512xbf16>
    %cst_104 = arith.constant dense<0.000000e+00> : vector<8x512xf32>
    %351 = tpu.matmul %349, %350, %cst_104 {dimension_numbers = #tpu.dot_dimension_numbers<[1], [0], [0], [1], [0, 0, 1, 1], [], []>} : vector<8x128xbf16>, vector<128x512xbf16>, vector<8x512xf32> -> vector<8x512xf32>
    %352 = arith.addf %327, %351 : vector<8x512xf32>
    %353 = vector.extract_strided_slice %352 {offsets = [0, 0], sizes = [8, 384], strides = [1, 1]} : vector<8x512xf32> to vector<8x384xf32>
    %354 = arith.negf %353 : vector<8x384xf32>
    %355 = math.exp %354 : vector<8x384xf32>
    %cst_105 = arith.constant 1.000000e+00 : f32
    %356 = vector.broadcast %cst_105 : f32 to vector<8x384xf32>
    %357 = arith.addf %356, %355 : vector<8x384xf32>
    %358 = arith.divf %356, %357 : vector<8x384xf32>
    %359 = vector.extract_strided_slice %358 {offsets = [0, 0], sizes = [8, 128], strides = [1, 1]} : vector<8x384xf32> to vector<8x128xf32>
    %360 = vector.extract_strided_slice %358 {offsets = [0, 128], sizes = [8, 128], strides = [1, 1]} : vector<8x384xf32> to vector<8x128xf32>
    %361 = vector.extract_strided_slice %358 {offsets = [0, 256], sizes = [8, 128], strides = [1, 1]} : vector<8x384xf32> to vector<8x128xf32>
    %362 = vector.extract_strided_slice %352 {offsets = [0, 384], sizes = [8, 128], strides = [1, 1]} : vector<8x512xf32> to vector<8x128xf32>
    %363 = math.tanh %362 : vector<8x128xf32>
    %364 = arith.mulf %360, %321 : vector<8x128xf32>
    %365 = arith.mulf %359, %363 : vector<8x128xf32>
    %366 = arith.addf %364, %365 : vector<8x128xf32>
    %367 = math.tanh %366 : vector<8x128xf32>
    %368 = arith.mulf %361, %367 : vector<8x128xf32>
    %c0_106 = arith.constant 0 : index
    %c0_107 = arith.constant 0 : index
    %369 = vector.load %arg8[%c0_106, %c0_107] : memref<8x128xf32, #tpu.memory_space<vmem>>, vector<8x128xf32>
    tpu.vector_store %arg8[%c0_106, %c0_107], %368 {strides = array<i32>} : memref<8x128xf32, #tpu.memory_space<vmem>>, vector<8x128xf32>,
    return
  }
  func.func @transform_0(%arg0: i32) -> (i32, i32) {
    %c0_i32 = arith.constant 0 : i32
    %c0_i32_0 = arith.constant 0 : i32
    return %arg0, %c0_i32 : i32, i32
  }
  func.func @transform_1(%arg0: i32) -> (i32, i32) {
    %c0_i32 = arith.constant 0 : i32
    %c0_i32_0 = arith.constant 0 : i32
    %c0_i32_1 = arith.constant 0 : i32
    return %c0_i32, %c0_i32_0 : i32, i32
  }
  func.func @transform_2(%arg0: i32) -> (i32, i32) {
    %c0_i32 = arith.constant 0 : i32
    %c0_i32_0 = arith.constant 0 : i32
    %c0_i32_1 = arith.constant 0 : i32
    return %c0_i32, %c0_i32_0 : i32, i32
  }
  func.func @transform_3(%arg0: i32) -> (i32, i32) {
    %c0_i32 = arith.constant 0 : i32
    %c0_i32_0 = arith.constant 0 : i32
    %c0_i32_1 = arith.constant 0 : i32
    return %c0_i32, %c0_i32_0 : i32, i32
  }
  func.func @transform_4(%arg0: i32) -> (i32, i32) {
    %c0_i32 = arith.constant 0 : i32
    %c0_i32_0 = arith.constant 0 : i32
    %c0_i32_1 = arith.constant 0 : i32
    return %c0_i32, %c0_i32_0 : i32, i32
  }
  func.func @transform_5(%arg0: i32) -> (i32, i32) {
    %c0_i32 = arith.constant 0 : i32
    %c0_i32_0 = arith.constant 0 : i32
    %c0_i32_1 = arith.constant 0 : i32
    return %c0_i32, %c0_i32_0 : i32, i32
  }
  func.func @transform_6(%arg0: i32) -> (i32, i32) {
    %c0_i32 = arith.constant 0 : i32
    %c0_i32_0 = arith.constant 0 : i32
    %c0_i32_1 = arith.constant 0 : i32
    return %c0_i32, %c0_i32_0 : i32, i32
  }
  func.func @transform_7(%arg0: i32) -> (i32, i32) {
    %c0_i32 = arith.constant 0 : i32
    %c0_i32_0 = arith.constant 0 : i32
    return %arg0, %c0_i32 : i32, i32
  }
}

</mosaic_0001>

<bundles_post_ra>
// kernel: lstm_pose_classifier.1
= control target key start
LH: loop header
LB: loop body
LE: loop exit
PB: predicated region body
PF: predicated region fallthrough
CT: control target
= control target key end

     0   :  { %12 = vsyncpa [#allocation4], 0  ;;  %s6041_s0 = inlined_call_operand.vmem [shape: bf16[64,34], index: 0, kind: input, shape index: {}]   ;;  %s6042_s1 = inlined_call_operand.vmem [shape: bf16[34,512], index: 1, kind: input, shape index: {}]   ;;  %s6043_s2 = inlined_call_operand.hbm [shape: bf16[128,512], index: 2, kind: input, shape index: {}]   ;;  %s6044_s3 = inlined_call_operand.hbm [shape: bf16[128,512], index: 3, kind: input, shape index: {}]   ;;  %s6045_s4 = inlined_call_operand.hbm [shape: bf16[128,512], index: 4, kind: input, shape index: {}]   ;;  %s6046_s5 = inlined_call_operand.vmem [shape: f32[1,512], index: 5, kind: input, shape index: {}]   ;;  %s6047_s6 = inlined_call_operand.vmem [shape: f32[1,512], index: 6, kind: input, shape index: {}]   ;;  %s6048_s7 = inlined_call_operand.vmem [shape: f32[8,128], index: 7, kind: output, shape index: {}]  }
   0x1   :  { %13 = vsyncpa [#allocation6], 0  ;;  %s4338_s24 = smov [#allocation5]   ;;  %s4339_s26 = smov [#allocation3]  }
   0x2   :  { %s35_s25 = sshll.u32 %s4338_s24, 4  ;;  %s23_s27 = sshll.u32 %s4339_s26, 4  ;;  %s36_s25 = int_to_ptr.vmem [resolvable:$true] %s35_s25  ;;  %s4384_s27 = int_to_ptr.vmem [resolvable:$true] %s23_s27 }
   0x3   :  { %s4268_s30 = scalar_lea.hbm %s6044_s3, 4096 }
   0x4   :  { %p4269_p0 = scmp.ne.s32.totalorder %s6044_s3, %s4268_s30  ;;  %p4272_p1 = scmp.lt.u32.totalorder %s4268_s30, %s6044_s3 }
   0x6   :  { %p4274_p2 = pnand %p4272_p1, %p4269_p0 }
   0x8   :  { %4277 = shalt.err (!%p4274_p2)
}
   0x9   :  { %s4278_s12 = scalar_lea.vmem %s36_s25, 4096  ;;  %p4283_p4 = scmp.lt.s32.totalorder %s36_s25, %s36_s25 }
   0xa   :  { %p4279_p3 = scmp.ne.s32.totalorder %s36_s25, %s4278_s12  ;;  %p4284_p5 = scmp.lt.s32.totalorder %s4278_s12, %s4278_s12 }
   0xc   :  { %p4285_p6 = por %p4284_p5, %p4283_p4 }
   0xe   :  { %p4286_p7 = pnand %p4285_p6, %p4279_p3 }
  0x10   :  { %4289 = shalt.err (!%p4286_p7)
}
  0x11   :  { %s4340_s13 = smov 256   ;;  %s4341_s14 = smov 16  }
  0x12   :  { %41 = dma.hbm_to_vmem [thread:$0]  %s6044_s3, 4096, %s36_s25, [#allocation6], %s4340_s13, %s4340_s13, %s4341_s14  }
  0x13   :  { %s4290_s19 = scalar_lea.hbm %s6043_s2, 4096 }
  0x14   :  { %p4291_p8 = scmp.ne.s32.totalorder %s6043_s2, %s4290_s19  ;;  %p4294_p9 = scmp.lt.u32.totalorder %s4290_s19, %s6043_s2 }
  0x16   :  { %p4296_p10 = pnand %p4294_p9, %p4291_p8 }
  0x18   :  { %4299 = shalt.err (!%p4296_p10)
}
  0x19   :  { %s4300_s24 = scalar_lea.vmem %s4384_s27, 4096  ;;  %p4305_p12 = scmp.lt.s32.totalorder %s4384_s27, %s4384_s27 }
  0x1a   :  { %p4301_p11 = scmp.ne.s32.totalorder %s4384_s27, %s4300_s24  ;;  %p4306_p13 = scmp.lt.s32.totalorder %s4300_s24, %s4300_s24 }
  0x1c   :  { %p4307_p0 = por %p4306_p13, %p4305_p12 }
  0x1e   :  { %p4308_p1 = pnand %p4307_p0, %p4301_p11 }
  0x20   :  { %4311 = shalt.err (!%p4308_p1)
}
  0x21   :  { %29 = dma.hbm_to_vmem [thread:$0]  %s6043_s2, 4096, %s4384_s27, [#allocation4], %s4340_s13, %s4340_s13, %s4341_s14  }
  0x22   :  { %s4342_s26 = smov [#allocation7]   ;;  %s4312_s8 = scalar_lea.hbm %s6045_s4, 4096 }
  0x23   :  { %s47_s28 = sshll.u32 %s4342_s26, 4  ;;  %p4313_p2 = scmp.ne.s32.totalorder %s6045_s4, %s4312_s8  ;;  %s48_s28 = int_to_ptr.vmem [resolvable:$true] %s47_s28 }
  0x24   :  { %p4316_p3 = scmp.lt.u32.totalorder %s4312_s8, %s6045_s4 }
  0x26   :  { %p4318_p4 = pnand %p4316_p3, %p4313_p2 }
  0x28   :  { %4321 = shalt.err (!%p4318_p4)
}
  0x29   :  { %s4322_s15 = scalar_lea.vmem %s48_s28, 4096  ;;  %p4327_p6 = scmp.lt.s32.totalorder %s48_s28, %s48_s28 }
  0x2a   :  { %p4323_p5 = scmp.ne.s32.totalorder %s48_s28, %s4322_s15  ;;  %p4328_p7 = scmp.lt.s32.totalorder %s4322_s15, %s4322_s15 }
  0x2c   :  { %p4329_p8 = por %p4328_p7, %p4327_p6 }
  0x2e   :  { %p4330_p9 = pnand %p4329_p8, %p4323_p5 }
  0x30   :  { %4333 = shalt.err (!%p4330_p9)
}
  0x31   :  { %53 = dma.hbm_to_vmem [thread:$0]  %s6045_s4, 4096, %s48_s28, [#allocation6], %s4340_s13, %s4340_s13, %s4341_s14  }
  0x32   :  { %4334 = dma.done.wait [#allocation4], 4096  }
  0x33   :  { %4335 = vsyncadd [#allocation4], 4294963200 }
  0x34   :  { %4336 = dma.done.wait [#allocation6], 8192  }
  0x35   :  { %4337 = vsyncadd [#allocation6], 4294959104  ;;  %v6049_v0 = vmov 0   ;;  %v3656_v1 = vld [vmem:[%s6042_s1 + $0x4] ss:$16 sps:$4 sm:$0xff]   ;;  %vm191_vm0 = vcmask 1040384  }
  0x36   :  { %236 = vmatprep.mubr.bf16.mxu0 %v6049_v0  ;;  %309 = vmatprep.mubr.bf16.mxu1 %v6049_v0  ;;  %v3658_v2 = vld [vmem:[%s6042_s1 + $0xc] ss:$16 sps:$4 sm:$0xff]   ;;  %v3660_v3 = vld [vmem:[%s6042_s1] ss:$16 sps:$4 sm:$0xff]   ;;  %v3661_v4 = vld [vmem:[%s6042_s1 + $0x8] ss:$16 sps:$4 sm:$0xff]  }
  0x37   :  { %204 = vmatprep.subr.bf16.mxu0 %v3656_v1  ;;  %277 = vmatprep.subr.bf16.mxu1 %v3658_v2  ;;  %v3662_v5 = vld [vmem:[%s6042_s1 + $0x24] ss:$16 sps:$4 sm:$0xff]   ;;  %v3664_v6 = vld [vmem:[%s6042_s1 + $0x2c] ss:$16 sps:$4 sm:$0xff]   ;;  %v3666_v7 = vld [vmem:[%s6042_s1 + $0x20] ss:$16 sps:$4 sm:$0xff]  }
  0x38   :  { %205 = vmatpush1.bf16.msra.mxu0 %v3660_v3  ;;  %278 = vmatpush1.bf16.msra.mxu1 %v3661_v4  ;;  %v3667_v8 = vld [vmem:[%s6042_s1 + $0x28] ss:$16 sps:$4 sm:$0xff]   ;;  %v84_v9 = vld [vmem:[%s6042_s1 + $0x40] sm:$0x11]  ;;  %v4474_v18 = vld [vmem:[#allocation3 + $0xc] ss:$16 sps:$4 sm:$0xff]  }
  0x39   :  { %206 = vmatprep.subr.bf16.mxu0 %v3662_v5  ;;  %v85_v10 = vld [vmem:[%s6042_s1 + $0x48] sm:$0x11]  ;;  %279 = vmatprep.subr.bf16.mxu1 %v3664_v6  ;;  %v3409_v11 = vcombine.high %v84_v9, %v84_v9  ;;  %v3408_v13 = vcombine.low %v84_v9, %v84_v9  ;;  %v4468_v15 = vld [vmem:[#allocation3 + $0x4] ss:$16 sps:$4 sm:$0xff]   ;;  %vm178_vm1 = vcmask 277504   ;;  %v3711_v46 = vld [vmem:[%s6041_s0 + $0x18] sm:$0xff]  }
  0x3a   :  { %v3411_v12 = vcombine.high %v85_v10, %v85_v10  ;;  %v3410_v14 = vcombine.low %v85_v10, %v85_v10  ;;  %v3672_v19 = vld [vmem:[%s6041_s0] sm:$0xff]   ;;  %v4481_v21 = vld [vmem:[#allocation3 + $0x8] ss:$16 sps:$4 sm:$0xff]   ;;  %v4487_v23 = vld [vmem:[#allocation3 + $0x2c] ss:$16 sps:$4 sm:$0xff]  }
  0x3b   :  { %v193_v16 = vsel %vm191_vm0, %v3408_v13, 0  ;;  %v4479_v20 = vld [vmem:[#allocation3] ss:$16 sps:$4 sm:$0xff]   ;;  %v4483_v22 = vld [vmem:[#allocation3 + $0x24] ss:$16 sps:$4 sm:$0xff]   ;;  %v3685_v28 = vld [vmem:[%s6041_s0 + $0x8] sm:$0xff]  }
  0x3c   :  { %207 = vmatpush1.bf16.msra.mxu0 %v3666_v7  ;;  %280 = vmatpush1.bf16.msra.mxu1 %v3667_v8  ;;  %v199_v17 = vsel %vm191_vm0, %v3410_v14, 0  ;;  %v4491_v24 = vld [vmem:[#allocation3 + $0x20] ss:$16 sps:$4 sm:$0xff]   ;;  %v4493_v25 = vld [vmem:[#allocation3 + $0x28] ss:$16 sps:$4 sm:$0xff]  }
  0x3d   :  { %3412 = vmatprep.subr.msk.bf16.mxu0 %vm191_vm0, %v3409_v11  ;;  %3417 = vmatprep.subr.msk.bf16.mxu1 %vm191_vm0, %v3411_v12  ;;  %v4497_v26 = vld [vmem:[#allocation3 + $0x44] ss:$16 sps:$4 sm:$0xff]   ;;  %v4501_v27 = vld [vmem:[#allocation3 + $0x4c] ss:$16 sps:$4 sm:$0xff]   ;;  %v4508_v29 = vld [vmem:[#allocation3 + $0x40] ss:$16 sps:$4 sm:$0xff]  }
  0x3e   :  { %v4512_v30 = vld [vmem:[#allocation3 + $0x48] ss:$16 sps:$4 sm:$0xff]   ;;  %v4516_v31 = vld [vmem:[#allocation3 + $0x64] ss:$16 sps:$4 sm:$0xff]   ;;  %v4518_v32 = vld [vmem:[#allocation3 + $0x6c] ss:$16 sps:$4 sm:$0xff]  }
  0x3f   :  { %v4524_v33 = vld [vmem:[#allocation3 + $0x60] ss:$16 sps:$4 sm:$0xff]   ;;  %v4526_v34 = vld [vmem:[#allocation3 + $0x68] ss:$16 sps:$4 sm:$0xff]   ;;  %v4528_v35 = vld [vmem:[#allocation3 + $0x84] ss:$16 sps:$4 sm:$0xff]  }
  0x40   :  { %209 = vmatpush1.bf16.msra.mxu0 %v193_v16  ;;  %282 = vmatpush1.bf16.msra.mxu1 %v199_v17  ;;  %v4532_v36 = vld [vmem:[#allocation3 + $0x8c] ss:$16 sps:$4 sm:$0xff]   ;;  %v3698_v37 = vld [vmem:[%s6041_s0 + $0x10] sm:$0xff]   ;;  %v4543_v39 = vld [vmem:[#allocation3 + $0x88] ss:$16 sps:$4 sm:$0xff]  }
  0x41   :  { %600 = vmatprep.subr.bf16.mxu0 %v4468_v15  ;;  %641 = vmatprep.subr.bf16.mxu1 %v4474_v18  ;;  %v4539_v38 = vld [vmem:[#allocation3 + $0x80] ss:$16 sps:$4 sm:$0xff]   ;;  %v4545_v40 = vld [vmem:[#allocation3 + $0xa4] ss:$16 sps:$4 sm:$0xff]   ;;  %v4549_v41 = vld [vmem:[#allocation3 + $0xac] ss:$16 sps:$4 sm:$0xff]  }
  0x42   :  { %v4551_v42 = vld [vmem:[#allocation3 + $0xa0] ss:$16 sps:$4 sm:$0xff]   ;;  %v4553_v43 = vld [vmem:[#allocation3 + $0xa8] ss:$16 sps:$4 sm:$0xff]   ;;  %v4557_v44 = vld [vmem:[#allocation3 + $0xc4] ss:$16 sps:$4 sm:$0xff]  }
  0x43   :  { %3413 = vmatmul.mubr.msk.bf16.vlgmr.msra.gmra.mrb[0].mxu0 %vm178_vm1, %v3672_v19  ;;  %3418 = vmatmul.mubr.msk.bf16.vlgmr.msra.gmra.mrb[0].mxu1 %vm178_vm1, %v3672_v19  ;;  %v4559_v45 = vld [vmem:[#allocation3 + $0xcc] ss:$16 sps:$4 sm:$0xff]   ;;  %v4570_v47 = vld [vmem:[#allocation3 + $0xc0] ss:$16 sps:$4 sm:$0xff]   ;;  %v4572_v48 = vld [vmem:[#allocation3 + $0xc8] ss:$16 sps:$4 sm:$0xff]  }
  0x44   :  { %601 = vmatpush1.bf16.msra.mxu0 %v4479_v20  ;;  %642 = vmatpush1.bf16.msra.mxu1 %v4481_v21  ;;  %v4574_v49 = vld [vmem:[#allocation3 + $0xe4] ss:$16 sps:$4 sm:$0xff]   ;;  %v4576_v50 = vld [vmem:[#allocation3 + $0xec] ss:$16 sps:$4 sm:$0xff]   ;;  %v4582_v51 = vld [vmem:[#allocation3 + $0xe0] ss:$16 sps:$4 sm:$0xff]  }
  0x45   :  { %602 = vmatprep.subr.bf16.mxu0 %v4483_v22  ;;  %643 = vmatprep.subr.bf16.mxu1 %v4487_v23  ;;  %v4584_v52 = vld [vmem:[#allocation3 + $0xe8] ss:$16 sps:$4 sm:$0xff]   ;;  %v4600_v53 = vld [vmem:[#allocation5 + $0x4] ss:$16 sps:$4 sm:$0xff]   ;;  %v4602_v54 = vld [vmem:[#allocation5 + $0xc] ss:$16 sps:$4 sm:$0xff]  }
  0x46   :  { %246 = vmatprep.mubr.bf16.mxu0 %v6049_v0  ;;  %319 = vmatprep.mubr.bf16.mxu1 %v6049_v0  ;;  %v4604_v55 = vld [vmem:[#allocation5] ss:$16 sps:$4 sm:$0xff]   ;;  %v4606_v56 = vld [vmem:[#allocation5 + $0x8] ss:$16 sps:$4 sm:$0xff]   ;;  %v4612_v57 = vld [vmem:[#allocation5 + $0x24] ss:$16 sps:$4 sm:$0xff]  }
  0x47   :  { %v4614_v58 = vld [vmem:[#allocation5 + $0x2c] ss:$16 sps:$4 sm:$0xff]   ;;  %v4616_v59 = vld [vmem:[#allocation5 + $0x20] ss:$16 sps:$4 sm:$0xff]   ;;  %v4618_v60 = vld [vmem:[#allocation5 + $0x28] ss:$16 sps:$4 sm:$0xff]  }
  0x48   :  { %603 = vmatpush1.bf16.msra.mxu0 %v4491_v24  ;;  %644 = vmatpush1.bf16.msra.mxu1 %v4493_v25  ;;  %6377 = vst [vmem:[#allocation10_spill] sm:$0xff] %v4616_v59  ;;  %6378 = vst [vmem:[#allocation11_spill] sm:$0xff] %v4618_v60  ;;  %v4624_v61 = vld [vmem:[#allocation5 + $0x44] ss:$16 sps:$4 sm:$0xff]   ;;  %v4626_v62 = vld [vmem:[#allocation5 + $0x4c] ss:$16 sps:$4 sm:$0xff]  }
  0x49   :  { %604 = vmatprep.subr.bf16.mxu0 %v4497_v26  ;;  %645 = vmatprep.subr.bf16.mxu1 %v4501_v27  ;;  %6379 = vst [vmem:[#allocation12_spill] sm:$0xff] %v4624_v61  ;;  %6380 = vst [vmem:[#allocation13_spill] sm:$0xff] %v4626_v62  ;;  %v4628_v63 = vld [vmem:[#allocation5 + $0x40] ss:$16 sps:$4 sm:$0xff]   ;;  %v4630_v1 = vld [vmem:[#allocation5 + $0x48] ss:$16 sps:$4 sm:$0xff]  }
  0x4a   :  { %6381 = vst [vmem:[#allocation14_spill] sm:$0xff] %v4628_v63  ;;  %6382 = vst [vmem:[#allocation15_spill] sm:$0xff] %v4630_v1  ;;  %v4636_v2 = vld [vmem:[#allocation5 + $0x64] ss:$16 sps:$4 sm:$0xff]   ;;  %v4638_v3 = vld [vmem:[#allocation5 + $0x6c] ss:$16 sps:$4 sm:$0xff]  }
  0x4b   :  { %3414 = vmatmul.mubr.msk.bf16.gmra.mrb[4].mxu0 %vm178_vm1, %v3685_v28  ;;  %3419 = vmatmul.mubr.msk.bf16.gmra.mrb[4].mxu1 %vm178_vm1, %v3685_v28  ;;  %6383 = vst [vmem:[#allocation16_spill] sm:$0xff] %v4636_v2  ;;  %6384 = vst [vmem:[#allocation17_spill] sm:$0xff] %v4638_v3  ;;  %v4640_v4 = vld [vmem:[#allocation5 + $0x60] ss:$16 sps:$4 sm:$0xff]   ;;  %v4642_v5 = vld [vmem:[#allocation5 + $0x68] ss:$16 sps:$4 sm:$0xff]  }
  0x4c   :  { %605 = vmatpush1.bf16.msra.mxu0 %v4508_v29  ;;  %646 = vmatpush1.bf16.msra.mxu1 %v4512_v30  ;;  %6385 = vst [vmem:[#allocation18_spill] sm:$0xff] %v4640_v4  ;;  %6386 = vst [vmem:[#allocation19_spill] sm:$0xff] %v4642_v5  ;;  %v4648_v6 = vld [vmem:[#allocation5 + $0x84] ss:$16 sps:$4 sm:$0xff]   ;;  %v4650_v7 = vld [vmem:[#allocation5 + $0x8c] ss:$16 sps:$4 sm:$0xff]  }
  0x4d   :  { %606 = vmatprep.subr.bf16.mxu0 %v4516_v31  ;;  %647 = vmatprep.subr.bf16.mxu1 %v4518_v32  ;;  %6387 = vst [vmem:[#allocation20_spill] sm:$0xff] %v4648_v6  ;;  %6388 = vst [vmem:[#allocation21_spill] sm:$0xff] %v4650_v7  ;;  %v4652_v8 = vld [vmem:[#allocation5 + $0x80] ss:$16 sps:$4 sm:$0xff]   ;;  %v4654_v9 = vld [vmem:[#allocation5 + $0x88] ss:$16 sps:$4 sm:$0xff]  }
  0x4e   :  { %256 = vmatprep.mubr.bf16.mxu0 %v6049_v0  ;;  %329 = vmatprep.mubr.bf16.mxu1 %v6049_v0  ;;  %6389 = vst [vmem:[#allocation22_spill] sm:$0xff] %v4652_v8  ;;  %6390 = vst [vmem:[#allocation23_spill] sm:$0xff] %v4654_v9  ;;  %v4660_v10 = vld [vmem:[#allocation5 + $0xa4] ss:$16 sps:$4 sm:$0xff]   ;;  %v4662_v11 = vld [vmem:[#allocation5 + $0xac] ss:$16 sps:$4 sm:$0xff]  }
  0x4f   :  { %6391 = vst [vmem:[#allocation24_spill] sm:$0xff] %v4660_v10  ;;  %6392 = vst [vmem:[#allocation25_spill] sm:$0xff] %v4662_v11  ;;  %v4664_v12 = vld [vmem:[#allocation5 + $0xa0] ss:$16 sps:$4 sm:$0xff]   ;;  %v4666_v13 = vld [vmem:[#allocation5 + $0xa8] ss:$16 sps:$4 sm:$0xff]  }
  0x50   :  { %607 = vmatpush1.bf16.msra.mxu0 %v4524_v33  ;;  %648 = vmatpush1.bf16.msra.mxu1 %v4526_v34  ;;  %6393 = vst [vmem:[#allocation26_spill] sm:$0xff] %v4664_v12  ;;  %6394 = vst [vmem:[#allocation27_spill] sm:$0xff] %v4666_v13  ;;  %v4668_v14 = vld [vmem:[#allocation5 + $0xc4] ss:$16 sps:$4 sm:$0xff]   ;;  %v4670_v16 = vld [vmem:[#allocation5 + $0xcc] ss:$16 sps:$4 sm:$0xff]  }
  0x51   :  { %608 = vmatprep.subr.bf16.mxu0 %v4528_v35  ;;  %649 = vmatprep.subr.bf16.mxu1 %v4532_v36  ;;  %6395 = vst [vmem:[#allocation28_spill] sm:$0xff] %v4668_v14  ;;  %6396 = vst [vmem:[#allocation29_spill] sm:$0xff] %v4670_v16  ;;  %v4676_v17 = vld [vmem:[#allocation5 + $0xc0] ss:$16 sps:$4 sm:$0xff]   ;;  %v4678_v19 = vld [vmem:[#allocation5 + $0xc8] ss:$16 sps:$4 sm:$0xff]  }
  0x52   :  { %6397 = vst [vmem:[#allocation30_spill] sm:$0xff] %v4676_v17  ;;  %6398 = vst [vmem:[#allocation31_spill] sm:$0xff] %v4678_v19  ;;  %v4682_v28 = vld [vmem:[#allocation5 + $0xe4] ss:$16 sps:$4 sm:$0xff]  }
  0x53   :  { %3415 = vmatmul.mubr.msk.bf16.gmra.mrb[8].mxu0 %vm178_vm1, %v3698_v37  ;;  %3420 = vmatmul.mubr.msk.bf16.gmra.mrb[8].mxu1 %vm178_vm1, %v3698_v37  ;;  %6399 = vst [vmem:[#allocation32_spill] sm:$0xff] %v4682_v28  ;;  %v4684_v37 = vld [vmem:[#allocation5 + $0xec] ss:$16 sps:$4 sm:$0xff]  }
  0x54   :  { %609 = vmatpush1.bf16.msra.mxu0 %v4539_v38  ;;  %650 = vmatpush1.bf16.msra.mxu1 %v4543_v39  ;;  %6400 = vst [vmem:[#allocation33_spill] sm:$0xff] %v4684_v37 }
  0x55   :  { %610 = vmatprep.subr.bf16.mxu0 %v4545_v40  ;;  %651 = vmatprep.subr.bf16.mxu1 %v4549_v41 }
  0x56   :  { %266 = vmatprep.mubr.bf16.mxu0 %v6049_v0  ;;  %339 = vmatprep.mubr.bf16.mxu1 %v6049_v0 }
  0x58   :  { %611 = vmatpush1.bf16.msra.mxu0 %v4551_v42  ;;  %652 = vmatpush1.bf16.msra.mxu1 %v4553_v43 }
  0x59   :  { %612 = vmatprep.subr.bf16.mxu0 %v4557_v44  ;;  %653 = vmatprep.subr.bf16.mxu1 %v4559_v45 }
  0x5b   :  { %3416 = vmatmul.mubr.msk.bf16.gmra.mrb[12].mxu0 %vm178_vm1, %v3711_v46  ;;  %3421 = vmatmul.mubr.msk.bf16.gmra.mrb[12].mxu1 %vm178_vm1, %v3711_v46  ;;  %v4688_v46 = vld [vmem:[#allocation5 + $0xe0] ss:$16 sps:$4 sm:$0xff]  }
  0x5c   :  { %613 = vmatpush1.bf16.msra.mxu0 %v4570_v47  ;;  %654 = vmatpush1.bf16.msra.mxu1 %v4572_v48  ;;  %6401 = vst [vmem:[#allocation34_spill] sm:$0xff] %v4688_v46 }
  0x5d   :  { %614 = vmatprep.subr.bf16.mxu0 %v4574_v49  ;;  %655 = vmatprep.subr.bf16.mxu1 %v4576_v50 }
  0x5e   :  { %632 = vmatprep.mubr.bf16.mxu0 %v6049_v0  ;;  %673 = vmatprep.mubr.bf16.mxu1 %v6049_v0 }
  0x60   :  { %615 = vmatpush1.bf16.msra.mxu0 %v4582_v51  ;;  %656 = vmatpush1.bf16.msra.mxu1 %v4584_v52 }
  0x61   :  { %903 = vmatprep.subr.bf16.mxu0 %v4600_v53  ;;  %944 = vmatprep.subr.bf16.mxu1 %v4602_v54 }
  0x63   :  { %633 = vmatmul.mubr.bf16.vlgmr.msra.gmra.mrb[16].mxu0 %v6049_v0  ;;  %674 = vmatmul.mubr.bf16.vlgmr.msra.gmra.mrb[16].mxu1 %v6049_v0 }
  0x64   :  { %935 = vmatprep.mubr.bf16.mxu0 %v6049_v0  ;;  %976 = vmatprep.mubr.bf16.mxu1 %v6049_v0  ;;  %v4690_v0 = vld [vmem:[#allocation5 + $0xe8] ss:$16 sps:$4 sm:$0xff]  }
  0x65   :  { %904 = vmatpush1.bf16.msra.mxu0 %v4604_v55  ;;  %945 = vmatpush1.bf16.msra.mxu1 %v4606_v56  ;;  %6402 = vst [vmem:[#allocation35_spill] sm:$0xff] %v4690_v0 }
  0x66   :  { %905 = vmatprep.subr.bf16.mxu0 %v4612_v57  ;;  %946 = vmatprep.subr.bf16.mxu1 %v4614_v58 }
  0x69   :  { %906 = vmatpush1.bf16.msra.mxu0 %v4616_v59  ;;  %947 = vmatpush1.bf16.msra.mxu1 %v4618_v60 }
  0x6a   :  { %907 = vmatprep.subr.bf16.mxu0 %v4624_v61  ;;  %948 = vmatprep.subr.bf16.mxu1 %v4626_v62 }
  0x6d   :  { %908 = vmatpush1.bf16.msra.mxu0 %v4628_v63  ;;  %949 = vmatpush1.bf16.msra.mxu1 %v4630_v1 }
  0x6e   :  { %909 = vmatprep.subr.bf16.mxu0 %v4636_v2  ;;  %950 = vmatprep.subr.bf16.mxu1 %v4638_v3 }
  0x71   :  { %910 = vmatpush1.bf16.msra.mxu0 %v4640_v4  ;;  %951 = vmatpush1.bf16.msra.mxu1 %v4642_v5 }
  0x72   :  { %911 = vmatprep.subr.bf16.mxu0 %v4648_v6  ;;  %952 = vmatprep.subr.bf16.mxu1 %v4650_v7 }
  0x75   :  { %912 = vmatpush1.bf16.msra.mxu0 %v4652_v8  ;;  %953 = vmatpush1.bf16.msra.mxu1 %v4654_v9 }
  0x76   :  { %913 = vmatprep.subr.bf16.mxu0 %v4660_v10  ;;  %954 = vmatprep.subr.bf16.mxu1 %v4662_v11 }
  0x79   :  { %914 = vmatpush1.bf16.msra.mxu0 %v4664_v12  ;;  %955 = vmatpush1.bf16.msra.mxu1 %v4666_v13  ;;  %v86_v12 = vld [vmem:[%s6046_s5] sm:$0xf] }
  0x7a   :  { %915 = vmatprep.subr.bf16.mxu0 %v4668_v14  ;;  %956 = vmatprep.subr.bf16.mxu1 %v4670_v16  ;;  %v88_v16 = vlaneseq }
  0x7c   :  { %v4696_v14 = vshrl.u32 %v88_v16, 7 }
  0x7d   :  { %916 = vmatpush1.bf16.msra.mxu0 %v4676_v17  ;;  %957 = vmatpush1.bf16.msra.mxu1 %v4678_v19 }
  0x7e   :  { %917 = vmatprep.subr.bf16.mxu0 %v4682_v28  ;;  %958 = vmatprep.subr.bf16.mxu1 %v4684_v37  ;;  %v6083_v13 = vsub.s32 2, %v4696_v14  ;;  %v6092_v17 = vsub.s32 3, %v4696_v14  ;;  %v6093_v19 = vsub.s32 0, %v4696_v14  ;;  %v6100_v28 = vsub.s32 1, %v4696_v14 }
  0x80   :  { %v4715_v37 = vrot.slane %v86_v12, %v6092_v17  ;;  %v91_v11 = vrot.slane %v86_v12, %v6093_v19  ;;  %v95_v8 = vrot.slane %v86_v12, %v6100_v28 }
  0x81   :  { %918 = vmatpush1.bf16.msra.mxu0 %v4688_v46  ;;  %959 = vmatpush1.bf16.msra.mxu1 %v4690_v0  ;;  %v4707_v46 = vrot.slane %v86_v12, %v6083_v13 }
 0x116   :  { %v4709_v0 = vpop.f32.mrb[0].mxu0  ;;  %v4711_v16 = vpop.f32.mrb[0].mxu1 }
 0x117   :  { %v240_v10 = vpop.f32.mrb[1].mxu0  ;;  %v313_v9 = vpop.f32.mrb[1].mxu1 }
 0x118   :  { %v242_v7 = vpop.f32.mrb[2].mxu0  ;;  %v315_v6 = vpop.f32.mrb[2].mxu1 }
 0x119   :  { %v4721_v13 = vadd.f32 %v242_v7, %v91_v11  ;;  %v244_v5 = vpop.f32.mrb[3].mxu0  ;;  %v4724_v4 = vadd.f32 %v315_v6, %v4707_v46  ;;  %v317_v3 = vpop.f32.mrb[3].mxu1 }
 0x11a   :  { %v4726_v2 = vadd.f32 %v244_v5, %v95_v8  ;;  %v4729_v17 = vadd.f32 %v317_v3, %v4715_v37 }
 0x11b   :  { %6403 = vst [vmem:[#allocation36_spill] sm:$0xff] %v4721_v13  ;;  %6404 = vst [vmem:[#allocation37_spill] sm:$0xff] %v4724_v4 }
 0x11c   :  { %6405 = vst [vmem:[#allocation38_spill] sm:$0xff] %v4726_v2  ;;  %6406 = vst [vmem:[#allocation39_spill] sm:$0xff] %v4729_v17 }
 0x11e   :  { %v248_v19 = vpop.f32.mrb[4].mxu0  ;;  %v321_v1 = vpop.f32.mrb[4].mxu1 }
 0x11f   :  { %v4731_v63 = vadd.f32 %v248_v19, %v91_v11  ;;  %v250_v62 = vpop.f32.mrb[5].mxu0  ;;  %v4734_v12 = vadd.f32 %v321_v1, %v4707_v46  ;;  %v323_v7 = vpop.f32.mrb[5].mxu1 }
 0x120   :  { %v4736_v28 = vadd.f32 %v250_v62, %v95_v8  ;;  %v252_v13 = vpop.f32.mrb[6].mxu0  ;;  %v4739_v6 = vadd.f32 %v323_v7, %v4715_v37  ;;  %v325_v5 = vpop.f32.mrb[6].mxu1 }
 0x121   :  { %6407 = vst [vmem:[#allocation40_spill] sm:$0xff] %v4731_v63  ;;  %6408 = vst [vmem:[#allocation41_spill] sm:$0xff] %v4734_v12  ;;  %v4741_v2 = vadd.f32 %v252_v13, %v91_v11  ;;  %v254_v3 = vpop.f32.mrb[7].mxu0  ;;  %v4744_v17 = vadd.f32 %v325_v5, %v4707_v46  ;;  %v327_v19 = vpop.f32.mrb[7].mxu1 }
 0x122   :  { %6409 = vst [vmem:[#allocation42_spill] sm:$0xff] %v4736_v28  ;;  %6410 = vst [vmem:[#allocation43_spill] sm:$0xff] %v4739_v6  ;;  %v4746_v63 = vadd.f32 %v254_v3, %v95_v8  ;;  %v4749_v1 = vadd.f32 %v327_v19, %v4715_v37 }
 0x123   :  { %6411 = vst [vmem:[#allocation44_spill] sm:$0xff] %v4741_v2  ;;  %6412 = vst [vmem:[#allocation45_spill] sm:$0xff] %v4744_v17 }
 0x124   :  { %6413 = vst [vmem:[#allocation46_spill] sm:$0xff] %v4746_v63  ;;  %6414 = vst [vmem:[#allocation47_spill] sm:$0xff] %v4749_v1 }
 0x126   :  { %v258_v12 = vpop.f32.mrb[8].mxu0  ;;  %v331_v62 = vpop.f32.mrb[8].mxu1 }
 0x127   :  { %v4751_v28 = vadd.f32 %v258_v12, %v91_v11  ;;  %v260_v4 = vpop.f32.mrb[9].mxu0  ;;  %v4754_v7 = vadd.f32 %v331_v62, %v4707_v46  ;;  %v333_v13 = vpop.f32.mrb[9].mxu1 }
 0x128   :  { %v4756_v2 = vadd.f32 %v260_v4, %v95_v8  ;;  %v262_v6 = vpop.f32.mrb[10].mxu0  ;;  %v4759_v5 = vadd.f32 %v333_v13, %v4715_v37  ;;  %v335_v3 = vpop.f32.mrb[10].mxu1 }
 0x129   :  { %6415 = vst [vmem:[#allocation48_spill] sm:$0xff] %v4751_v28  ;;  %6416 = vst [vmem:[#allocation49_spill] sm:$0xff] %v4754_v7  ;;  %v4761_v63 = vadd.f32 %v262_v6, %v91_v11  ;;  %v264_v19 = vpop.f32.mrb[11].mxu0  ;;  %v4764_v1 = vadd.f32 %v335_v3, %v4707_v46  ;;  %v337_v12 = vpop.f32.mrb[11].mxu1 }
 0x12a   :  { %6417 = vst [vmem:[#allocation50_spill] sm:$0xff] %v4756_v2  ;;  %6418 = vst [vmem:[#allocation51_spill] sm:$0xff] %v4759_v5  ;;  %v4766_v28 = vadd.f32 %v264_v19, %v95_v8  ;;  %v4769_v62 = vadd.f32 %v337_v12, %v4715_v37 }
 0x12b   :  { %6419 = vst [vmem:[#allocation52_spill] sm:$0xff] %v4761_v63  ;;  %6420 = vst [vmem:[#allocation53_spill] sm:$0xff] %v4764_v1 }
 0x12c   :  { %6421 = vst [vmem:[#allocation54_spill] sm:$0xff] %v4766_v28  ;;  %6422 = vst [vmem:[#allocation55_spill] sm:$0xff] %v4769_v62 }
 0x12e   :  { %v268_v7 = vpop.f32.mrb[12].mxu0  ;;  %v341_v4 = vpop.f32.mrb[12].mxu1 }
 0x12f   :  { %v4771_v2 = vadd.f32 %v268_v7, %v91_v11  ;;  %v270_v17 = vpop.f32.mrb[13].mxu0  ;;  %v4774_v13 = vadd.f32 %v341_v4, %v4707_v46  ;;  %v343_v6 = vpop.f32.mrb[13].mxu1 }
 0x130   :  { %v4776_v63 = vadd.f32 %v270_v17, %v95_v8  ;;  %v272_v5 = vpop.f32.mrb[14].mxu0  ;;  %v4779_v3 = vadd.f32 %v343_v6, %v4715_v37  ;;  %v345_v19 = vpop.f32.mrb[14].mxu1  ;;  %v239_v17 = vadd.f32 %v4709_v0, %v91_v11  ;;  %v241_v6 = vadd.f32 %v240_v10, %v95_v8 }
 0x131   :  { %6423 = vst [vmem:[#allocation56_spill] sm:$0xff] %v4771_v2  ;;  %6424 = vst [vmem:[#allocation57_spill] sm:$0xff] %v4774_v13  ;;  %v4781_v28 = vadd.f32 %v272_v5, %v91_v11  ;;  %v274_v12 = vpop.f32.mrb[15].mxu0  ;;  %v4784_v62 = vadd.f32 %v345_v19, %v4707_v46  ;;  %v347_v7 = vpop.f32.mrb[15].mxu1 }
 0x132   :  { %6425 = vst [vmem:[#allocation58_spill] sm:$0xff] %v4776_v63  ;;  %6426 = vst [vmem:[#allocation59_spill] sm:$0xff] %v4779_v3  ;;  %v4786_v2 = vadd.f32 %v274_v12, %v95_v8  ;;  %v4789_v4 = vadd.f32 %v347_v7, %v4715_v37  ;;  %v312_v63 = vadd.f32 %v4711_v16, %v4707_v46 }
 0x133   :  { %6427 = vst [vmem:[#allocation60_spill] sm:$0xff] %v4781_v28  ;;  %6428 = vst [vmem:[#allocation61_spill] sm:$0xff] %v4784_v62  ;;  %v314_v3 = vadd.f32 %v313_v9, %v4715_v37 }
 0x134   :  { %6429 = vst [vmem:[#allocation62_spill] sm:$0xff] %v4786_v2  ;;  %6430 = vst [vmem:[#allocation63_spill] sm:$0xff] %v4789_v4 }
 0x136   :  { %v634_v5 = vpop.f32.mrb[16].mxu0  ;;  %v675_v28 = vpop.f32.mrb[16].mxu1 }
 0x137   :  { %v682_v13 = vadd.f32 %v634_v5, %v239_v17  ;;  %v684_v1 = vadd.f32 %v675_v28, %v312_v63  ;;  %v636_v19 = vpop.f32.mrb[17].mxu0  ;;  %v677_v62 = vpop.f32.mrb[17].mxu1  ;;  %v4804_v17 = vld [vmem:[#allocation7 + $0x4] ss:$16 sps:$4 sm:$0xff]   ;;  %v4808_v5 = vld [vmem:[#allocation7] ss:$16 sps:$4 sm:$0xff]  }
 0x138   :  { %v683_v61 = vadd.f32 %v636_v19, %v241_v6  ;;  %v685_v12 = vadd.f32 %v677_v62, %v314_v3  ;;  %v638_v2 = vpop.f32.mrb[18].mxu0  ;;  %v679_v60 = vpop.f32.mrb[18].mxu1  ;;  %v4806_v6 = vld [vmem:[#allocation7 + $0xc] ss:$16 sps:$4 sm:$0xff]   ;;  %v4810_v19 = vld [vmem:[#allocation7 + $0x8] ss:$16 sps:$4 sm:$0xff]   ;;  %1206 = vmatprep.subr.bf16.mxu0 %v4804_v17 }
 0x139   :  { %v3454_v7 = vmul.f32 -1.442695, %v682_v13  ;;  %v639_v4 = vpop.f32.mrb[19].mxu0  ;;  %v680_v59 = vpop.f32.mrb[19].mxu1  ;;  %v3456_v11 = vmul.f32 -1.442695, %v684_v1  ;;  %1247 = vmatprep.subr.bf16.mxu1 %v4806_v6 }
 0x13a   :  { %v3455_v0 = vmul.f32 -1.442695, %v683_v61  ;;  %v6431_v4 = vmov 0  }
 0x13b   :  { %3820 = vpow2.f32 %v3454_v7  ;;  %v4818_v7 = vld [vmem:[#allocation7 + $0x2c] ss:$16 sps:$4 sm:$0xff]  }
 0x13c   :  { %3822 = vpow2.f32 %v3455_v0  ;;  %6432 = vst [vmem:[#allocation64_spill] sm:$0xff] %v4818_v7  ;;  %v4820_v0 = vld [vmem:[#allocation7 + $0x20] ss:$16 sps:$4 sm:$0xff]  }
 0x13d   :  { %3824 = vtanh.f32 %v685_v12  ;;  %v4816_v12 = vld [vmem:[#allocation7 + $0x24] ss:$16 sps:$4 sm:$0xff]   ;;  %6433 = vst [vmem:[#allocation65_spill] sm:$0xff] %v4820_v0 }
 0x13e   :  { %3826 = vpow2.f32 %v3456_v11  ;;  %v4822_v11 = vld [vmem:[#allocation7 + $0x28] ss:$16 sps:$4 sm:$0xff]  }
 0x13f   :  { %6434 = vst [vmem:[#allocation66_spill] sm:$0xff] %v4822_v11 }
 0x145   :  { %v3821_v8 = vpop.eup %3820 }
 0x146   :  { %v695_v10 = vadd.f32 1.0, %v3821_v8  ;;  %v3823_v9 = vpop.eup %3822  ;;  %v4828_v8 = vld [vmem:[#allocation7 + $0x44] ss:$16 sps:$4 sm:$0xff]  }
 0x147   :  { %v696_v63 = vadd.f32 1.0, %v3823_v9  ;;  %v3825_v28 = vpop.eup %3824  ;;  %6435 = vst [vmem:[#allocation67_spill] sm:$0xff] %v4828_v8  ;;  %v4832_v9 = vld [vmem:[#allocation7 + $0x40] ss:$16 sps:$4 sm:$0xff]  }
 0x148   :  { %3828 = vrcp.f32 %v695_v10  ;;  %v3827_v37 = vpop.eup %3826  ;;  %v4830_v10 = vld [vmem:[#allocation7 + $0x4c] ss:$16 sps:$4 sm:$0xff]   ;;  %6437 = vst [vmem:[#allocation69_spill] sm:$0xff] %v4832_v9 }
 0x149   :  { %3830 = vrcp.f32 %v696_v63  ;;  %v697_v16 = vadd.f32 1.0, %v3827_v37  ;;  %6436 = vst [vmem:[#allocation68_spill] sm:$0xff] %v4830_v10  ;;  %v4834_v63 = vld [vmem:[#allocation7 + $0x48] ss:$16 sps:$4 sm:$0xff]   ;;  %v4842_v37 = vld [vmem:[#allocation7 + $0x6c] ss:$16 sps:$4 sm:$0xff]  }
 0x14a   :  { %6438 = vst [vmem:[#allocation70_spill] sm:$0xff] %v4834_v63  ;;  %6440 = vst [vmem:[#allocation72_spill] sm:$0xff] %v4842_v37 }
 0x14b   :  { %3832 = vrcp.f32 %v697_v16  ;;  %v4854_v16 = vld [vmem:[#allocation7 + $0x8c] ss:$16 sps:$4 sm:$0xff]  }
 0x14c   :  { %6444 = vst [vmem:[#allocation76_spill] sm:$0xff] %v4854_v16 }
 0x152   :  { %v3829_v46 = vpop.eup %3828 }
 0x153   :  { %v706_v2 = vmul.f32 %v3829_v46, %v3825_v28  ;;  %v3831_v60 = vpop.eup %3830  ;;  %v4840_v28 = vld [vmem:[#allocation7 + $0x64] ss:$16 sps:$4 sm:$0xff]   ;;  %v4844_v46 = vld [vmem:[#allocation7 + $0x60] ss:$16 sps:$4 sm:$0xff]  }
 0x154   :  { %v705_v62 = vmul.f32 0.0, %v3831_v60  ;;  %6439 = vst [vmem:[#allocation71_spill] sm:$0xff] %v4840_v28  ;;  %6441 = vst [vmem:[#allocation73_spill] sm:$0xff] %v4844_v46  ;;  %v4852_v60 = vld [vmem:[#allocation7 + $0x84] ss:$16 sps:$4 sm:$0xff]  }
 0x155   :  { %v3833_v61 = vpop.eup %3832  ;;  %6443 = vst [vmem:[#allocation75_spill] sm:$0xff] %v4852_v60 }
 0x156   :  { %v4795_v59 = vadd.f32 %v706_v2, %v705_v62  ;;  %v4846_v2 = vld [vmem:[#allocation7 + $0x68] ss:$16 sps:$4 sm:$0xff]   ;;  %v4856_v62 = vld [vmem:[#allocation7 + $0x80] ss:$16 sps:$4 sm:$0xff]  }
 0x157   :  { %6442 = vst [vmem:[#allocation74_spill] sm:$0xff] %v4846_v2  ;;  %6445 = vst [vmem:[#allocation77_spill] sm:$0xff] %v4856_v62 }
 0x158   :  { %3834 = vtanh.f32 %v4795_v59 }
 0x162   :  { %v3835_v1 = vpop.eup %3834 }
 0x163   :  { %v709_v13 = vmul.f32 %v3835_v1, %v3833_v61  ;;  %v4858_v61 = vld [vmem:[#allocation7 + $0x88] ss:$16 sps:$4 sm:$0xff]   ;;  %v4864_v1 = vld [vmem:[#allocation7 + $0xa4] ss:$16 sps:$4 sm:$0xff]  }
 0x164   :  { %6446 = vst [vmem:[#allocation78_spill] sm:$0xff] %v4858_v61  ;;  %6447 = vst [vmem:[#allocation79_spill] sm:$0xff] %v4864_v1 }
 0x165   :  { %v4798_v3 = vpack.c.bf16 %v709_v13, %v709_v13  ;;  %v4866_v13 = vld [vmem:[#allocation7 + $0xac] ss:$16 sps:$4 sm:$0xff]  }
 0x166   :  { %6448 = vst [vmem:[#allocation80_spill] sm:$0xff] %v4866_v13 }
 0x167   :  { %936 = vmatmul.mubr.bf16.vlgmr.msra.gmra.mrb[20].mxu0 %v4798_v3  ;;  %977 = vmatmul.mubr.bf16.vlgmr.msra.gmra.mrb[20].mxu1 %v4798_v3 }
 0x168   :  { %1238 = vmatprep.mubr.bf16.mxu0 %v6431_v4  ;;  %1279 = vmatprep.mubr.bf16.mxu1 %v6431_v4 }
 0x169   :  { %1207 = vmatpush1.bf16.msra.mxu0 %v4808_v5  ;;  %1248 = vmatpush1.bf16.msra.mxu1 %v4810_v19 }
 0x16a   :  { %1208 = vmatprep.subr.bf16.mxu0 %v4816_v12  ;;  %1249 = vmatprep.subr.bf16.mxu1 %v4818_v7 }
 0x16d   :  { %1209 = vmatpush1.bf16.msra.mxu0 %v4820_v0  ;;  %1250 = vmatpush1.bf16.msra.mxu1 %v4822_v11 }
 0x16e   :  { %1210 = vmatprep.subr.bf16.mxu0 %v4828_v8  ;;  %1251 = vmatprep.subr.bf16.mxu1 %v4830_v10 }
 0x171   :  { %1211 = vmatpush1.bf16.msra.mxu0 %v4832_v9  ;;  %1252 = vmatpush1.bf16.msra.mxu1 %v4834_v63 }
 0x172   :  { %1212 = vmatprep.subr.bf16.mxu0 %v4840_v28  ;;  %1253 = vmatprep.subr.bf16.mxu1 %v4842_v37  ;;  %v4872_v37 = vld [vmem:[#allocation7 + $0xc4] ss:$16 sps:$4 sm:$0xff]   ;;  %v4874_v28 = vld [vmem:[#allocation7 + $0xcc] ss:$16 sps:$4 sm:$0xff]  }
 0x173   :  { %6451 = vst [vmem:[#allocation83_spill] sm:$0xff] %v4872_v37  ;;  %6452 = vst [vmem:[#allocation84_spill] sm:$0xff] %v4874_v28 }
 0x175   :  { %1213 = vmatpush1.bf16.msra.mxu0 %v4844_v46  ;;  %1254 = vmatpush1.bf16.msra.mxu1 %v4846_v2  ;;  %v4868_v2 = vld [vmem:[#allocation7 + $0xa0] ss:$16 sps:$4 sm:$0xff]   ;;  %v4870_v46 = vld [vmem:[#allocation7 + $0xa8] ss:$16 sps:$4 sm:$0xff]  }
 0x176   :  { %1214 = vmatprep.subr.bf16.mxu0 %v4852_v60  ;;  %1255 = vmatprep.subr.bf16.mxu1 %v4854_v16  ;;  %6449 = vst [vmem:[#allocation81_spill] sm:$0xff] %v4868_v2  ;;  %6450 = vst [vmem:[#allocation82_spill] sm:$0xff] %v4870_v46  ;;  %v4886_v16 = vld [vmem:[#allocation7 + $0xe4] ss:$16 sps:$4 sm:$0xff]   ;;  %v4888_v60 = vld [vmem:[#allocation7 + $0xec] ss:$16 sps:$4 sm:$0xff]  }
 0x177   :  { %6455 = vst [vmem:[#allocation87_spill] sm:$0xff] %v4886_v16  ;;  %6456 = vst [vmem:[#allocation88_spill] sm:$0xff] %v4888_v60 }
 0x179   :  { %1215 = vmatpush1.bf16.msra.mxu0 %v4856_v62  ;;  %1256 = vmatpush1.bf16.msra.mxu1 %v4858_v61  ;;  %v4880_v61 = vld [vmem:[#allocation7 + $0xc0] ss:$16 sps:$4 sm:$0xff]   ;;  %v4882_v62 = vld [vmem:[#allocation7 + $0xc8] ss:$16 sps:$4 sm:$0xff]  }
 0x17a   :  { %1216 = vmatprep.subr.bf16.mxu0 %v4864_v1  ;;  %1257 = vmatprep.subr.bf16.mxu1 %v4866_v13  ;;  %6453 = vst [vmem:[#allocation85_spill] sm:$0xff] %v4880_v61  ;;  %6454 = vst [vmem:[#allocation86_spill] sm:$0xff] %v4882_v62  ;;  %v4892_v13 = vld [vmem:[#allocation7 + $0xe0] ss:$16 sps:$4 sm:$0xff]  }
 0x17b   :  { %6457 = vst [vmem:[#allocation89_spill] sm:$0xff] %v4892_v13 }
 0x17d   :  { %1217 = vmatpush1.bf16.msra.mxu0 %v4868_v2  ;;  %1258 = vmatpush1.bf16.msra.mxu1 %v4870_v46  ;;  %v4894_v2 = vld [vmem:[#allocation7 + $0xe8] ss:$16 sps:$4 sm:$0xff]  }
 0x17e   :  { %1218 = vmatprep.subr.bf16.mxu0 %v4872_v37  ;;  %1259 = vmatprep.subr.bf16.mxu1 %v4874_v28  ;;  %6458 = vst [vmem:[#allocation90_spill] sm:$0xff] %v4894_v2 }
 0x181   :  { %1219 = vmatpush1.bf16.msra.mxu0 %v4880_v61  ;;  %1260 = vmatpush1.bf16.msra.mxu1 %v4882_v62  ;;  %v382_v62 = vld [vmem:[%s6047_s6] sm:$0xf]  ;;  %v6459_v61 = vsub.s32 0, %v4696_v14 }
 0x182   :  { %1220 = vmatprep.subr.bf16.mxu0 %v4886_v16  ;;  %1261 = vmatprep.subr.bf16.mxu1 %v4888_v60  ;;  %v6460_v16 = vsub.s32 1, %v4696_v14 }
 0x183   :  { %v4907_v28 = vrot.slane %v382_v62, %v6459_v61  ;;  %v6462_v61 = vsub.s32 2, %v4696_v14 }
 0x184   :  { %v4911_v37 = vrot.slane %v382_v62, %v6460_v16  ;;  %v6463_v16 = vsub.s32 3, %v4696_v14 }
 0x185   :  { %1221 = vmatpush1.bf16.msra.mxu0 %v4892_v13  ;;  %1262 = vmatpush1.bf16.msra.mxu1 %v4894_v2  ;;  %v4917_v0 = vrot.slane %v382_v62, %v6462_v61 }
 0x186   :  { %1296 = vmatprep.subr.bf16.mxu0 %v4468_v15  ;;  %1337 = vmatprep.subr.bf16.mxu1 %v4474_v18  ;;  %6461 = vst [vmem:[#allocation91_spill] sm:$0xff] %v4911_v37  ;;  %v4921_v7 = vrot.slane %v382_v62, %v6463_v16 }
 0x23a   :  { %v937_v60 = vpop.f32.mrb[20].mxu0  ;;  %v978_v13 = vpop.f32.mrb[20].mxu1 }
 0x23b   :  { %v985_v2 = vadd.f32 %v937_v60, %v4907_v28  ;;  %v939_v46 = vpop.f32.mrb[21].mxu0  ;;  %v980_v15 = vpop.f32.mrb[21].mxu1  ;;  %v987_v60 = vadd.f32 %v978_v13, %v4917_v0 }
 0x23c   :  { %v986_v18 = vadd.f32 %v939_v46, %v4911_v37  ;;  %v941_v1 = vpop.f32.mrb[22].mxu0  ;;  %v982_v63 = vpop.f32.mrb[22].mxu1  ;;  %v988_v46 = vadd.f32 %v980_v15, %v4921_v7 }
 0x23d   :  { %v3489_v9 = vmul.f32 -1.442695, %v985_v2  ;;  %v942_v10 = vpop.f32.mrb[23].mxu0  ;;  %v983_v8 = vpop.f32.mrb[23].mxu1  ;;  %v3491_v1 = vmul.f32 -1.442695, %v987_v60 }
 0x23e   :  { %v3490_v11 = vmul.f32 -1.442695, %v986_v18 }
 0x23f   :  { %3836 = vpow2.f32 %v3489_v9 }
 0x240   :  { %3838 = vpow2.f32 %v3490_v11 }
 0x241   :  { %3840 = vtanh.f32 %v988_v46 }
 0x242   :  { %3842 = vpow2.f32 %v3491_v1 }
 0x249   :  { %v3837_v63 = vpop.eup %3836 }
 0x24a   :  { %v998_v2 = vadd.f32 1.0, %v3837_v63  ;;  %v3839_v8 = vpop.eup %3838  ;;  %v6493_v63 = vld [vmem:[#allocation39_spill] sm:$0xff] }
 0x24b   :  { %v999_v10 = vadd.f32 1.0, %v3839_v8  ;;  %v3841_v9 = vpop.eup %3840 }
 0x24c   :  { %3844 = vrcp.f32 %v998_v2  ;;  %v3843_v18 = vpop.eup %3842 }
 0x24d   :  { %3846 = vrcp.f32 %v999_v10  ;;  %v1000_v62 = vadd.f32 1.0, %v3843_v18 }
 0x24f   :  { %3848 = vrcp.f32 %v1000_v62 }
 0x256   :  { %v3845_v11 = vpop.eup %3844 }
 0x257   :  { %v1009_v61 = vmul.f32 %v3845_v11, %v3841_v9  ;;  %v3847_v14 = vpop.eup %3846 }
 0x258   :  { %v1008_v16 = vmul.f32 0.0, %v3847_v14 }
 0x259   :  { %v3849_v13 = vpop.eup %3848 }
 0x25a   :  { %v4925_v37 = vadd.f32 %v1009_v61, %v1008_v16 }
 0x25c   :  { %3850 = vtanh.f32 %v4925_v37 }
 0x266   :  { %v3851_v15 = vpop.eup %3850 }
 0x267   :  { %v1012_v60 = vmul.f32 %v3851_v15, %v3849_v13 }
 0x269   :  { %v1013_v46 = vpack.c.bf16 %v1012_v60, %v1012_v60 }
 0x26b   :  { %1239 = vmatmul.mubr.bf16.vlgmr.msra.gmra.mrb[24].mxu0 %v1013_v46  ;;  %1280 = vmatmul.mubr.bf16.vlgmr.msra.gmra.mrb[24].mxu1 %v1013_v46 }
 0x26c   :  { %1297 = vmatpush1.bf16.msra.mxu0 %v4479_v20  ;;  %1338 = vmatpush1.bf16.msra.mxu1 %v4481_v21  ;;  %v6464_v20 = vld [vmem:[#allocation10_spill] sm:$0xff]  ;;  %v6465_v21 = vld [vmem:[#allocation11_spill] sm:$0xff] }
 0x26d   :  { %1298 = vmatprep.subr.bf16.mxu0 %v4483_v22  ;;  %1339 = vmatprep.subr.bf16.mxu1 %v4487_v23  ;;  %v6466_v22 = vld [vmem:[#allocation12_spill] sm:$0xff]  ;;  %v6467_v23 = vld [vmem:[#allocation13_spill] sm:$0xff] }
 0x26e   :  { %1328 = vmatprep.mubr.bf16.mxu0 %v6431_v4  ;;  %1369 = vmatprep.mubr.bf16.mxu1 %v6431_v4 }
 0x270   :  { %1299 = vmatpush1.bf16.msra.mxu0 %v4491_v24  ;;  %1340 = vmatpush1.bf16.msra.mxu1 %v4493_v25  ;;  %v6468_v24 = vld [vmem:[#allocation14_spill] sm:$0xff]  ;;  %v6469_v25 = vld [vmem:[#allocation15_spill] sm:$0xff] }
 0x271   :  { %1300 = vmatprep.subr.bf16.mxu0 %v4497_v26  ;;  %1341 = vmatprep.subr.bf16.mxu1 %v4501_v27  ;;  %v6470_v26 = vld [vmem:[#allocation16_spill] sm:$0xff]  ;;  %v6471_v27 = vld [vmem:[#allocation17_spill] sm:$0xff] }
 0x274   :  { %1301 = vmatpush1.bf16.msra.mxu0 %v4508_v29  ;;  %1342 = vmatpush1.bf16.msra.mxu1 %v4512_v30  ;;  %v6472_v29 = vld [vmem:[#allocation18_spill] sm:$0xff]  ;;  %v6473_v30 = vld [vmem:[#allocation19_spill] sm:$0xff] }
 0x275   :  { %1302 = vmatprep.subr.bf16.mxu0 %v4516_v31  ;;  %1343 = vmatprep.subr.bf16.mxu1 %v4518_v32  ;;  %v6474_v31 = vld [vmem:[#allocation20_spill] sm:$0xff]  ;;  %v6475_v32 = vld [vmem:[#allocation21_spill] sm:$0xff] }
 0x278   :  { %1303 = vmatpush1.bf16.msra.mxu0 %v4524_v33  ;;  %1344 = vmatpush1.bf16.msra.mxu1 %v4526_v34  ;;  %v6476_v33 = vld [vmem:[#allocation22_spill] sm:$0xff]  ;;  %v6477_v34 = vld [vmem:[#allocation23_spill] sm:$0xff] }
 0x279   :  { %1304 = vmatprep.subr.bf16.mxu0 %v4528_v35  ;;  %1345 = vmatprep.subr.bf16.mxu1 %v4532_v36  ;;  %v6478_v35 = vld [vmem:[#allocation24_spill] sm:$0xff]  ;;  %v6479_v36 = vld [vmem:[#allocation25_spill] sm:$0xff] }
 0x27c   :  { %1305 = vmatpush1.bf16.msra.mxu0 %v4539_v38  ;;  %1346 = vmatpush1.bf16.msra.mxu1 %v4543_v39  ;;  %v6480_v38 = vld [vmem:[#allocation26_spill] sm:$0xff]  ;;  %v6481_v39 = vld [vmem:[#allocation27_spill] sm:$0xff] }
 0x27d   :  { %1306 = vmatprep.subr.bf16.mxu0 %v4545_v40  ;;  %1347 = vmatprep.subr.bf16.mxu1 %v4549_v41  ;;  %v6482_v40 = vld [vmem:[#allocation28_spill] sm:$0xff]  ;;  %v6483_v41 = vld [vmem:[#allocation29_spill] sm:$0xff] }
 0x280   :  { %1307 = vmatpush1.bf16.msra.mxu0 %v4551_v42  ;;  %1348 = vmatpush1.bf16.msra.mxu1 %v4553_v43  ;;  %v6484_v42 = vld [vmem:[#allocation30_spill] sm:$0xff]  ;;  %v6485_v43 = vld [vmem:[#allocation31_spill] sm:$0xff] }
 0x281   :  { %1308 = vmatprep.subr.bf16.mxu0 %v4557_v44  ;;  %1349 = vmatprep.subr.bf16.mxu1 %v4559_v45  ;;  %v6486_v44 = vld [vmem:[#allocation32_spill] sm:$0xff]  ;;  %v6487_v45 = vld [vmem:[#allocation33_spill] sm:$0xff] }
 0x284   :  { %1309 = vmatpush1.bf16.msra.mxu0 %v4570_v47  ;;  %1350 = vmatpush1.bf16.msra.mxu1 %v4572_v48  ;;  %v6488_v47 = vld [vmem:[#allocation34_spill] sm:$0xff]  ;;  %v6489_v48 = vld [vmem:[#allocation35_spill] sm:$0xff] }
 0x285   :  { %1310 = vmatprep.subr.bf16.mxu0 %v4574_v49  ;;  %1351 = vmatprep.subr.bf16.mxu1 %v4576_v50 }
 0x288   :  { %1311 = vmatpush1.bf16.msra.mxu0 %v4582_v51  ;;  %1352 = vmatpush1.bf16.msra.mxu1 %v4584_v52  ;;  %v6490_v51 = vld [vmem:[#allocation36_spill] sm:$0xff] }
 0x289   :  { %1407 = vmatprep.subr.bf16.mxu0 %v4600_v53  ;;  %1448 = vmatprep.subr.bf16.mxu1 %v4602_v54  ;;  %v6491_v53 = vld [vmem:[#allocation37_spill] sm:$0xff] }
 0x28b   :  { %1329 = vmatmul.mubr.bf16.vlgmr.msra.gmra.mrb[28].mxu0 %v4798_v3  ;;  %1370 = vmatmul.mubr.bf16.vlgmr.msra.gmra.mrb[28].mxu1 %v4798_v3  ;;  %v6492_v3 = vld [vmem:[#allocation38_spill] sm:$0xff] }
 0x28c   :  { %1408 = vmatpush1.bf16.msra.mxu0 %v4604_v55  ;;  %1449 = vmatpush1.bf16.msra.mxu1 %v4606_v56 }
 0x28d   :  { %1409 = vmatprep.subr.bf16.mxu0 %v4612_v57  ;;  %1450 = vmatprep.subr.bf16.mxu1 %v4614_v58 }
 0x28e   :  { %1439 = vmatprep.mubr.bf16.mxu0 %v6431_v4  ;;  %1480 = vmatprep.mubr.bf16.mxu1 %v6431_v4 }
 0x290   :  { %1410 = vmatpush1.bf16.msra.mxu0 %v6464_v20  ;;  %1451 = vmatpush1.bf16.msra.mxu1 %v6465_v21 }
 0x291   :  { %1411 = vmatprep.subr.bf16.mxu0 %v6466_v22  ;;  %1452 = vmatprep.subr.bf16.mxu1 %v6467_v23 }
 0x294   :  { %1412 = vmatpush1.bf16.msra.mxu0 %v6468_v24  ;;  %1453 = vmatpush1.bf16.msra.mxu1 %v6469_v25 }
 0x295   :  { %1413 = vmatprep.subr.bf16.mxu0 %v6470_v26  ;;  %1454 = vmatprep.subr.bf16.mxu1 %v6471_v27 }
 0x298   :  { %1414 = vmatpush1.bf16.msra.mxu0 %v6472_v29  ;;  %1455 = vmatpush1.bf16.msra.mxu1 %v6473_v30 }
 0x299   :  { %1415 = vmatprep.subr.bf16.mxu0 %v6474_v31  ;;  %1456 = vmatprep.subr.bf16.mxu1 %v6475_v32 }
 0x29c   :  { %1416 = vmatpush1.bf16.msra.mxu0 %v6476_v33  ;;  %1457 = vmatpush1.bf16.msra.mxu1 %v6477_v34 }
 0x29d   :  { %1417 = vmatprep.subr.bf16.mxu0 %v6478_v35  ;;  %1458 = vmatprep.subr.bf16.mxu1 %v6479_v36 }
 0x2a0   :  { %1418 = vmatpush1.bf16.msra.mxu0 %v6480_v38  ;;  %1459 = vmatpush1.bf16.msra.mxu1 %v6481_v39 }
 0x2a1   :  { %1419 = vmatprep.subr.bf16.mxu0 %v6482_v40  ;;  %1460 = vmatprep.subr.bf16.mxu1 %v6483_v41 }
 0x2a4   :  { %1420 = vmatpush1.bf16.msra.mxu0 %v6484_v42  ;;  %1461 = vmatpush1.bf16.msra.mxu1 %v6485_v43 }
 0x2a5   :  { %1421 = vmatprep.subr.bf16.mxu0 %v6486_v44  ;;  %1462 = vmatprep.subr.bf16.mxu1 %v6487_v45 }
 0x2a8   :  { %1422 = vmatpush1.bf16.msra.mxu0 %v6488_v47  ;;  %1463 = vmatpush1.bf16.msra.mxu1 %v6489_v48 }
 0x2a9   :  { %1518 = vmatprep.subr.bf16.mxu0 %v4804_v17  ;;  %1559 = vmatprep.subr.bf16.mxu1 %v4806_v6 }
 0x35e   :  { %v1330_v49 = vpop.f32.mrb[28].mxu0  ;;  %v1371_v50 = vpop.f32.mrb[28].mxu1 }
 0x35f   :  { %v1378_v52 = vadd.f32 %v1330_v49, %v6490_v51  ;;  %v1380_v54 = vadd.f32 %v1371_v50, %v6491_v53  ;;  %v1332_v55 = vpop.f32.mrb[29].mxu0  ;;  %v1373_v56 = vpop.f32.mrb[29].mxu1 }
 0x360   :  { %v1379_v1 = vadd.f32 %v1332_v55, %v6492_v3  ;;  %v1381_v2 = vadd.f32 %v1373_v56, %v6493_v63  ;;  %v1334_v8 = vpop.f32.mrb[30].mxu0  ;;  %v1375_v10 = vpop.f32.mrb[30].mxu1  ;;  %v6495_v3 = vld [vmem:[#allocation65_spill] sm:$0xff]  ;;  %v6497_v63 = vld [vmem:[#allocation67_spill] sm:$0xff] }
 0x361   :  { %v3524_v9 = vmul.f32 -1.442695, %v1378_v52  ;;  %v1335_v18 = vpop.f32.mrb[31].mxu0  ;;  %v1376_v11 = vpop.f32.mrb[31].mxu1  ;;  %v3526_v14 = vmul.f32 -1.442695, %v1380_v54 }
 0x362   :  { %v3525_v61 = vmul.f32 -1.442695, %v1379_v1  ;;  %v6496_v1 = vld [vmem:[#allocation66_spill] sm:$0xff]  ;;  %v6499_v8 = vld [vmem:[#allocation69_spill] sm:$0xff]  ;;  %v6502_v18 = vld [vmem:[#allocation72_spill] sm:$0xff] }
 0x363   :  { %3852 = vpow2.f32 %v3524_v9  ;;  %v6500_v10 = vld [vmem:[#allocation70_spill] sm:$0xff]  ;;  %v6501_v9 = vld [vmem:[#allocation71_spill] sm:$0xff]  ;;  %v6503_v11 = vld [vmem:[#allocation73_spill] sm:$0xff] }
 0x364   :  { %3854 = vpow2.f32 %v3525_v61  ;;  %v6504_v61 = vld [vmem:[#allocation74_spill] sm:$0xff] }
 0x365   :  { %3856 = vtanh.f32 %v1381_v2  ;;  %v6498_v2 = vld [vmem:[#allocation68_spill] sm:$0xff] }
 0x366   :  { %3858 = vpow2.f32 %v3526_v14  ;;  %v6505_v14 = vld [vmem:[#allocation75_spill] sm:$0xff] }
 0x36d   :  { %v3853_v62 = vpop.eup %3852 }
 0x36e   :  { %v1391_v16 = vadd.f32 1.0, %v3853_v62  ;;  %v3855_v13 = vpop.eup %3854  ;;  %v6506_v62 = vld [vmem:[#allocation76_spill] sm:$0xff] }
 0x36f   :  { %v1392_v15 = vadd.f32 1.0, %v3855_v13  ;;  %v3857_v60 = vpop.eup %3856  ;;  %v6508_v13 = vld [vmem:[#allocation78_spill] sm:$0xff] }
 0x370   :  { %3860 = vrcp.f32 %v1391_v16  ;;  %v3859_v46 = vpop.eup %3858  ;;  %v6507_v16 = vld [vmem:[#allocation77_spill] sm:$0xff] }
 0x371   :  { %3862 = vrcp.f32 %v1392_v15  ;;  %v1393_v50 = vadd.f32 1.0, %v3859_v46  ;;  %v6509_v15 = vld [vmem:[#allocation79_spill] sm:$0xff]  ;;  %v6511_v46 = vld [vmem:[#allocation81_spill] sm:$0xff] }
 0x373   :  { %3864 = vrcp.f32 %v1393_v50  ;;  %v6515_v50 = vld [vmem:[#allocation85_spill] sm:$0xff] }
 0x37a   :  { %v3861_v20 = vpop.eup %3860 }
 0x37b   :  { %v1402_v21 = vmul.f32 %v3861_v20, %v3857_v60  ;;  %v3863_v49 = vpop.eup %3862  ;;  %v6510_v60 = vld [vmem:[#allocation80_spill] sm:$0xff]  ;;  %v6512_v20 = vld [vmem:[#allocation82_spill] sm:$0xff] }
 0x37c   :  { %v1401_v51 = vmul.f32 %v3863_v49, %v4795_v59  ;;  %v6494_v59 = vld [vmem:[#allocation64_spill] sm:$0xff] }
 0x37d   :  { %v3865_v53 = vpop.eup %3864  ;;  %v6514_v49 = vld [vmem:[#allocation84_spill] sm:$0xff] }
 0x37e   :  { %v5003_v52 = vadd.f32 %v1402_v21, %v1401_v51  ;;  %v6513_v21 = vld [vmem:[#allocation83_spill] sm:$0xff]  ;;  %v6516_v51 = vld [vmem:[#allocation86_spill] sm:$0xff] }
 0x380   :  { %3866 = vtanh.f32 %v5003_v52 }
 0x38a   :  { %v3867_v54 = vpop.eup %3866 }
 0x38b   :  { %v1405_v55 = vmul.f32 %v3867_v54, %v3865_v53  ;;  %v6517_v53 = vld [vmem:[#allocation87_spill] sm:$0xff]  ;;  %v6518_v54 = vld [vmem:[#allocation88_spill] sm:$0xff] }
 0x38d   :  { %v5006_v56 = vpack.c.bf16 %v1405_v55, %v1405_v55  ;;  %v6519_v55 = vld [vmem:[#allocation89_spill] sm:$0xff] }
 0x38f   :  { %1440 = vmatmul.mubr.bf16.vlgmr.msra.gmra.mrb[24].mxu0 %v5006_v56  ;;  %1481 = vmatmul.mubr.bf16.vlgmr.msra.gmra.mrb[24].mxu1 %v5006_v56 }
 0x390   :  { %1519 = vmatpush1.bf16.msra.mxu0 %v4808_v5  ;;  %1560 = vmatpush1.bf16.msra.mxu1 %v4810_v19 }
 0x391   :  { %1520 = vmatprep.subr.bf16.mxu0 %v4816_v12  ;;  %1561 = vmatprep.subr.bf16.mxu1 %v6494_v59 }
 0x392   :  { %1550 = vmatprep.mubr.bf16.mxu0 %v6431_v4  ;;  %1591 = vmatprep.mubr.bf16.mxu1 %v6431_v4 }
 0x394   :  { %1521 = vmatpush1.bf16.msra.mxu0 %v6495_v3  ;;  %1562 = vmatpush1.bf16.msra.mxu1 %v6496_v1 }
 0x395   :  { %1522 = vmatprep.subr.bf16.mxu0 %v6497_v63  ;;  %1563 = vmatprep.subr.bf16.mxu1 %v6498_v2 }
 0x398   :  { %1523 = vmatpush1.bf16.msra.mxu0 %v6499_v8  ;;  %1564 = vmatpush1.bf16.msra.mxu1 %v6500_v10 }
 0x399   :  { %1524 = vmatprep.subr.bf16.mxu0 %v6501_v9  ;;  %1565 = vmatprep.subr.bf16.mxu1 %v6502_v18 }
 0x39c   :  { %1525 = vmatpush1.bf16.msra.mxu0 %v6503_v11  ;;  %1566 = vmatpush1.bf16.msra.mxu1 %v6504_v61 }
 0x39d   :  { %1526 = vmatprep.subr.bf16.mxu0 %v6505_v14  ;;  %1567 = vmatprep.subr.bf16.mxu1 %v6506_v62 }
 0x3a0   :  { %1527 = vmatpush1.bf16.msra.mxu0 %v6507_v16  ;;  %1568 = vmatpush1.bf16.msra.mxu1 %v6508_v13 }
 0x3a1   :  { %1528 = vmatprep.subr.bf16.mxu0 %v6509_v15  ;;  %1569 = vmatprep.subr.bf16.mxu1 %v6510_v60  ;;  %v6520_v15 = vld [vmem:[#allocation90_spill] sm:$0xff] }
 0x3a2   :  { %v5042_v60 = vld [vmem:[#allocation3 + $0x4] ss:$16 sps:$4 sm:$0xff]  }
 0x3a3   :  { %6521 = vst [vmem:[#allocation10_spill] sm:$0xff] %v5042_v60 }
 0x3a4   :  { %1529 = vmatpush1.bf16.msra.mxu0 %v6511_v46  ;;  %1570 = vmatpush1.bf16.msra.mxu1 %v6512_v20  ;;  %v5045_v20 = vld [vmem:[#allocation3 + $0xc] ss:$16 sps:$4 sm:$0xff]  }
 0x3a5   :  { %1530 = vmatprep.subr.bf16.mxu0 %v6513_v21  ;;  %1571 = vmatprep.subr.bf16.mxu1 %v6514_v49  ;;  %6522 = vst [vmem:[#allocation11_spill] sm:$0xff] %v5045_v20  ;;  %v6523_v46 = vld [vmem:[#allocation91_spill] sm:$0xff] }
 0x3a8   :  { %1531 = vmatpush1.bf16.msra.mxu0 %v6515_v50  ;;  %1572 = vmatpush1.bf16.msra.mxu1 %v6516_v51 }
 0x3a9   :  { %1532 = vmatprep.subr.bf16.mxu0 %v6517_v53  ;;  %1573 = vmatprep.subr.bf16.mxu1 %v6518_v54 }
 0x3ac   :  { %1533 = vmatpush1.bf16.msra.mxu0 %v6519_v55  ;;  %1574 = vmatpush1.bf16.msra.mxu1 %v6520_v15 }
 0x3ad   :  { %1608 = vmatprep.subr.bf16.mxu0 %v5042_v60  ;;  %1649 = vmatprep.subr.bf16.mxu1 %v5045_v20 }
 0x462   :  { %v1441_v49 = vpop.f32.mrb[24].mxu0  ;;  %v1482_v50 = vpop.f32.mrb[24].mxu1 }
 0x463   :  { %v3566_v51 = vadd.f32 %v1441_v49, %v4907_v28  ;;  %v1443_v21 = vpop.f32.mrb[25].mxu0  ;;  %v1484_v53 = vpop.f32.mrb[25].mxu1  ;;  %v3568_v60 = vadd.f32 %v1482_v50, %v4917_v0 }
 0x464   :  { %v3567_v54 = vadd.f32 %v1443_v21, %v6523_v46  ;;  %v1445_v13 = vpop.f32.mrb[26].mxu0  ;;  %v1486_v55 = vpop.f32.mrb[26].mxu1  ;;  %v3569_v20 = vadd.f32 %v1484_v53, %v4921_v7  ;;  %v5059_v53 = vld [vmem:[#allocation3 + $0x8] ss:$16 sps:$4 sm:$0xff]  }
 0x465   :  { %v3527_v16 = vmul.f32 -1.442695, %v3566_v51  ;;  %v1446_v15 = vpop.f32.mrb[27].mxu0  ;;  %v1487_v62 = vpop.f32.mrb[27].mxu1  ;;  %v3529_v61 = vmul.f32 -1.442695, %v3568_v60 }
 0x466   :  { %v3528_v14 = vmul.f32 -1.442695, %v3567_v54  ;;  %v5065_v55 = vld [vmem:[#allocation3 + $0x2c] ss:$16 sps:$4 sm:$0xff]  }
 0x467   :  { %3868 = vpow2.f32 %v3527_v16 }
 0x468   :  { %3870 = vpow2.f32 %v3528_v14 }
 0x469   :  { %3872 = vtanh.f32 %v3569_v20 }
 0x46a   :  { %3874 = vpow2.f32 %v3529_v61 }
 0x471   :  { %v3869_v11 = vpop.eup %3868 }
 0x472   :  { %v1502_v18 = vadd.f32 1.0, %v3869_v11  ;;  %v3871_v49 = vpop.eup %3870 }
 0x473   :  { %v1503_v21 = vadd.f32 1.0, %v3871_v49  ;;  %v3873_v13 = vpop.eup %3872  ;;  %v5070_v49 = vld [vmem:[#allocation3 + $0x20] ss:$16 sps:$4 sm:$0xff]  }
 0x474   :  { %3876 = vrcp.f32 %v1502_v18  ;;  %v3875_v51 = vpop.eup %3874  ;;  %v5056_v18 = vld [vmem:[#allocation3] ss:$16 sps:$4 sm:$0xff]  }
 0x475   :  { %3878 = vrcp.f32 %v1503_v21  ;;  %v1504_v16 = vadd.f32 1.0, %v3875_v51  ;;  %v5073_v21 = vld [vmem:[#allocation3 + $0x28] ss:$16 sps:$4 sm:$0xff]   ;;  %v5079_v51 = vld [vmem:[#allocation3 + $0x4c] ss:$16 sps:$4 sm:$0xff]  }
 0x477   :  { %3880 = vrcp.f32 %v1504_v16  ;;  %v5091_v16 = vld [vmem:[#allocation3 + $0x6c] ss:$16 sps:$4 sm:$0xff]  }
 0x478   :  { %6524 = vst [vmem:[#allocation12_spill] sm:$0xff] %v5091_v16 }
 0x47e   :  { %v3877_v15 = vpop.eup %3876 }
 0x47f   :  { %v1513_v62 = vmul.f32 %v3877_v15, %v3873_v13  ;;  %v3879_v54 = vpop.eup %3878  ;;  %v5076_v13 = vld [vmem:[#allocation3 + $0x44] ss:$16 sps:$4 sm:$0xff]   ;;  %v5082_v15 = vld [vmem:[#allocation3 + $0x40] ss:$16 sps:$4 sm:$0xff]  }
 0x480   :  { %v1512_v14 = vmul.f32 %v3879_v54, %v4925_v37  ;;  %v5062_v37 = vld [vmem:[#allocation3 + $0x24] ss:$16 sps:$4 sm:$0xff]  }
 0x481   :  { %v3881_v11 = vpop.eup %3880  ;;  %v5088_v54 = vld [vmem:[#allocation3 + $0x64] ss:$16 sps:$4 sm:$0xff]  }
 0x482   :  { %v5053_v50 = vadd.f32 %v1513_v62, %v1512_v14  ;;  %v5085_v62 = vld [vmem:[#allocation3 + $0x48] ss:$16 sps:$4 sm:$0xff]   ;;  %v5094_v14 = vld [vmem:[#allocation3 + $0x60] ss:$16 sps:$4 sm:$0xff]  }
 0x483   :  { %6525 = vst [vmem:[#allocation13_spill] sm:$0xff] %v5094_v14 }
 0x484   :  { %3882 = vtanh.f32 %v5053_v50 }
 0x48e   :  { %v3883_v60 = vpop.eup %3882 }
 0x48f   :  { %v1516_v20 = vmul.f32 %v3883_v60, %v3881_v11  ;;  %v5097_v11 = vld [vmem:[#allocation3 + $0x68] ss:$16 sps:$4 sm:$0xff]   ;;  %v5100_v60 = vld [vmem:[#allocation3 + $0x84] ss:$16 sps:$4 sm:$0xff]  }
 0x490   :  { %6526 = vst [vmem:[#allocation14_spill] sm:$0xff] %v5097_v11  ;;  %6527 = vst [vmem:[#allocation15_spill] sm:$0xff] %v5100_v60 }
 0x491   :  { %v1517_v61 = vpack.c.bf16 %v1516_v20, %v1516_v20  ;;  %v5103_v20 = vld [vmem:[#allocation3 + $0x8c] ss:$16 sps:$4 sm:$0xff]  }
 0x492   :  { %6528 = vst [vmem:[#allocation16_spill] sm:$0xff] %v5103_v20 }
 0x493   :  { %1551 = vmatmul.mubr.bf16.vlgmr.msra.gmra.mrb[32].mxu0 %v1517_v61  ;;  %1592 = vmatmul.mubr.bf16.vlgmr.msra.gmra.mrb[32].mxu1 %v1517_v61  ;;  %v5106_v61 = vld [vmem:[#allocation3 + $0x80] ss:$16 sps:$4 sm:$0xff]  }
 0x494   :  { %1609 = vmatpush1.bf16.msra.mxu0 %v5056_v18  ;;  %1650 = vmatpush1.bf16.msra.mxu1 %v5059_v53  ;;  %6529 = vst [vmem:[#allocation17_spill] sm:$0xff] %v5106_v61 }
 0x495   :  { %1610 = vmatprep.subr.bf16.mxu0 %v5062_v37  ;;  %1651 = vmatprep.subr.bf16.mxu1 %v5065_v55 }
 0x496   :  { %1640 = vmatprep.mubr.bf16.mxu0 %v6431_v4  ;;  %1681 = vmatprep.mubr.bf16.mxu1 %v6431_v4 }
 0x498   :  { %1611 = vmatpush1.bf16.msra.mxu0 %v5070_v49  ;;  %1652 = vmatpush1.bf16.msra.mxu1 %v5073_v21 }
 0x499   :  { %1612 = vmatprep.subr.bf16.mxu0 %v5076_v13  ;;  %1653 = vmatprep.subr.bf16.mxu1 %v5079_v51 }
 0x49c   :  { %1613 = vmatpush1.bf16.msra.mxu0 %v5082_v15  ;;  %1654 = vmatpush1.bf16.msra.mxu1 %v5085_v62 }
 0x49d   :  { %1614 = vmatprep.subr.bf16.mxu0 %v5088_v54  ;;  %1655 = vmatprep.subr.bf16.mxu1 %v5091_v16  ;;  %v5109_v16 = vld [vmem:[#allocation3 + $0x88] ss:$16 sps:$4 sm:$0xff]  }
 0x49e   :  { %6530 = vst [vmem:[#allocation18_spill] sm:$0xff] %v5109_v16 }
 0x4a0   :  { %1615 = vmatpush1.bf16.msra.mxu0 %v5094_v14  ;;  %1656 = vmatpush1.bf16.msra.mxu1 %v5097_v11  ;;  %v5112_v14 = vld [vmem:[#allocation3 + $0xa4] ss:$16 sps:$4 sm:$0xff]   ;;  %v5115_v11 = vld [vmem:[#allocation3 + $0xac] ss:$16 sps:$4 sm:$0xff]  }
 0x4a1   :  { %1616 = vmatprep.subr.bf16.mxu0 %v5100_v60  ;;  %1657 = vmatprep.subr.bf16.mxu1 %v5103_v20  ;;  %6531 = vst [vmem:[#allocation19_spill] sm:$0xff] %v5112_v14  ;;  %6532 = vst [vmem:[#allocation20_spill] sm:$0xff] %v5115_v11  ;;  %v5118_v60 = vld [vmem:[#allocation3 + $0xa0] ss:$16 sps:$4 sm:$0xff]   ;;  %v5121_v20 = vld [vmem:[#allocation3 + $0xa8] ss:$16 sps:$4 sm:$0xff]  }
 0x4a2   :  { %6533 = vst [vmem:[#allocation21_spill] sm:$0xff] %v5118_v60  ;;  %6534 = vst [vmem:[#allocation22_spill] sm:$0xff] %v5121_v20 }
 0x4a4   :  { %1617 = vmatpush1.bf16.msra.mxu0 %v5106_v61  ;;  %1658 = vmatpush1.bf16.msra.mxu1 %v5109_v16  ;;  %v5124_v61 = vld [vmem:[#allocation3 + $0xc4] ss:$16 sps:$4 sm:$0xff]   ;;  %v5127_v16 = vld [vmem:[#allocation3 + $0xcc] ss:$16 sps:$4 sm:$0xff]  }
 0x4a5   :  { %1618 = vmatprep.subr.bf16.mxu0 %v5112_v14  ;;  %1659 = vmatprep.subr.bf16.mxu1 %v5115_v11  ;;  %6535 = vst [vmem:[#allocation23_spill] sm:$0xff] %v5124_v61  ;;  %6536 = vst [vmem:[#allocation24_spill] sm:$0xff] %v5127_v16  ;;  %v5130_v14 = vld [vmem:[#allocation3 + $0xc0] ss:$16 sps:$4 sm:$0xff]   ;;  %v5133_v11 = vld [vmem:[#allocation3 + $0xc8] ss:$16 sps:$4 sm:$0xff]  }
 0x4a6   :  { %6537 = vst [vmem:[#allocation25_spill] sm:$0xff] %v5130_v14  ;;  %6538 = vst [vmem:[#allocation26_spill] sm:$0xff] %v5133_v11 }
 0x4a8   :  { %1619 = vmatpush1.bf16.msra.mxu0 %v5118_v60  ;;  %1660 = vmatpush1.bf16.msra.mxu1 %v5121_v20  ;;  %v5136_v60 = vld [vmem:[#allocation3 + $0xe4] ss:$16 sps:$4 sm:$0xff]   ;;  %v5139_v20 = vld [vmem:[#allocation3 + $0xec] ss:$16 sps:$4 sm:$0xff]  }
 0x4a9   :  { %1620 = vmatprep.subr.bf16.mxu0 %v5124_v61  ;;  %1661 = vmatprep.subr.bf16.mxu1 %v5127_v16  ;;  %6539 = vst [vmem:[#allocation27_spill] sm:$0xff] %v5139_v20  ;;  %v5142_v61 = vld [vmem:[#allocation3 + $0xe0] ss:$16 sps:$4 sm:$0xff]   ;;  %v5145_v16 = vld [vmem:[#allocation3 + $0xe8] ss:$16 sps:$4 sm:$0xff]  }
 0x4aa   :  { %6540 = vst [vmem:[#allocation28_spill] sm:$0xff] %v5142_v61 }
 0x4ac   :  { %1621 = vmatpush1.bf16.msra.mxu0 %v5130_v14  ;;  %1662 = vmatpush1.bf16.msra.mxu1 %v5133_v11  ;;  %v5148_v14 = vld [vmem:[#allocation5 + $0x4] ss:$16 sps:$4 sm:$0xff]   ;;  %v5151_v11 = vld [vmem:[#allocation5 + $0xc] ss:$16 sps:$4 sm:$0xff]  }
 0x4ad   :  { %1622 = vmatprep.subr.bf16.mxu0 %v5136_v60  ;;  %1663 = vmatprep.subr.bf16.mxu1 %v5139_v20  ;;  %6541 = vst [vmem:[#allocation29_spill] sm:$0xff] %v5151_v11  ;;  %v5156_v20 = vld [vmem:[#allocation5] ss:$16 sps:$4 sm:$0xff]  }
 0x4b0   :  { %1623 = vmatpush1.bf16.msra.mxu0 %v5142_v61  ;;  %1664 = vmatpush1.bf16.msra.mxu1 %v5145_v16  ;;  %v5159_v61 = vld [vmem:[#allocation5 + $0x8] ss:$16 sps:$4 sm:$0xff]  }
 0x4b1   :  { %1719 = vmatprep.subr.bf16.mxu0 %v5148_v14  ;;  %1760 = vmatprep.subr.bf16.mxu1 %v5151_v11  ;;  %v5166_v11 = vld [vmem:[#allocation5 + $0x20] ss:$16 sps:$4 sm:$0xff]  }
 0x4b2   :  { %6542 = vst [vmem:[#allocation30_spill] sm:$0xff] %v5166_v11 }
 0x4b3   :  { %1641 = vmatmul.mubr.bf16.vlgmr.msra.gmra.mrb[36].mxu0 %v5006_v56  ;;  %1682 = vmatmul.mubr.bf16.vlgmr.msra.gmra.mrb[36].mxu1 %v5006_v56  ;;  %v5169_v56 = vld [vmem:[#allocation5 + $0x28] ss:$16 sps:$4 sm:$0xff]  }
 0x4b4   :  { %1720 = vmatpush1.bf16.msra.mxu0 %v5156_v20  ;;  %1761 = vmatpush1.bf16.msra.mxu1 %v5159_v61  ;;  %6543 = vst [vmem:[#allocation31_spill] sm:$0xff] %v5169_v56 }
 0x4b5   :  { %1721 = vmatprep.subr.bf16.mxu0 %v4612_v57  ;;  %1762 = vmatprep.subr.bf16.mxu1 %v4614_v58 }
 0x4b6   :  { %1751 = vmatprep.mubr.bf16.mxu0 %v6431_v4  ;;  %1792 = vmatprep.mubr.bf16.mxu1 %v6431_v4 }
 0x4b8   :  { %1722 = vmatpush1.bf16.msra.mxu0 %v5166_v11  ;;  %1763 = vmatpush1.bf16.msra.mxu1 %v5169_v56 }
 0x4b9   :  { %1723 = vmatprep.subr.bf16.mxu0 %v6466_v22  ;;  %1764 = vmatprep.subr.bf16.mxu1 %v6467_v23  ;;  %v6544_v22 = vld [vmem:[#allocation40_spill] sm:$0xff] }
 0x4bc   :  { %1724 = vmatpush1.bf16.msra.mxu0 %v6468_v24  ;;  %1765 = vmatpush1.bf16.msra.mxu1 %v6469_v25  ;;  %v6545_v24 = vld [vmem:[#allocation41_spill] sm:$0xff] }
 0x4bd   :  { %1725 = vmatprep.subr.bf16.mxu0 %v6470_v26  ;;  %1766 = vmatprep.subr.bf16.mxu1 %v6471_v27 }
 0x4c0   :  { %1726 = vmatpush1.bf16.msra.mxu0 %v6472_v29  ;;  %1767 = vmatpush1.bf16.msra.mxu1 %v6473_v30  ;;  %v6546_v29 = vld [vmem:[#allocation42_spill] sm:$0xff] }
 0x4c1   :  { %1727 = vmatprep.subr.bf16.mxu0 %v6474_v31  ;;  %1768 = vmatprep.subr.bf16.mxu1 %v6475_v32  ;;  %v6547_v31 = vld [vmem:[#allocation43_spill] sm:$0xff] }
 0x4c4   :  { %1728 = vmatpush1.bf16.msra.mxu0 %v6476_v33  ;;  %1769 = vmatpush1.bf16.msra.mxu1 %v6477_v34 }
 0x4c5   :  { %1729 = vmatprep.subr.bf16.mxu0 %v6478_v35  ;;  %1770 = vmatprep.subr.bf16.mxu1 %v6479_v36 }
 0x4c8   :  { %1730 = vmatpush1.bf16.msra.mxu0 %v6480_v38  ;;  %1771 = vmatpush1.bf16.msra.mxu1 %v6481_v39 }
 0x4c9   :  { %1731 = vmatprep.subr.bf16.mxu0 %v6482_v40  ;;  %1772 = vmatprep.subr.bf16.mxu1 %v6483_v41 }
 0x4cc   :  { %1732 = vmatpush1.bf16.msra.mxu0 %v6484_v42  ;;  %1773 = vmatpush1.bf16.msra.mxu1 %v6485_v43 }
 0x4cd   :  { %1733 = vmatprep.subr.bf16.mxu0 %v6486_v44  ;;  %1774 = vmatprep.subr.bf16.mxu1 %v6487_v45 }
 0x4d0   :  { %1734 = vmatpush1.bf16.msra.mxu0 %v6488_v47  ;;  %1775 = vmatpush1.bf16.msra.mxu1 %v6489_v48 }
 0x4d1   :  { %1830 = vmatprep.subr.bf16.mxu0 %v4804_v17  ;;  %1871 = vmatprep.subr.bf16.mxu1 %v4806_v6 }
 0x586   :  { %v1642_v57 = vpop.f32.mrb[36].mxu0  ;;  %v1683_v58 = vpop.f32.mrb[36].mxu1 }
 0x587   :  { %v1690_v23 = vadd.f32 %v1642_v57, %v6544_v22  ;;  %v1692_v25 = vadd.f32 %v1683_v58, %v6545_v24  ;;  %v1644_v26 = vpop.f32.mrb[37].mxu0  ;;  %v1685_v27 = vpop.f32.mrb[37].mxu1 }
 0x588   :  { %v1691_v30 = vadd.f32 %v1644_v26, %v6546_v29  ;;  %v1693_v32 = vadd.f32 %v1685_v27, %v6547_v31  ;;  %v1646_v33 = vpop.f32.mrb[38].mxu0  ;;  %v1687_v34 = vpop.f32.mrb[38].mxu1  ;;  %v6560_v27 = vld [vmem:[#allocation84_spill] sm:$0xff]  ;;  %v6561_v29 = vld [vmem:[#allocation85_spill] sm:$0xff]  ;;  %v6563_v31 = vld [vmem:[#allocation87_spill] sm:$0xff] }
 0x589   :  { %v3530_v35 = vmul.f32 -1.442695, %v1690_v23  ;;  %v1647_v36 = vpop.f32.mrb[39].mxu0  ;;  %v1688_v38 = vpop.f32.mrb[39].mxu1  ;;  %v3532_v6 = vmul.f32 -1.442695, %v1692_v25 }
 0x58a   :  { %v3531_v17 = vmul.f32 -1.442695, %v1691_v30  ;;  %v6562_v30 = vld [vmem:[#allocation86_spill] sm:$0xff]  ;;  %v6565_v33 = vld [vmem:[#allocation89_spill] sm:$0xff]  ;;  %v6568_v36 = vld [vmem:[#allocation11_spill] sm:$0xff] }
 0x58b   :  { %3884 = vpow2.f32 %v3530_v35  ;;  %v6566_v34 = vld [vmem:[#allocation90_spill] sm:$0xff] }
 0x58c   :  { %3886 = vpow2.f32 %v3531_v17  ;;  %v6567_v35 = vld [vmem:[#allocation10_spill] sm:$0xff] }
 0x58d   :  { %3888 = vtanh.f32 %v1693_v32  ;;  %v6564_v32 = vld [vmem:[#allocation88_spill] sm:$0xff] }
 0x58e   :  { %3890 = vpow2.f32 %v3532_v6 }
 0x595   :  { %v3885_v39 = vpop.eup %3884 }
 0x596   :  { %v1703_v40 = vadd.f32 1.0, %v3885_v39  ;;  %v3887_v41 = vpop.eup %3886 }
 0x597   :  { %v1704_v42 = vadd.f32 1.0, %v3887_v41  ;;  %v3889_v43 = vpop.eup %3888 }
 0x598   :  { %3892 = vrcp.f32 %v1703_v40  ;;  %v3891_v44 = vpop.eup %3890 }
 0x599   :  { %3894 = vrcp.f32 %v1704_v42  ;;  %v1705_v57 = vadd.f32 1.0, %v3891_v44 }
 0x59b   :  { %3896 = vrcp.f32 %v1705_v57 }
 0x5a2   :  { %v3893_v45 = vpop.eup %3892 }
 0x5a3   :  { %v1714_v47 = vmul.f32 %v3893_v45, %v3889_v43  ;;  %v3895_v48 = vpop.eup %3894 }
 0x5a4   :  { %v1713_v58 = vmul.f32 %v3895_v48, %v5003_v52  ;;  %v6551_v52 = vld [vmem:[#allocation75_spill] sm:$0xff] }
 0x5a5   :  { %v3897_v23 = vpop.eup %3896 }
 0x5a6   :  { %v5203_v22 = vadd.f32 %v1714_v47, %v1713_v58 }
 0x5a8   :  { %3898 = vtanh.f32 %v5203_v22 }
 0x5b2   :  { %v3899_v24 = vpop.eup %3898 }
 0x5b3   :  { %v1717_v25 = vmul.f32 %v3899_v24, %v3897_v23 }
 0x5b5   :  { %v5206_v26 = vpack.c.bf16 %v1717_v25, %v1717_v25 }
 0x5b7   :  { %1752 = vmatmul.mubr.bf16.vlgmr.msra.gmra.mrb[32].mxu0 %v5206_v26  ;;  %1793 = vmatmul.mubr.bf16.vlgmr.msra.gmra.mrb[32].mxu1 %v5206_v26 }
 0x5b8   :  { %1831 = vmatpush1.bf16.msra.mxu0 %v4808_v5  ;;  %1872 = vmatpush1.bf16.msra.mxu1 %v4810_v19  ;;  %v6548_v5 = vld [vmem:[#allocation72_spill] sm:$0xff]  ;;  %v6549_v19 = vld [vmem:[#allocation73_spill] sm:$0xff] }
 0x5b9   :  { %1832 = vmatprep.subr.bf16.mxu0 %v4816_v12  ;;  %1873 = vmatprep.subr.bf16.mxu1 %v6494_v59  ;;  %v6550_v12 = vld [vmem:[#allocation74_spill] sm:$0xff]  ;;  %v6552_v59 = vld [vmem:[#allocation76_spill] sm:$0xff] }
 0x5ba   :  { %1862 = vmatprep.mubr.bf16.mxu0 %v6431_v4  ;;  %1903 = vmatprep.mubr.bf16.mxu1 %v6431_v4 }
 0x5bc   :  { %1833 = vmatpush1.bf16.msra.mxu0 %v6495_v3  ;;  %1874 = vmatpush1.bf16.msra.mxu1 %v6496_v1  ;;  %v6553_v3 = vld [vmem:[#allocation77_spill] sm:$0xff]  ;;  %v6554_v1 = vld [vmem:[#allocation78_spill] sm:$0xff] }
 0x5bd   :  { %1834 = vmatprep.subr.bf16.mxu0 %v6497_v63  ;;  %1875 = vmatprep.subr.bf16.mxu1 %v6498_v2  ;;  %v6555_v63 = vld [vmem:[#allocation79_spill] sm:$0xff]  ;;  %v6556_v2 = vld [vmem:[#allocation80_spill] sm:$0xff] }
 0x5c0   :  { %1835 = vmatpush1.bf16.msra.mxu0 %v6499_v8  ;;  %1876 = vmatpush1.bf16.msra.mxu1 %v6500_v10  ;;  %v6557_v8 = vld [vmem:[#allocation81_spill] sm:$0xff]  ;;  %v6558_v10 = vld [vmem:[#allocation82_spill] sm:$0xff] }
 0x5c1   :  { %1836 = vmatprep.subr.bf16.mxu0 %v6501_v9  ;;  %1877 = vmatprep.subr.bf16.mxu1 %v6548_v5  ;;  %v6559_v9 = vld [vmem:[#allocation83_spill] sm:$0xff] }
 0x5c4   :  { %1837 = vmatpush1.bf16.msra.mxu0 %v6549_v19  ;;  %1878 = vmatpush1.bf16.msra.mxu1 %v6550_v12 }
 0x5c5   :  { %1838 = vmatprep.subr.bf16.mxu0 %v6551_v52  ;;  %1879 = vmatprep.subr.bf16.mxu1 %v6552_v59 }
 0x5c8   :  { %1839 = vmatpush1.bf16.msra.mxu0 %v6553_v3  ;;  %1880 = vmatpush1.bf16.msra.mxu1 %v6554_v1 }
 0x5c9   :  { %1840 = vmatprep.subr.bf16.mxu0 %v6555_v63  ;;  %1881 = vmatprep.subr.bf16.mxu1 %v6556_v2 }
 0x5cc   :  { %1841 = vmatpush1.bf16.msra.mxu0 %v6557_v8  ;;  %1882 = vmatpush1.bf16.msra.mxu1 %v6558_v10 }
 0x5cd   :  { %1842 = vmatprep.subr.bf16.mxu0 %v6559_v9  ;;  %1883 = vmatprep.subr.bf16.mxu1 %v6560_v27 }
 0x5d0   :  { %1843 = vmatpush1.bf16.msra.mxu0 %v6561_v29  ;;  %1884 = vmatpush1.bf16.msra.mxu1 %v6562_v30  ;;  %v6570_v30 = vld [vmem:[#allocation13_spill] sm:$0xff] }
 0x5d1   :  { %1844 = vmatprep.subr.bf16.mxu0 %v6563_v31  ;;  %1885 = vmatprep.subr.bf16.mxu1 %v6564_v32  ;;  %v6571_v31 = vld [vmem:[#allocation14_spill] sm:$0xff]  ;;  %v6572_v32 = vld [vmem:[#allocation15_spill] sm:$0xff] }
 0x5d4   :  { %1845 = vmatpush1.bf16.msra.mxu0 %v6565_v33  ;;  %1886 = vmatpush1.bf16.msra.mxu1 %v6566_v34  ;;  %v6573_v33 = vld [vmem:[#allocation16_spill] sm:$0xff]  ;;  %v6574_v34 = vld [vmem:[#allocation17_spill] sm:$0xff] }
 0x5d5   :  { %1920 = vmatprep.subr.bf16.mxu0 %v6567_v35  ;;  %1961 = vmatprep.subr.bf16.mxu1 %v6568_v36 }
 0x68a   :  { %v1753_v38 = vpop.f32.mrb[32].mxu0  ;;  %v1794_v17 = vpop.f32.mrb[32].mxu1 }
 0x68b   :  { %v3570_v6 = vadd.f32 %v1753_v38, %v4907_v28  ;;  %v1755_v39 = vpop.f32.mrb[33].mxu0  ;;  %v1796_v40 = vpop.f32.mrb[33].mxu1  ;;  %v3572_v57 = vadd.f32 %v1794_v17, %v4917_v0  ;;  %v6575_v38 = vld [vmem:[#allocation18_spill] sm:$0xff]  ;;  %v6576_v17 = vld [vmem:[#allocation19_spill] sm:$0xff] }
 0x68c   :  { %v3571_v41 = vadd.f32 %v1755_v39, %v6523_v46  ;;  %v1757_v42 = vpop.f32.mrb[34].mxu0  ;;  %v1798_v43 = vpop.f32.mrb[34].mxu1  ;;  %v3573_v58 = vadd.f32 %v1796_v40, %v4921_v7  ;;  %v6578_v39 = vld [vmem:[#allocation21_spill] sm:$0xff]  ;;  %v6579_v40 = vld [vmem:[#allocation22_spill] sm:$0xff] }
 0x68d   :  { %v3533_v44 = vmul.f32 -1.442695, %v3570_v6  ;;  %v1758_v45 = vpop.f32.mrb[35].mxu0  ;;  %v1799_v47 = vpop.f32.mrb[35].mxu1  ;;  %v3535_v23 = vmul.f32 -1.442695, %v3572_v57 }
 0x68e   :  { %v3534_v48 = vmul.f32 -1.442695, %v3571_v41  ;;  %v6577_v6 = vld [vmem:[#allocation20_spill] sm:$0xff]  ;;  %v6580_v41 = vld [vmem:[#allocation23_spill] sm:$0xff]  ;;  %v6582_v43 = vld [vmem:[#allocation25_spill] sm:$0xff] }
 0x68f   :  { %3900 = vpow2.f32 %v3533_v44  ;;  %v6581_v42 = vld [vmem:[#allocation24_spill] sm:$0xff]  ;;  %v6583_v44 = vld [vmem:[#allocation26_spill] sm:$0xff]  ;;  %v6584_v45 = vld [vmem:[#allocation27_spill] sm:$0xff] }
 0x690   :  { %3902 = vpow2.f32 %v3534_v48  ;;  %v6585_v47 = vld [vmem:[#allocation28_spill] sm:$0xff]  ;;  %v6586_v48 = vld [vmem:[#allocation29_spill] sm:$0xff] }
 0x691   :  { %3904 = vtanh.f32 %v3573_v58  ;;  %v5290_v57 = vld [vmem:[#allocation5 + $0x24] ss:$16 sps:$4 sm:$0xff]   ;;  %v5293_v58 = vld [vmem:[#allocation5 + $0x2c] ss:$16 sps:$4 sm:$0xff]  }
 0x692   :  { %3906 = vpow2.f32 %v3535_v23  ;;  %6587 = vst [vmem:[#allocation32_spill] sm:$0xff] %v5290_v57  ;;  %6588 = vst [vmem:[#allocation33_spill] sm:$0xff] %v5293_v58  ;;  %v5303_v23 = vld [vmem:[#allocation5 + $0x4c] ss:$16 sps:$4 sm:$0xff]  }
 0x693   :  { %6590 = vst [vmem:[#allocation35_spill] sm:$0xff] %v5303_v23 }
 0x699   :  { %v3901_v24 = vpop.eup %3900 }
 0x69a   :  { %v1814_v25 = vadd.f32 1.0, %v3901_v24  ;;  %v3903_v5 = vpop.eup %3902  ;;  %v5306_v24 = vld [vmem:[#allocation5 + $0x40] ss:$16 sps:$4 sm:$0xff]  }
 0x69b   :  { %v1815_v19 = vadd.f32 1.0, %v3903_v5  ;;  %v3905_v12 = vpop.eup %3904  ;;  %6591 = vst [vmem:[#allocation36_spill] sm:$0xff] %v5306_v24  ;;  %v5312_v5 = vld [vmem:[#allocation5 + $0x64] ss:$16 sps:$4 sm:$0xff]  }
 0x69c   :  { %3908 = vrcp.f32 %v1814_v25  ;;  %v3907_v52 = vpop.eup %3906  ;;  %v5309_v25 = vld [vmem:[#allocation5 + $0x48] ss:$16 sps:$4 sm:$0xff]   ;;  %6593 = vst [vmem:[#allocation38_spill] sm:$0xff] %v5312_v5 }
 0x69d   :  { %3910 = vrcp.f32 %v1815_v19  ;;  %v1816_v63 = vadd.f32 1.0, %v3907_v52  ;;  %6592 = vst [vmem:[#allocation37_spill] sm:$0xff] %v5309_v25  ;;  %v5315_v19 = vld [vmem:[#allocation5 + $0x6c] ss:$16 sps:$4 sm:$0xff]   ;;  %v5321_v52 = vld [vmem:[#allocation5 + $0x68] ss:$16 sps:$4 sm:$0xff]  }
 0x69e   :  { %6594 = vst [vmem:[#allocation39_spill] sm:$0xff] %v5315_v19  ;;  %6596 = vst [vmem:[#allocation65_spill] sm:$0xff] %v5321_v52 }
 0x69f   :  { %3912 = vrcp.f32 %v1816_v63  ;;  %v5333_v63 = vld [vmem:[#allocation5 + $0x88] ss:$16 sps:$4 sm:$0xff]  }
 0x6a0   :  { %6600 = vst [vmem:[#allocation69_spill] sm:$0xff] %v5333_v63 }
 0x6a6   :  { %v3909_v59 = vpop.eup %3908 }
 0x6a7   :  { %v1825_v3 = vmul.f32 %v3909_v59, %v3905_v12  ;;  %v3911_v1 = vpop.eup %3910  ;;  %v5318_v12 = vld [vmem:[#allocation5 + $0x60] ss:$16 sps:$4 sm:$0xff]   ;;  %v5324_v59 = vld [vmem:[#allocation5 + $0x84] ss:$16 sps:$4 sm:$0xff]  }
 0x6a8   :  { %v1824_v2 = vmul.f32 %v3911_v1, %v5053_v50  ;;  %v6569_v50 = vld [vmem:[#allocation12_spill] sm:$0xff]  ;;  %6595 = vst [vmem:[#allocation64_spill] sm:$0xff] %v5318_v12  ;;  %6597 = vst [vmem:[#allocation66_spill] sm:$0xff] %v5324_v59 }
 0x6a9   :  { %v3913_v10 = vpop.eup %3912  ;;  %v5330_v1 = vld [vmem:[#allocation5 + $0x80] ss:$16 sps:$4 sm:$0xff]  }
 0x6aa   :  { %v5249_v8 = vadd.f32 %v1825_v3, %v1824_v2  ;;  %v5327_v3 = vld [vmem:[#allocation5 + $0x8c] ss:$16 sps:$4 sm:$0xff]   ;;  %6599 = vst [vmem:[#allocation68_spill] sm:$0xff] %v5330_v1  ;;  %v5336_v2 = vld [vmem:[#allocation5 + $0xa4] ss:$16 sps:$4 sm:$0xff]  }
 0x6ab   :  { %6598 = vst [vmem:[#allocation67_spill] sm:$0xff] %v5327_v3  ;;  %6601 = vst [vmem:[#allocation70_spill] sm:$0xff] %v5336_v2 }
 0x6ac   :  { %3914 = vtanh.f32 %v5249_v8 }
 0x6b6   :  { %v3915_v9 = vpop.eup %3914 }
 0x6b7   :  { %v1828_v27 = vmul.f32 %v3915_v9, %v3913_v10  ;;  %v5339_v10 = vld [vmem:[#allocation5 + $0xac] ss:$16 sps:$4 sm:$0xff]   ;;  %v5342_v9 = vld [vmem:[#allocation5 + $0xa0] ss:$16 sps:$4 sm:$0xff]  }
 0x6b8   :  { %6602 = vst [vmem:[#allocation71_spill] sm:$0xff] %v5339_v10  ;;  %6603 = vst [vmem:[#allocation91_spill] sm:$0xff] %v5342_v9 }
 0x6b9   :  { %v1829_v29 = vpack.c.bf16 %v1828_v27, %v1828_v27  ;;  %v5345_v27 = vld [vmem:[#allocation5 + $0xa8] ss:$16 sps:$4 sm:$0xff]  }
 0x6ba   :  { %6604 = vst [vmem:[#allocation40_spill] sm:$0xff] %v5345_v27 }
 0x6bb   :  { %1863 = vmatmul.mubr.bf16.vlgmr.msra.gmra.mrb[40].mxu0 %v1829_v29  ;;  %1904 = vmatmul.mubr.bf16.vlgmr.msra.gmra.mrb[40].mxu1 %v1829_v29  ;;  %v5348_v29 = vld [vmem:[#allocation5 + $0xc4] ss:$16 sps:$4 sm:$0xff]  }
 0x6bc   :  { %1921 = vmatpush1.bf16.msra.mxu0 %v5056_v18  ;;  %1962 = vmatpush1.bf16.msra.mxu1 %v5059_v53  ;;  %6605 = vst [vmem:[#allocation41_spill] sm:$0xff] %v5348_v29 }
 0x6bd   :  { %1922 = vmatprep.subr.bf16.mxu0 %v5062_v37  ;;  %1963 = vmatprep.subr.bf16.mxu1 %v5065_v55 }
 0x6be   :  { %1952 = vmatprep.mubr.bf16.mxu0 %v6431_v4  ;;  %1993 = vmatprep.mubr.bf16.mxu1 %v6431_v4 }
 0x6c0   :  { %1923 = vmatpush1.bf16.msra.mxu0 %v5070_v49  ;;  %1964 = vmatpush1.bf16.msra.mxu1 %v5073_v21 }
 0x6c1   :  { %1924 = vmatprep.subr.bf16.mxu0 %v5076_v13  ;;  %1965 = vmatprep.subr.bf16.mxu1 %v5079_v51 }
 0x6c4   :  { %1925 = vmatpush1.bf16.msra.mxu0 %v5082_v15  ;;  %1966 = vmatpush1.bf16.msra.mxu1 %v5085_v62 }
 0x6c5   :  { %1926 = vmatprep.subr.bf16.mxu0 %v5088_v54  ;;  %1967 = vmatprep.subr.bf16.mxu1 %v6569_v50 }
 0x6c8   :  { %1927 = vmatpush1.bf16.msra.mxu0 %v6570_v30  ;;  %1968 = vmatpush1.bf16.msra.mxu1 %v6571_v31 }
 0x6c9   :  { %1928 = vmatprep.subr.bf16.mxu0 %v6572_v32  ;;  %1969 = vmatprep.subr.bf16.mxu1 %v6573_v33 }
 0x6cc   :  { %1929 = vmatpush1.bf16.msra.mxu0 %v6574_v34  ;;  %1970 = vmatpush1.bf16.msra.mxu1 %v6575_v38 }
 0x6cd   :  { %1930 = vmatprep.subr.bf16.mxu0 %v6576_v17  ;;  %1971 = vmatprep.subr.bf16.mxu1 %v6577_v6 }
 0x6d0   :  { %1931 = vmatpush1.bf16.msra.mxu0 %v6578_v39  ;;  %1972 = vmatpush1.bf16.msra.mxu1 %v6579_v40 }
 0x6d1   :  { %1932 = vmatprep.subr.bf16.mxu0 %v6580_v41  ;;  %1973 = vmatprep.subr.bf16.mxu1 %v6581_v42 }
 0x6d4   :  { %1933 = vmatpush1.bf16.msra.mxu0 %v6582_v43  ;;  %1974 = vmatpush1.bf16.msra.mxu1 %v6583_v44 }
 0x6d5   :  { %1934 = vmatprep.subr.bf16.mxu0 %v5136_v60  ;;  %1975 = vmatprep.subr.bf16.mxu1 %v6584_v45 }
 0x6d8   :  { %1935 = vmatpush1.bf16.msra.mxu0 %v6585_v47  ;;  %1976 = vmatpush1.bf16.msra.mxu1 %v5145_v16 }
 0x6d9   :  { %2031 = vmatprep.subr.bf16.mxu0 %v5148_v14  ;;  %2072 = vmatprep.subr.bf16.mxu1 %v6586_v48 }
 0x6db   :  { %1953 = vmatmul.mubr.bf16.vlgmr.msra.gmra.mrb[44].mxu0 %v5206_v26  ;;  %1994 = vmatmul.mubr.bf16.vlgmr.msra.gmra.mrb[44].mxu1 %v5206_v26  ;;  %v5300_v26 = vld [vmem:[#allocation5 + $0x44] ss:$16 sps:$4 sm:$0xff]  }
 0x6dc   :  { %2032 = vmatpush1.bf16.msra.mxu0 %v5156_v20  ;;  %2073 = vmatpush1.bf16.msra.mxu1 %v5159_v61  ;;  %6589 = vst [vmem:[#allocation34_spill] sm:$0xff] %v5300_v26 }
 0x6dd   :  { %2033 = vmatprep.subr.bf16.mxu0 %v5290_v57  ;;  %2074 = vmatprep.subr.bf16.mxu1 %v5293_v58 }
 0x6de   :  { %2063 = vmatprep.mubr.bf16.mxu0 %v6431_v4  ;;  %2104 = vmatprep.mubr.bf16.mxu1 %v6431_v4 }
 0x6e0   :  { %2034 = vmatpush1.bf16.msra.mxu0 %v5166_v11  ;;  %2075 = vmatpush1.bf16.msra.mxu1 %v5169_v56 }
 0x6e1   :  { %2035 = vmatprep.subr.bf16.mxu0 %v5300_v26  ;;  %2076 = vmatprep.subr.bf16.mxu1 %v5303_v23 }
 0x6e4   :  { %2036 = vmatpush1.bf16.msra.mxu0 %v5306_v24  ;;  %2077 = vmatpush1.bf16.msra.mxu1 %v5309_v25  ;;  %v6618_v25 = vld [vmem:[#allocation47_spill] sm:$0xff] }
 0x6e5   :  { %2037 = vmatprep.subr.bf16.mxu0 %v5312_v5  ;;  %2078 = vmatprep.subr.bf16.mxu1 %v5315_v19  ;;  %v6617_v19 = vld [vmem:[#allocation46_spill] sm:$0xff] }
 0x6e8   :  { %2038 = vmatpush1.bf16.msra.mxu0 %v5318_v12  ;;  %2079 = vmatpush1.bf16.msra.mxu1 %v5321_v52 }
 0x6e9   :  { %2039 = vmatprep.subr.bf16.mxu0 %v5324_v59  ;;  %2080 = vmatprep.subr.bf16.mxu1 %v5327_v3  ;;  %v6615_v3 = vld [vmem:[#allocation44_spill] sm:$0xff]  ;;  %v6616_v59 = vld [vmem:[#allocation45_spill] sm:$0xff] }
 0x6ec   :  { %2040 = vmatpush1.bf16.msra.mxu0 %v5330_v1  ;;  %2081 = vmatpush1.bf16.msra.mxu1 %v5333_v63  ;;  %v5351_v63 = vld [vmem:[#allocation5 + $0xcc] ss:$16 sps:$4 sm:$0xff]  }
 0x6ed   :  { %2041 = vmatprep.subr.bf16.mxu0 %v5336_v2  ;;  %2082 = vmatprep.subr.bf16.mxu1 %v5339_v10  ;;  %6606 = vst [vmem:[#allocation42_spill] sm:$0xff] %v5351_v63  ;;  %v5354_v2 = vld [vmem:[#allocation5 + $0xc0] ss:$16 sps:$4 sm:$0xff]   ;;  %v5357_v10 = vld [vmem:[#allocation5 + $0xc8] ss:$16 sps:$4 sm:$0xff]  }
 0x6ee   :  { %6607 = vst [vmem:[#allocation43_spill] sm:$0xff] %v5354_v2  ;;  %6608 = vst [vmem:[#allocation72_spill] sm:$0xff] %v5357_v10 }
 0x6f0   :  { %2042 = vmatpush1.bf16.msra.mxu0 %v5342_v9  ;;  %2083 = vmatpush1.bf16.msra.mxu1 %v5345_v27  ;;  %v5360_v9 = vld [vmem:[#allocation5 + $0xe4] ss:$16 sps:$4 sm:$0xff]   ;;  %v5363_v27 = vld [vmem:[#allocation5 + $0xec] ss:$16 sps:$4 sm:$0xff]  }
 0x6f1   :  { %2043 = vmatprep.subr.bf16.mxu0 %v5348_v29  ;;  %2084 = vmatprep.subr.bf16.mxu1 %v5351_v63  ;;  %6609 = vst [vmem:[#allocation73_spill] sm:$0xff] %v5360_v9  ;;  %6610 = vst [vmem:[#allocation74_spill] sm:$0xff] %v5363_v27  ;;  %v5366_v29 = vld [vmem:[#allocation5 + $0xe0] ss:$16 sps:$4 sm:$0xff]   ;;  %v5369_v63 = vld [vmem:[#allocation5 + $0xe8] ss:$16 sps:$4 sm:$0xff]  }
 0x6f2   :  { %6611 = vst [vmem:[#allocation75_spill] sm:$0xff] %v5366_v29  ;;  %6612 = vst [vmem:[#allocation76_spill] sm:$0xff] %v5369_v63 }
 0x6f4   :  { %2044 = vmatpush1.bf16.msra.mxu0 %v5354_v2  ;;  %2085 = vmatpush1.bf16.msra.mxu1 %v5357_v10  ;;  %v5372_v2 = vld [vmem:[#allocation7 + $0x4] ss:$16 sps:$4 sm:$0xff]   ;;  %v5375_v10 = vld [vmem:[#allocation7 + $0xc] ss:$16 sps:$4 sm:$0xff]  }
 0x6f5   :  { %2045 = vmatprep.subr.bf16.mxu0 %v5360_v9  ;;  %2086 = vmatprep.subr.bf16.mxu1 %v5363_v27  ;;  %6613 = vst [vmem:[#allocation77_spill] sm:$0xff] %v5372_v2  ;;  %6614 = vst [vmem:[#allocation78_spill] sm:$0xff] %v5375_v10 }
 0x6f8   :  { %2046 = vmatpush1.bf16.msra.mxu0 %v5366_v29  ;;  %2087 = vmatpush1.bf16.msra.mxu1 %v5369_v63 }
 0x6f9   :  { %2142 = vmatprep.subr.bf16.mxu0 %v5372_v2  ;;  %2183 = vmatprep.subr.bf16.mxu1 %v5375_v10 }
 0x7ae   :  { %v1954_v9 = vpop.f32.mrb[44].mxu0  ;;  %v1995_v1 = vpop.f32.mrb[44].mxu1 }
 0x7af   :  { %v2002_v27 = vadd.f32 %v1954_v9, %v6615_v3  ;;  %v2004_v52 = vadd.f32 %v1995_v1, %v6616_v59  ;;  %v1956_v12 = vpop.f32.mrb[45].mxu0  ;;  %v1997_v29 = vpop.f32.mrb[45].mxu1  ;;  %v5407_v9 = vld [vmem:[#allocation7 + $0x28] ss:$16 sps:$4 sm:$0xff]  }
 0x7b0   :  { %v2003_v5 = vadd.f32 %v1956_v12, %v6617_v19  ;;  %v2005_v63 = vadd.f32 %v1997_v29, %v6618_v25  ;;  %v1958_v24 = vpop.f32.mrb[46].mxu0  ;;  %v1999_v23 = vpop.f32.mrb[46].mxu1  ;;  %6619 = vst [vmem:[#allocation79_spill] sm:$0xff] %v5407_v9  ;;  %v5413_v29 = vld [vmem:[#allocation7 + $0x4c] ss:$16 sps:$4 sm:$0xff]  }
 0x7b1   :  { %v3536_v26 = vmul.f32 -1.442695, %v2002_v27  ;;  %v1959_v2 = vpop.f32.mrb[47].mxu0  ;;  %v2000_v56 = vpop.f32.mrb[47].mxu1  ;;  %v3538_v10 = vmul.f32 -1.442695, %v2004_v52 }
 0x7b2   :  { %v3537_v11 = vmul.f32 -1.442695, %v2003_v5  ;;  %v5399_v2 = vld [vmem:[#allocation7 + $0x2c] ss:$16 sps:$4 sm:$0xff]   ;;  %v5410_v27 = vld [vmem:[#allocation7 + $0x44] ss:$16 sps:$4 sm:$0xff]  }
 0x7b3   :  { %3916 = vpow2.f32 %v3536_v26  ;;  %6620 = vst [vmem:[#allocation80_spill] sm:$0xff] %v5410_v27  ;;  %6621 = vst [vmem:[#allocation81_spill] sm:$0xff] %v5413_v29 }
 0x7b4   :  { %3918 = vpow2.f32 %v3537_v11 }
 0x7b5   :  { %3920 = vtanh.f32 %v2005_v63  ;;  %v5393_v63 = vld [vmem:[#allocation7 + $0x8] ss:$16 sps:$4 sm:$0xff]  }
 0x7b6   :  { %3922 = vpow2.f32 %v3538_v10  ;;  %v5404_v10 = vld [vmem:[#allocation7 + $0x20] ss:$16 sps:$4 sm:$0xff]  }
 0x7bd   :  { %v3917_v58 = vpop.eup %3916 }
 0x7be   :  { %v2015_v57 = vadd.f32 1.0, %v3917_v58  ;;  %v3919_v3 = vpop.eup %3918 }
 0x7bf   :  { %v2016_v59 = vadd.f32 1.0, %v3919_v3  ;;  %v3921_v19 = vpop.eup %3920  ;;  %v5416_v3 = vld [vmem:[#allocation7 + $0x40] ss:$16 sps:$4 sm:$0xff]  }
 0x7c0   :  { %3924 = vrcp.f32 %v2015_v57  ;;  %v3923_v12 = vpop.eup %3922  ;;  %v5390_v57 = vld [vmem:[#allocation7] ss:$16 sps:$4 sm:$0xff]   ;;  %6622 = vst [vmem:[#allocation82_spill] sm:$0xff] %v5416_v3 }
 0x7c1   :  { %3926 = vrcp.f32 %v2016_v59  ;;  %v2017_v1 = vadd.f32 1.0, %v3923_v12  ;;  %v5419_v59 = vld [vmem:[#allocation7 + $0x48] ss:$16 sps:$4 sm:$0xff]   ;;  %v5425_v12 = vld [vmem:[#allocation7 + $0x6c] ss:$16 sps:$4 sm:$0xff]  }
 0x7c2   :  { %6623 = vst [vmem:[#allocation83_spill] sm:$0xff] %v5419_v59  ;;  %6625 = vst [vmem:[#allocation85_spill] sm:$0xff] %v5425_v12 }
 0x7c3   :  { %3928 = vrcp.f32 %v2017_v1  ;;  %v5437_v1 = vld [vmem:[#allocation7 + $0x8c] ss:$16 sps:$4 sm:$0xff]  }
 0x7c4   :  { %6629 = vst [vmem:[#allocation89_spill] sm:$0xff] %v5437_v1 }
 0x7ca   :  { %v3925_v25 = vpop.eup %3924 }
 0x7cb   :  { %v2026_v24 = vmul.f32 %v3925_v25, %v3921_v19  ;;  %v3927_v23 = vpop.eup %3926  ;;  %v5422_v19 = vld [vmem:[#allocation7 + $0x64] ss:$16 sps:$4 sm:$0xff]   ;;  %v5428_v25 = vld [vmem:[#allocation7 + $0x60] ss:$16 sps:$4 sm:$0xff]  }
 0x7cc   :  { %v2025_v56 = vmul.f32 %v3927_v23, %v5203_v22  ;;  %v5396_v22 = vld [vmem:[#allocation7 + $0x24] ss:$16 sps:$4 sm:$0xff]   ;;  %6624 = vst [vmem:[#allocation84_spill] sm:$0xff] %v5422_v19  ;;  %6626 = vst [vmem:[#allocation86_spill] sm:$0xff] %v5428_v25 }
 0x7cd   :  { %v3929_v11 = vpop.eup %3928  ;;  %v5434_v23 = vld [vmem:[#allocation7 + $0x84] ss:$16 sps:$4 sm:$0xff]  }
 0x7ce   :  { %v5383_v5 = vadd.f32 %v2026_v24, %v2025_v56  ;;  %v5431_v24 = vld [vmem:[#allocation7 + $0x68] ss:$16 sps:$4 sm:$0xff]   ;;  %6628 = vst [vmem:[#allocation88_spill] sm:$0xff] %v5434_v23  ;;  %v5440_v56 = vld [vmem:[#allocation7 + $0x80] ss:$16 sps:$4 sm:$0xff]  }
 0x7cf   :  { %6627 = vst [vmem:[#allocation87_spill] sm:$0xff] %v5431_v24  ;;  %6630 = vst [vmem:[#allocation90_spill] sm:$0xff] %v5440_v56 }
 0x7d0   :  { %3930 = vtanh.f32 %v5383_v5 }
 0x7da   :  { %v3931_v58 = vpop.eup %3930 }
 0x7db   :  { %v2029_v26 = vmul.f32 %v3931_v58, %v3929_v11  ;;  %v5443_v11 = vld [vmem:[#allocation7 + $0x88] ss:$16 sps:$4 sm:$0xff]   ;;  %v5446_v58 = vld [vmem:[#allocation7 + $0xa4] ss:$16 sps:$4 sm:$0xff]  }
 0x7dc   :  { %6631 = vst [vmem:[#allocation10_spill] sm:$0xff] %v5443_v11  ;;  %6632 = vst [vmem:[#allocation11_spill] sm:$0xff] %v5446_v58 }
 0x7dd   :  { %v5386_v52 = vpack.c.bf16 %v2029_v26, %v2029_v26  ;;  %v5449_v26 = vld [vmem:[#allocation7 + $0xac] ss:$16 sps:$4 sm:$0xff]  }
 0x7de   :  { %6633 = vst [vmem:[#allocation12_spill] sm:$0xff] %v5449_v26 }
 0x7df   :  { %2064 = vmatmul.mubr.bf16.vlgmr.msra.gmra.mrb[40].mxu0 %v5386_v52  ;;  %2105 = vmatmul.mubr.bf16.vlgmr.msra.gmra.mrb[40].mxu1 %v5386_v52 }
 0x7e0   :  { %2143 = vmatpush1.bf16.msra.mxu0 %v5390_v57  ;;  %2184 = vmatpush1.bf16.msra.mxu1 %v5393_v63 }
 0x7e1   :  { %2144 = vmatprep.subr.bf16.mxu0 %v5396_v22  ;;  %2185 = vmatprep.subr.bf16.mxu1 %v5399_v2 }
 0x7e2   :  { %2174 = vmatprep.mubr.bf16.mxu0 %v6431_v4  ;;  %2215 = vmatprep.mubr.bf16.mxu1 %v6431_v4 }
 0x7e4   :  { %2145 = vmatpush1.bf16.msra.mxu0 %v5404_v10  ;;  %2186 = vmatpush1.bf16.msra.mxu1 %v5407_v9 }
 0x7e5   :  { %2146 = vmatprep.subr.bf16.mxu0 %v5410_v27  ;;  %2187 = vmatprep.subr.bf16.mxu1 %v5413_v29 }
 0x7e8   :  { %2147 = vmatpush1.bf16.msra.mxu0 %v5416_v3  ;;  %2188 = vmatpush1.bf16.msra.mxu1 %v5419_v59 }
 0x7e9   :  { %2148 = vmatprep.subr.bf16.mxu0 %v5422_v19  ;;  %2189 = vmatprep.subr.bf16.mxu1 %v5425_v12 }
 0x7ec   :  { %2149 = vmatpush1.bf16.msra.mxu0 %v5428_v25  ;;  %2190 = vmatpush1.bf16.msra.mxu1 %v5431_v24 }
 0x7ed   :  { %2150 = vmatprep.subr.bf16.mxu0 %v5434_v23  ;;  %2191 = vmatprep.subr.bf16.mxu1 %v5437_v1  ;;  %v5452_v23 = vld [vmem:[#allocation7 + $0xa0] ss:$16 sps:$4 sm:$0xff]   ;;  %v5455_v1 = vld [vmem:[#allocation7 + $0xa8] ss:$16 sps:$4 sm:$0xff]  }
 0x7ee   :  { %6634 = vst [vmem:[#allocation13_spill] sm:$0xff] %v5452_v23  ;;  %6635 = vst [vmem:[#allocation14_spill] sm:$0xff] %v5455_v1 }
 0x7f0   :  { %2151 = vmatpush1.bf16.msra.mxu0 %v5440_v56  ;;  %2192 = vmatpush1.bf16.msra.mxu1 %v5443_v11  ;;  %v5458_v56 = vld [vmem:[#allocation7 + $0xc4] ss:$16 sps:$4 sm:$0xff]   ;;  %v5461_v11 = vld [vmem:[#allocation7 + $0xcc] ss:$16 sps:$4 sm:$0xff]  }
 0x7f1   :  { %2152 = vmatprep.subr.bf16.mxu0 %v5446_v58  ;;  %2193 = vmatprep.subr.bf16.mxu1 %v5449_v26  ;;  %6636 = vst [vmem:[#allocation15_spill] sm:$0xff] %v5458_v56  ;;  %6637 = vst [vmem:[#allocation16_spill] sm:$0xff] %v5461_v11  ;;  %v5464_v58 = vld [vmem:[#allocation7 + $0xc0] ss:$16 sps:$4 sm:$0xff]   ;;  %v5467_v26 = vld [vmem:[#allocation7 + $0xc8] ss:$16 sps:$4 sm:$0xff]  }
 0x7f2   :  { %6638 = vst [vmem:[#allocation17_spill] sm:$0xff] %v5464_v58  ;;  %6639 = vst [vmem:[#allocation18_spill] sm:$0xff] %v5467_v26 }
 0x7f4   :  { %2153 = vmatpush1.bf16.msra.mxu0 %v5452_v23  ;;  %2194 = vmatpush1.bf16.msra.mxu1 %v5455_v1  ;;  %v5470_v23 = vld [vmem:[#allocation7 + $0xe4] ss:$16 sps:$4 sm:$0xff]   ;;  %v5473_v1 = vld [vmem:[#allocation7 + $0xec] ss:$16 sps:$4 sm:$0xff]  }
 0x7f5   :  { %2154 = vmatprep.subr.bf16.mxu0 %v5458_v56  ;;  %2195 = vmatprep.subr.bf16.mxu1 %v5461_v11  ;;  %6640 = vst [vmem:[#allocation19_spill] sm:$0xff] %v5470_v23  ;;  %6641 = vst [vmem:[#allocation20_spill] sm:$0xff] %v5473_v1  ;;  %v5476_v56 = vld [vmem:[#allocation7 + $0xe0] ss:$16 sps:$4 sm:$0xff]   ;;  %v5479_v11 = vld [vmem:[#allocation7 + $0xe8] ss:$16 sps:$4 sm:$0xff]  }
 0x7f6   :  { %6642 = vst [vmem:[#allocation21_spill] sm:$0xff] %v5476_v56  ;;  %6643 = vst [vmem:[#allocation22_spill] sm:$0xff] %v5479_v11 }
 0x7f8   :  { %2155 = vmatpush1.bf16.msra.mxu0 %v5464_v58  ;;  %2196 = vmatpush1.bf16.msra.mxu1 %v5467_v26 }
 0x7f9   :  { %2156 = vmatprep.subr.bf16.mxu0 %v5470_v23  ;;  %2197 = vmatprep.subr.bf16.mxu1 %v5473_v1 }
 0x7fc   :  { %2157 = vmatpush1.bf16.msra.mxu0 %v5476_v56  ;;  %2198 = vmatpush1.bf16.msra.mxu1 %v5479_v11 }
 0x7fd   :  { %2232 = vmatprep.subr.bf16.mxu0 %v6567_v35  ;;  %2273 = vmatprep.subr.bf16.mxu1 %v6568_v36 }
 0x8b2   :  { %v2065_v26 = vpop.f32.mrb[40].mxu0  ;;  %v2106_v58 = vpop.f32.mrb[40].mxu1 }
 0x8b3   :  { %v3574_v23 = vadd.f32 %v2065_v26, %v4907_v28  ;;  %v2067_v24 = vpop.f32.mrb[41].mxu0  ;;  %v2108_v25 = vpop.f32.mrb[41].mxu1  ;;  %v3576_v35 = vadd.f32 %v2106_v58, %v4917_v0 }
 0x8b4   :  { %v3575_v1 = vadd.f32 %v2067_v24, %v6523_v46  ;;  %v2069_v12 = vpop.f32.mrb[42].mxu0  ;;  %v2110_v19 = vpop.f32.mrb[42].mxu1  ;;  %v3577_v36 = vadd.f32 %v2108_v25, %v4921_v7 }
 0x8b5   :  { %v3539_v59 = vmul.f32 -1.442695, %v3574_v23  ;;  %v2070_v56 = vpop.f32.mrb[43].mxu0  ;;  %v2111_v3 = vpop.f32.mrb[43].mxu1  ;;  %v3541_v11 = vmul.f32 -1.442695, %v3576_v35 }
 0x8b6   :  { %v3540_v29 = vmul.f32 -1.442695, %v3575_v1 }
 0x8b7   :  { %3932 = vpow2.f32 %v3539_v59 }
 0x8b8   :  { %3934 = vpow2.f32 %v3540_v29 }
 0x8b9   :  { %3936 = vtanh.f32 %v3577_v36  ;;  %v6676_v36 = vld [vmem:[#allocation50_spill] sm:$0xff] }
 0x8ba   :  { %3938 = vpow2.f32 %v3541_v11 }
 0x8c1   :  { %v3933_v27 = vpop.eup %3932 }
 0x8c2   :  { %v2126_v9 = vadd.f32 1.0, %v3933_v27  ;;  %v3935_v26 = vpop.eup %3934 }
 0x8c3   :  { %v2127_v24 = vadd.f32 1.0, %v3935_v26  ;;  %v3937_v19 = vpop.eup %3936 }
 0x8c4   :  { %3940 = vrcp.f32 %v2126_v9  ;;  %v3939_v12 = vpop.eup %3938 }
 0x8c5   :  { %3942 = vrcp.f32 %v2127_v24  ;;  %v2128_v59 = vadd.f32 1.0, %v3939_v12  ;;  %v6677_v24 = vld [vmem:[#allocation51_spill] sm:$0xff] }
 0x8c7   :  { %3944 = vrcp.f32 %v2128_v59 }
 0x8ce   :  { %v3941_v23 = vpop.eup %3940 }
 0x8cf   :  { %v2137_v3 = vmul.f32 %v3941_v23, %v3937_v19  ;;  %v3943_v1 = vpop.eup %3942 }
 0x8d0   :  { %v2136_v29 = vmul.f32 %v3943_v1, %v5249_v8  ;;  %v6660_v8 = vld [vmem:[#allocation70_spill] sm:$0xff] }
 0x8d1   :  { %v3945_v27 = vpop.eup %3944 }
 0x8d2   :  { %v5489_v56 = vadd.f32 %v2137_v3, %v2136_v29 }
 0x8d4   :  { %3946 = vtanh.f32 %v5489_v56 }
 0x8de   :  { %v3947_v25 = vpop.eup %3946 }
 0x8df   :  { %v2140_v58 = vmul.f32 %v3947_v25, %v3945_v27 }
 0x8e1   :  { %v2141_v11 = vpack.c.bf16 %v2140_v58, %v2140_v58 }
 0x8e3   :  { %2175 = vmatmul.mubr.bf16.vlgmr.msra.gmra.mrb[48].mxu0 %v2141_v11  ;;  %2216 = vmatmul.mubr.bf16.vlgmr.msra.gmra.mrb[48].mxu1 %v2141_v11 }
 0x8e4   :  { %2233 = vmatpush1.bf16.msra.mxu0 %v5056_v18  ;;  %2274 = vmatpush1.bf16.msra.mxu1 %v5059_v53  ;;  %v6644_v18 = vld [vmem:[#allocation32_spill] sm:$0xff]  ;;  %v6645_v53 = vld [vmem:[#allocation33_spill] sm:$0xff] }
 0x8e5   :  { %2234 = vmatprep.subr.bf16.mxu0 %v5062_v37  ;;  %2275 = vmatprep.subr.bf16.mxu1 %v5065_v55  ;;  %v6646_v37 = vld [vmem:[#allocation30_spill] sm:$0xff]  ;;  %v6647_v55 = vld [vmem:[#allocation31_spill] sm:$0xff] }
 0x8e6   :  { %2264 = vmatprep.mubr.bf16.mxu0 %v6431_v4  ;;  %2305 = vmatprep.mubr.bf16.mxu1 %v6431_v4 }
 0x8e8   :  { %2235 = vmatpush1.bf16.msra.mxu0 %v5070_v49  ;;  %2276 = vmatpush1.bf16.msra.mxu1 %v5073_v21  ;;  %v6648_v49 = vld [vmem:[#allocation34_spill] sm:$0xff]  ;;  %v6649_v21 = vld [vmem:[#allocation35_spill] sm:$0xff] }
 0x8e9   :  { %2236 = vmatprep.subr.bf16.mxu0 %v5076_v13  ;;  %2277 = vmatprep.subr.bf16.mxu1 %v5079_v51  ;;  %v6650_v13 = vld [vmem:[#allocation36_spill] sm:$0xff]  ;;  %v6651_v51 = vld [vmem:[#allocation37_spill] sm:$0xff] }
 0x8ec   :  { %2237 = vmatpush1.bf16.msra.mxu0 %v5082_v15  ;;  %2278 = vmatpush1.bf16.msra.mxu1 %v5085_v62  ;;  %v6652_v15 = vld [vmem:[#allocation38_spill] sm:$0xff]  ;;  %v6653_v62 = vld [vmem:[#allocation39_spill] sm:$0xff] }
 0x8ed   :  { %2238 = vmatprep.subr.bf16.mxu0 %v5088_v54  ;;  %2279 = vmatprep.subr.bf16.mxu1 %v6569_v50  ;;  %v6654_v54 = vld [vmem:[#allocation64_spill] sm:$0xff]  ;;  %v6661_v50 = vld [vmem:[#allocation71_spill] sm:$0xff] }
 0x8f0   :  { %2239 = vmatpush1.bf16.msra.mxu0 %v6570_v30  ;;  %2280 = vmatpush1.bf16.msra.mxu1 %v6571_v31  ;;  %v6662_v30 = vld [vmem:[#allocation91_spill] sm:$0xff]  ;;  %v6663_v31 = vld [vmem:[#allocation40_spill] sm:$0xff] }
 0x8f1   :  { %2240 = vmatprep.subr.bf16.mxu0 %v6572_v32  ;;  %2281 = vmatprep.subr.bf16.mxu1 %v6573_v33  ;;  %v6664_v32 = vld [vmem:[#allocation41_spill] sm:$0xff]  ;;  %v6665_v33 = vld [vmem:[#allocation42_spill] sm:$0xff] }
 0x8f4   :  { %2241 = vmatpush1.bf16.msra.mxu0 %v6574_v34  ;;  %2282 = vmatpush1.bf16.msra.mxu1 %v6575_v38  ;;  %v6666_v34 = vld [vmem:[#allocation43_spill] sm:$0xff]  ;;  %v6667_v38 = vld [vmem:[#allocation72_spill] sm:$0xff] }
 0x8f5   :  { %2242 = vmatprep.subr.bf16.mxu0 %v6576_v17  ;;  %2283 = vmatprep.subr.bf16.mxu1 %v6577_v6  ;;  %v6668_v17 = vld [vmem:[#allocation73_spill] sm:$0xff]  ;;  %v6669_v6 = vld [vmem:[#allocation74_spill] sm:$0xff] }
 0x8f8   :  { %2243 = vmatpush1.bf16.msra.mxu0 %v6578_v39  ;;  %2284 = vmatpush1.bf16.msra.mxu1 %v6579_v40  ;;  %v6670_v39 = vld [vmem:[#allocation75_spill] sm:$0xff]  ;;  %v6671_v40 = vld [vmem:[#allocation76_spill] sm:$0xff] }
 0x8f9   :  { %2244 = vmatprep.subr.bf16.mxu0 %v6580_v41  ;;  %2285 = vmatprep.subr.bf16.mxu1 %v6581_v42  ;;  %v6672_v41 = vld [vmem:[#allocation77_spill] sm:$0xff]  ;;  %v6673_v42 = vld [vmem:[#allocation78_spill] sm:$0xff] }
 0x8fc   :  { %2245 = vmatpush1.bf16.msra.mxu0 %v6582_v43  ;;  %2286 = vmatpush1.bf16.msra.mxu1 %v6583_v44 }
 0x8fd   :  { %2246 = vmatprep.subr.bf16.mxu0 %v5136_v60  ;;  %2287 = vmatprep.subr.bf16.mxu1 %v6584_v45  ;;  %v6657_v60 = vld [vmem:[#allocation67_spill] sm:$0xff]  ;;  %v6674_v45 = vld [vmem:[#allocation48_spill] sm:$0xff] }
 0x900   :  { %2247 = vmatpush1.bf16.msra.mxu0 %v6585_v47  ;;  %2288 = vmatpush1.bf16.msra.mxu1 %v5145_v16  ;;  %v6655_v16 = vld [vmem:[#allocation65_spill] sm:$0xff] }
 0x901   :  { %2343 = vmatprep.subr.bf16.mxu0 %v5148_v14  ;;  %2384 = vmatprep.subr.bf16.mxu1 %v6586_v48  ;;  %v6656_v14 = vld [vmem:[#allocation66_spill] sm:$0xff]  ;;  %v6675_v48 = vld [vmem:[#allocation49_spill] sm:$0xff] }
 0x903   :  { %2265 = vmatmul.mubr.bf16.vlgmr.msra.gmra.mrb[52].mxu0 %v5386_v52  ;;  %2306 = vmatmul.mubr.bf16.vlgmr.msra.gmra.mrb[52].mxu1 %v5386_v52 }
 0x904   :  { %2344 = vmatpush1.bf16.msra.mxu0 %v5156_v20  ;;  %2385 = vmatpush1.bf16.msra.mxu1 %v5159_v61  ;;  %v6658_v20 = vld [vmem:[#allocation68_spill] sm:$0xff]  ;;  %v6659_v61 = vld [vmem:[#allocation69_spill] sm:$0xff] }
 0x905   :  { %2345 = vmatprep.subr.bf16.mxu0 %v6644_v18  ;;  %2386 = vmatprep.subr.bf16.mxu1 %v6645_v53 }
 0x906   :  { %2375 = vmatprep.mubr.bf16.mxu0 %v6431_v4  ;;  %2416 = vmatprep.mubr.bf16.mxu1 %v6431_v4 }
 0x908   :  { %2346 = vmatpush1.bf16.msra.mxu0 %v6646_v37  ;;  %2387 = vmatpush1.bf16.msra.mxu1 %v6647_v55 }
 0x909   :  { %2347 = vmatprep.subr.bf16.mxu0 %v6648_v49  ;;  %2388 = vmatprep.subr.bf16.mxu1 %v6649_v21 }
 0x90c   :  { %2348 = vmatpush1.bf16.msra.mxu0 %v6650_v13  ;;  %2389 = vmatpush1.bf16.msra.mxu1 %v6651_v51 }
 0x90d   :  { %2349 = vmatprep.subr.bf16.mxu0 %v6652_v15  ;;  %2390 = vmatprep.subr.bf16.mxu1 %v6653_v62 }
 0x910   :  { %2350 = vmatpush1.bf16.msra.mxu0 %v6654_v54  ;;  %2391 = vmatpush1.bf16.msra.mxu1 %v6655_v16 }
 0x911   :  { %2351 = vmatprep.subr.bf16.mxu0 %v6656_v14  ;;  %2392 = vmatprep.subr.bf16.mxu1 %v6657_v60 }
 0x914   :  { %2352 = vmatpush1.bf16.msra.mxu0 %v6658_v20  ;;  %2393 = vmatpush1.bf16.msra.mxu1 %v6659_v61 }
 0x915   :  { %2353 = vmatprep.subr.bf16.mxu0 %v6660_v8  ;;  %2394 = vmatprep.subr.bf16.mxu1 %v6661_v50 }
 0x918   :  { %2354 = vmatpush1.bf16.msra.mxu0 %v6662_v30  ;;  %2395 = vmatpush1.bf16.msra.mxu1 %v6663_v31 }
 0x919   :  { %2355 = vmatprep.subr.bf16.mxu0 %v6664_v32  ;;  %2396 = vmatprep.subr.bf16.mxu1 %v6665_v33 }
 0x91c   :  { %2356 = vmatpush1.bf16.msra.mxu0 %v6666_v34  ;;  %2397 = vmatpush1.bf16.msra.mxu1 %v6667_v38 }
 0x91d   :  { %2357 = vmatprep.subr.bf16.mxu0 %v6668_v17  ;;  %2398 = vmatprep.subr.bf16.mxu1 %v6669_v6 }
 0x920   :  { %2358 = vmatpush1.bf16.msra.mxu0 %v6670_v39  ;;  %2399 = vmatpush1.bf16.msra.mxu1 %v6671_v40 }
 0x921   :  { %2454 = vmatprep.subr.bf16.mxu0 %v6672_v41  ;;  %2495 = vmatprep.subr.bf16.mxu1 %v6673_v42 }
 0x9d6   :  { %v2266_v43 = vpop.f32.mrb[52].mxu0  ;;  %v2307_v44 = vpop.f32.mrb[52].mxu1 }
 0x9d7   :  { %v2314_v47 = vadd.f32 %v2266_v43, %v6674_v45  ;;  %v2316_v52 = vadd.f32 %v2307_v44, %v6675_v48  ;;  %v2268_v9 = vpop.f32.mrb[53].mxu0  ;;  %v2309_v35 = vpop.f32.mrb[53].mxu1 }
 0x9d8   :  { %v2315_v26 = vadd.f32 %v2268_v9, %v6676_v36  ;;  %v2317_v19 = vadd.f32 %v2309_v35, %v6677_v24  ;;  %v2270_v12 = vpop.f32.mrb[54].mxu0  ;;  %v2311_v23 = vpop.f32.mrb[54].mxu1 }
 0x9d9   :  { %v3542_v3 = vmul.f32 -1.442695, %v2314_v47  ;;  %v2271_v1 = vpop.f32.mrb[55].mxu0  ;;  %v2312_v59 = vpop.f32.mrb[55].mxu1  ;;  %v3544_v27 = vmul.f32 -1.442695, %v2316_v52 }
 0x9da   :  { %v3543_v29 = vmul.f32 -1.442695, %v2315_v26  ;;  %v6680_v12 = vld [vmem:[#allocation81_spill] sm:$0xff]  ;;  %v6681_v23 = vld [vmem:[#allocation82_spill] sm:$0xff]  ;;  %v6683_v1 = vld [vmem:[#allocation84_spill] sm:$0xff] }
 0x9db   :  { %3948 = vpow2.f32 %v3542_v3  ;;  %v6682_v3 = vld [vmem:[#allocation83_spill] sm:$0xff]  ;;  %v6684_v59 = vld [vmem:[#allocation85_spill] sm:$0xff] }
 0x9dc   :  { %3950 = vpow2.f32 %v3543_v29  ;;  %v6685_v29 = vld [vmem:[#allocation86_spill] sm:$0xff] }
 0x9dd   :  { %3952 = vtanh.f32 %v2317_v19  ;;  %v6679_v19 = vld [vmem:[#allocation80_spill] sm:$0xff] }
 0x9de   :  { %3954 = vpow2.f32 %v3544_v27  ;;  %v6686_v27 = vld [vmem:[#allocation87_spill] sm:$0xff] }
 0x9e5   :  { %v3949_v25 = vpop.eup %3948 }
 0x9e6   :  { %v2327_v58 = vadd.f32 1.0, %v3949_v25  ;;  %v3951_v11 = vpop.eup %3950  ;;  %v6687_v25 = vld [vmem:[#allocation88_spill] sm:$0xff] }
 0x9e7   :  { %v2328_v37 = vadd.f32 1.0, %v3951_v11  ;;  %v3953_v55 = vpop.eup %3952  ;;  %v6689_v11 = vld [vmem:[#allocation90_spill] sm:$0xff] }
 0x9e8   :  { %3956 = vrcp.f32 %v2327_v58  ;;  %v3955_v43 = vpop.eup %3954  ;;  %v6688_v58 = vld [vmem:[#allocation89_spill] sm:$0xff] }
 0x9e9   :  { %3958 = vrcp.f32 %v2328_v37  ;;  %v2329_v47 = vadd.f32 1.0, %v3955_v43  ;;  %v6690_v37 = vld [vmem:[#allocation10_spill] sm:$0xff]  ;;  %v6692_v43 = vld [vmem:[#allocation12_spill] sm:$0xff] }
 0x9eb   :  { %3960 = vrcp.f32 %v2329_v47  ;;  %v6696_v47 = vld [vmem:[#allocation16_spill] sm:$0xff] }
 0x9f2   :  { %v3957_v44 = vpop.eup %3956 }
 0x9f3   :  { %v2338_v45 = vmul.f32 %v3957_v44, %v3953_v55  ;;  %v3959_v48 = vpop.eup %3958  ;;  %v6691_v55 = vld [vmem:[#allocation11_spill] sm:$0xff]  ;;  %v6693_v44 = vld [vmem:[#allocation13_spill] sm:$0xff] }
 0x9f4   :  { %v2337_v9 = vmul.f32 %v3959_v48, %v5383_v5  ;;  %v6678_v5 = vld [vmem:[#allocation79_spill] sm:$0xff] }
 0x9f5   :  { %v3961_v52 = vpop.eup %3960  ;;  %v6695_v48 = vld [vmem:[#allocation15_spill] sm:$0xff] }
 0x9f6   :  { %v5567_v35 = vadd.f32 %v2338_v45, %v2337_v9  ;;  %v6694_v45 = vld [vmem:[#allocation14_spill] sm:$0xff]  ;;  %v6697_v9 = vld [vmem:[#allocation17_spill] sm:$0xff] }
 0x9f8   :  { %3962 = vtanh.f32 %v5567_v35 }
 0xa02   :  { %v3963_v36 = vpop.eup %3962 }
 0xa03   :  { %v2341_v26 = vmul.f32 %v3963_v36, %v3961_v52  ;;  %v6698_v52 = vld [vmem:[#allocation18_spill] sm:$0xff]  ;;  %v6699_v36 = vld [vmem:[#allocation19_spill] sm:$0xff] }
 0xa05   :  { %v5570_v24 = vpack.c.bf16 %v2341_v26, %v2341_v26  ;;  %v6700_v26 = vld [vmem:[#allocation20_spill] sm:$0xff] }
 0xa07   :  { %2376 = vmatmul.mubr.bf16.vlgmr.msra.gmra.mrb[48].mxu0 %v5570_v24  ;;  %2417 = vmatmul.mubr.bf16.vlgmr.msra.gmra.mrb[48].mxu1 %v5570_v24 }
 0xa08   :  { %2455 = vmatpush1.bf16.msra.mxu0 %v5390_v57  ;;  %2496 = vmatpush1.bf16.msra.mxu1 %v5393_v63 }
 0xa09   :  { %2456 = vmatprep.subr.bf16.mxu0 %v5396_v22  ;;  %2497 = vmatprep.subr.bf16.mxu1 %v5399_v2 }
 0xa0a   :  { %2486 = vmatprep.mubr.bf16.mxu0 %v6431_v4  ;;  %2527 = vmatprep.mubr.bf16.mxu1 %v6431_v4 }
 0xa0c   :  { %2457 = vmatpush1.bf16.msra.mxu0 %v5404_v10  ;;  %2498 = vmatpush1.bf16.msra.mxu1 %v6678_v5 }
 0xa0d   :  { %2458 = vmatprep.subr.bf16.mxu0 %v6679_v19  ;;  %2499 = vmatprep.subr.bf16.mxu1 %v6680_v12 }
 0xa10   :  { %2459 = vmatpush1.bf16.msra.mxu0 %v6681_v23  ;;  %2500 = vmatpush1.bf16.msra.mxu1 %v6682_v3 }
 0xa11   :  { %2460 = vmatprep.subr.bf16.mxu0 %v6683_v1  ;;  %2501 = vmatprep.subr.bf16.mxu1 %v6684_v59 }
 0xa14   :  { %2461 = vmatpush1.bf16.msra.mxu0 %v6685_v29  ;;  %2502 = vmatpush1.bf16.msra.mxu1 %v6686_v27 }
 0xa15   :  { %2462 = vmatprep.subr.bf16.mxu0 %v6687_v25  ;;  %2503 = vmatprep.subr.bf16.mxu1 %v6688_v58 }
 0xa18   :  { %2463 = vmatpush1.bf16.msra.mxu0 %v6689_v11  ;;  %2504 = vmatpush1.bf16.msra.mxu1 %v6690_v37  ;;  %v6701_v37 = vld [vmem:[#allocation21_spill] sm:$0xff] }
 0xa19   :  { %2464 = vmatprep.subr.bf16.mxu0 %v6691_v55  ;;  %2505 = vmatprep.subr.bf16.mxu1 %v6692_v43  ;;  %v6702_v55 = vld [vmem:[#allocation22_spill] sm:$0xff] }
 0xa1a   :  { %v5606_v43 = vld [vmem:[#allocation3 + $0x4] ss:$16 sps:$4 sm:$0xff]  }
 0xa1b   :  { %6703 = vst [vmem:[#allocation23_spill] sm:$0xff] %v5606_v43 }
 0xa1c   :  { %2465 = vmatpush1.bf16.msra.mxu0 %v6693_v44  ;;  %2506 = vmatpush1.bf16.msra.mxu1 %v6694_v45  ;;  %v5609_v45 = vld [vmem:[#allocation3 + $0xc] ss:$16 sps:$4 sm:$0xff]  }
 0xa1d   :  { %2466 = vmatprep.subr.bf16.mxu0 %v6695_v48  ;;  %2507 = vmatprep.subr.bf16.mxu1 %v6696_v47  ;;  %6704 = vst [vmem:[#allocation24_spill] sm:$0xff] %v5609_v45 }
 0xa20   :  { %2467 = vmatpush1.bf16.msra.mxu0 %v6697_v9  ;;  %2508 = vmatpush1.bf16.msra.mxu1 %v6698_v52 }
 0xa21   :  { %2468 = vmatprep.subr.bf16.mxu0 %v6699_v36  ;;  %2509 = vmatprep.subr.bf16.mxu1 %v6700_v26 }
 0xa24   :  { %2469 = vmatpush1.bf16.msra.mxu0 %v6701_v37  ;;  %2510 = vmatpush1.bf16.msra.mxu1 %v6702_v55 }
 0xa25   :  { %2544 = vmatprep.subr.bf16.mxu0 %v5606_v43  ;;  %2585 = vmatprep.subr.bf16.mxu1 %v5609_v45 }
 0xada   :  { %v2377_v47 = vpop.f32.mrb[48].mxu0  ;;  %v2418_v9 = vpop.f32.mrb[48].mxu1 }
 0xadb   :  { %v3578_v52 = vadd.f32 %v2377_v47, %v4907_v28  ;;  %v2379_v48 = vpop.f32.mrb[49].mxu0  ;;  %v2420_v36 = vpop.f32.mrb[49].mxu1  ;;  %v3580_v43 = vadd.f32 %v2418_v9, %v4917_v0 }
 0xadc   :  { %v3579_v26 = vadd.f32 %v2379_v48, %v6523_v46  ;;  %v2381_v44 = vpop.f32.mrb[50].mxu0  ;;  %v2422_v37 = vpop.f32.mrb[50].mxu1  ;;  %v3581_v45 = vadd.f32 %v2420_v36, %v4921_v7  ;;  %v5623_v36 = vld [vmem:[#allocation3 + $0x8] ss:$16 sps:$4 sm:$0xff]  }
 0xadd   :  { %v3545_v11 = vmul.f32 -1.442695, %v3578_v52  ;;  %v2382_v55 = vpop.f32.mrb[51].mxu0  ;;  %v2423_v58 = vpop.f32.mrb[51].mxu1  ;;  %v3547_v27 = vmul.f32 -1.442695, %v3580_v43 }
 0xade   :  { %v3546_v25 = vmul.f32 -1.442695, %v3579_v26  ;;  %v5629_v26 = vld [vmem:[#allocation3 + $0x2c] ss:$16 sps:$4 sm:$0xff]  }
 0xadf   :  { %3964 = vpow2.f32 %v3545_v11 }
 0xae0   :  { %3966 = vpow2.f32 %v3546_v25 }
 0xae1   :  { %3968 = vtanh.f32 %v3581_v45 }
 0xae2   :  { %3970 = vpow2.f32 %v3547_v27 }
 0xae9   :  { %v3965_v29 = vpop.eup %3964 }
 0xaea   :  { %v2438_v59 = vadd.f32 1.0, %v3965_v29  ;;  %v3967_v47 = vpop.eup %3966 }
 0xaeb   :  { %v2439_v48 = vadd.f32 1.0, %v3967_v47  ;;  %v3969_v37 = vpop.eup %3968  ;;  %v5634_v47 = vld [vmem:[#allocation3 + $0x20] ss:$16 sps:$4 sm:$0xff]  }
 0xaec   :  { %3972 = vrcp.f32 %v2438_v59  ;;  %v3971_v44 = vpop.eup %3970  ;;  %v5620_v59 = vld [vmem:[#allocation3] ss:$16 sps:$4 sm:$0xff]  }
 0xaed   :  { %3974 = vrcp.f32 %v2439_v48  ;;  %v2440_v11 = vadd.f32 1.0, %v3971_v44  ;;  %v5637_v48 = vld [vmem:[#allocation3 + $0x28] ss:$16 sps:$4 sm:$0xff]   ;;  %v5643_v44 = vld [vmem:[#allocation3 + $0x4c] ss:$16 sps:$4 sm:$0xff]  }
 0xaef   :  { %3976 = vrcp.f32 %v2440_v11  ;;  %v5655_v11 = vld [vmem:[#allocation3 + $0x6c] ss:$16 sps:$4 sm:$0xff]  }
 0xaf0   :  { %6705 = vst [vmem:[#allocation25_spill] sm:$0xff] %v5655_v11 }
 0xaf6   :  { %v3973_v55 = vpop.eup %3972 }
 0xaf7   :  { %v2449_v58 = vmul.f32 %v3973_v55, %v3969_v37  ;;  %v3975_v52 = vpop.eup %3974  ;;  %v5640_v37 = vld [vmem:[#allocation3 + $0x44] ss:$16 sps:$4 sm:$0xff]   ;;  %v5646_v55 = vld [vmem:[#allocation3 + $0x40] ss:$16 sps:$4 sm:$0xff]  }
 0xaf8   :  { %v2448_v25 = vmul.f32 %v3975_v52, %v5489_v56  ;;  %v5626_v56 = vld [vmem:[#allocation3 + $0x24] ss:$16 sps:$4 sm:$0xff]  }
 0xaf9   :  { %v3977_v29 = vpop.eup %3976  ;;  %v5652_v52 = vld [vmem:[#allocation3 + $0x64] ss:$16 sps:$4 sm:$0xff]  }
 0xafa   :  { %v5617_v9 = vadd.f32 %v2449_v58, %v2448_v25  ;;  %v5649_v58 = vld [vmem:[#allocation3 + $0x48] ss:$16 sps:$4 sm:$0xff]   ;;  %v5658_v25 = vld [vmem:[#allocation3 + $0x60] ss:$16 sps:$4 sm:$0xff]  }
 0xafb   :  { %6706 = vst [vmem:[#allocation26_spill] sm:$0xff] %v5658_v25 }
 0xafc   :  { %3978 = vtanh.f32 %v5617_v9 }
 0xb06   :  { %v3979_v43 = vpop.eup %3978 }
 0xb07   :  { %v2452_v45 = vmul.f32 %v3979_v43, %v3977_v29  ;;  %v5661_v29 = vld [vmem:[#allocation3 + $0x68] ss:$16 sps:$4 sm:$0xff]   ;;  %v5664_v43 = vld [vmem:[#allocation3 + $0x84] ss:$16 sps:$4 sm:$0xff]  }
 0xb08   :  { %6707 = vst [vmem:[#allocation27_spill] sm:$0xff] %v5661_v29  ;;  %6708 = vst [vmem:[#allocation28_spill] sm:$0xff] %v5664_v43 }
 0xb09   :  { %v2453_v27 = vpack.c.bf16 %v2452_v45, %v2452_v45  ;;  %v5667_v45 = vld [vmem:[#allocation3 + $0x8c] ss:$16 sps:$4 sm:$0xff]  }
 0xb0a   :  { %6709 = vst [vmem:[#allocation29_spill] sm:$0xff] %v5667_v45 }
 0xb0b   :  { %2487 = vmatmul.mubr.bf16.vlgmr.msra.gmra.mrb[56].mxu0 %v2453_v27  ;;  %2528 = vmatmul.mubr.bf16.vlgmr.msra.gmra.mrb[56].mxu1 %v2453_v27  ;;  %v5670_v27 = vld [vmem:[#allocation3 + $0x80] ss:$16 sps:$4 sm:$0xff]  }
 0xb0c   :  { %2545 = vmatpush1.bf16.msra.mxu0 %v5620_v59  ;;  %2586 = vmatpush1.bf16.msra.mxu1 %v5623_v36  ;;  %6710 = vst [vmem:[#allocation44_spill] sm:$0xff] %v5670_v27 }
 0xb0d   :  { %2546 = vmatprep.subr.bf16.mxu0 %v5626_v56  ;;  %2587 = vmatprep.subr.bf16.mxu1 %v5629_v26 }
 0xb0e   :  { %2576 = vmatprep.mubr.bf16.mxu0 %v6431_v4  ;;  %2617 = vmatprep.mubr.bf16.mxu1 %v6431_v4 }
 0xb10   :  { %2547 = vmatpush1.bf16.msra.mxu0 %v5634_v47  ;;  %2588 = vmatpush1.bf16.msra.mxu1 %v5637_v48 }
 0xb11   :  { %2548 = vmatprep.subr.bf16.mxu0 %v5640_v37  ;;  %2589 = vmatprep.subr.bf16.mxu1 %v5643_v44 }
 0xb14   :  { %2549 = vmatpush1.bf16.msra.mxu0 %v5646_v55  ;;  %2590 = vmatpush1.bf16.msra.mxu1 %v5649_v58 }
 0xb15   :  { %2550 = vmatprep.subr.bf16.mxu0 %v5652_v52  ;;  %2591 = vmatprep.subr.bf16.mxu1 %v5655_v11  ;;  %v5673_v11 = vld [vmem:[#allocation3 + $0x88] ss:$16 sps:$4 sm:$0xff]  }
 0xb16   :  { %6711 = vst [vmem:[#allocation45_spill] sm:$0xff] %v5673_v11 }
 0xb18   :  { %2551 = vmatpush1.bf16.msra.mxu0 %v5658_v25  ;;  %2592 = vmatpush1.bf16.msra.mxu1 %v5661_v29  ;;  %v5676_v25 = vld [vmem:[#allocation3 + $0xa4] ss:$16 sps:$4 sm:$0xff]   ;;  %v5679_v29 = vld [vmem:[#allocation3 + $0xac] ss:$16 sps:$4 sm:$0xff]  }
 0xb19   :  { %2552 = vmatprep.subr.bf16.mxu0 %v5664_v43  ;;  %2593 = vmatprep.subr.bf16.mxu1 %v5667_v45  ;;  %6712 = vst [vmem:[#allocation46_spill] sm:$0xff] %v5676_v25  ;;  %6713 = vst [vmem:[#allocation47_spill] sm:$0xff] %v5679_v29  ;;  %v5682_v43 = vld [vmem:[#allocation3 + $0xa0] ss:$16 sps:$4 sm:$0xff]   ;;  %v5685_v45 = vld [vmem:[#allocation3 + $0xa8] ss:$16 sps:$4 sm:$0xff]  }
 0xb1a   :  { %6714 = vst [vmem:[#allocation32_spill] sm:$0xff] %v5682_v43  ;;  %6715 = vst [vmem:[#allocation33_spill] sm:$0xff] %v5685_v45 }
 0xb1c   :  { %2553 = vmatpush1.bf16.msra.mxu0 %v5670_v27  ;;  %2594 = vmatpush1.bf16.msra.mxu1 %v5673_v11  ;;  %v5688_v27 = vld [vmem:[#allocation3 + $0xc4] ss:$16 sps:$4 sm:$0xff]   ;;  %v5691_v11 = vld [vmem:[#allocation3 + $0xcc] ss:$16 sps:$4 sm:$0xff]  }
 0xb1d   :  { %2554 = vmatprep.subr.bf16.mxu0 %v5676_v25  ;;  %2595 = vmatprep.subr.bf16.mxu1 %v5679_v29  ;;  %6716 = vst [vmem:[#allocation30_spill] sm:$0xff] %v5688_v27  ;;  %6717 = vst [vmem:[#allocation31_spill] sm:$0xff] %v5691_v11  ;;  %v5694_v25 = vld [vmem:[#allocation3 + $0xc0] ss:$16 sps:$4 sm:$0xff]   ;;  %v5697_v29 = vld [vmem:[#allocation3 + $0xc8] ss:$16 sps:$4 sm:$0xff]  }
 0xb1e   :  { %6718 = vst [vmem:[#allocation34_spill] sm:$0xff] %v5694_v25  ;;  %6719 = vst [vmem:[#allocation35_spill] sm:$0xff] %v5697_v29 }
 0xb20   :  { %2555 = vmatpush1.bf16.msra.mxu0 %v5682_v43  ;;  %2596 = vmatpush1.bf16.msra.mxu1 %v5685_v45  ;;  %v5700_v43 = vld [vmem:[#allocation3 + $0xe4] ss:$16 sps:$4 sm:$0xff]   ;;  %v5703_v45 = vld [vmem:[#allocation3 + $0xec] ss:$16 sps:$4 sm:$0xff]  }
 0xb21   :  { %2556 = vmatprep.subr.bf16.mxu0 %v5688_v27  ;;  %2597 = vmatprep.subr.bf16.mxu1 %v5691_v11  ;;  %6720 = vst [vmem:[#allocation36_spill] sm:$0xff] %v5703_v45  ;;  %v5706_v27 = vld [vmem:[#allocation3 + $0xe0] ss:$16 sps:$4 sm:$0xff]   ;;  %v5709_v11 = vld [vmem:[#allocation3 + $0xe8] ss:$16 sps:$4 sm:$0xff]  }
 0xb22   :  { %6721 = vst [vmem:[#allocation37_spill] sm:$0xff] %v5706_v27 }
 0xb24   :  { %2557 = vmatpush1.bf16.msra.mxu0 %v5694_v25  ;;  %2598 = vmatpush1.bf16.msra.mxu1 %v5697_v29  ;;  %v5712_v25 = vld [vmem:[#allocation5 + $0x4] ss:$16 sps:$4 sm:$0xff]   ;;  %v5715_v29 = vld [vmem:[#allocation5 + $0xc] ss:$16 sps:$4 sm:$0xff]  }
 0xb25   :  { %2558 = vmatprep.subr.bf16.mxu0 %v5700_v43  ;;  %2599 = vmatprep.subr.bf16.mxu1 %v5703_v45  ;;  %6722 = vst [vmem:[#allocation38_spill] sm:$0xff] %v5715_v29  ;;  %v5720_v45 = vld [vmem:[#allocation5] ss:$16 sps:$4 sm:$0xff]  }
 0xb28   :  { %2559 = vmatpush1.bf16.msra.mxu0 %v5706_v27  ;;  %2600 = vmatpush1.bf16.msra.mxu1 %v5709_v11  ;;  %v5723_v27 = vld [vmem:[#allocation5 + $0x8] ss:$16 sps:$4 sm:$0xff]  }
 0xb29   :  { %2655 = vmatprep.subr.bf16.mxu0 %v5712_v25  ;;  %2696 = vmatprep.subr.bf16.mxu1 %v5715_v29  ;;  %v5730_v29 = vld [vmem:[#allocation5 + $0x20] ss:$16 sps:$4 sm:$0xff]  }
 0xb2a   :  { %6723 = vst [vmem:[#allocation39_spill] sm:$0xff] %v5730_v29 }
 0xb2b   :  { %2577 = vmatmul.mubr.bf16.vlgmr.msra.gmra.mrb[60].mxu0 %v5570_v24  ;;  %2618 = vmatmul.mubr.bf16.vlgmr.msra.gmra.mrb[60].mxu1 %v5570_v24  ;;  %v5733_v24 = vld [vmem:[#allocation5 + $0x28] ss:$16 sps:$4 sm:$0xff]  }
 0xb2c   :  { %2656 = vmatpush1.bf16.msra.mxu0 %v5720_v45  ;;  %2697 = vmatpush1.bf16.msra.mxu1 %v5723_v27  ;;  %6724 = vst [vmem:[#allocation64_spill] sm:$0xff] %v5733_v24 }
 0xb2d   :  { %2657 = vmatprep.subr.bf16.mxu0 %v6644_v18  ;;  %2698 = vmatprep.subr.bf16.mxu1 %v6645_v53 }
 0xb2e   :  { %2687 = vmatprep.mubr.bf16.mxu0 %v6431_v4  ;;  %2728 = vmatprep.mubr.bf16.mxu1 %v6431_v4 }
 0xb30   :  { %2658 = vmatpush1.bf16.msra.mxu0 %v5730_v29  ;;  %2699 = vmatpush1.bf16.msra.mxu1 %v5733_v24 }
 0xb31   :  { %2659 = vmatprep.subr.bf16.mxu0 %v6648_v49  ;;  %2700 = vmatprep.subr.bf16.mxu1 %v6649_v21  ;;  %v6725_v49 = vld [vmem:[#allocation52_spill] sm:$0xff] }
 0xb34   :  { %2660 = vmatpush1.bf16.msra.mxu0 %v6650_v13  ;;  %2701 = vmatpush1.bf16.msra.mxu1 %v6651_v51  ;;  %v6726_v13 = vld [vmem:[#allocation53_spill] sm:$0xff] }
 0xb35   :  { %2661 = vmatprep.subr.bf16.mxu0 %v6652_v15  ;;  %2702 = vmatprep.subr.bf16.mxu1 %v6653_v62 }
 0xb38   :  { %2662 = vmatpush1.bf16.msra.mxu0 %v6654_v54  ;;  %2703 = vmatpush1.bf16.msra.mxu1 %v6655_v16  ;;  %v6727_v54 = vld [vmem:[#allocation54_spill] sm:$0xff] }
 0xb39   :  { %2663 = vmatprep.subr.bf16.mxu0 %v6656_v14  ;;  %2704 = vmatprep.subr.bf16.mxu1 %v6657_v60  ;;  %v6728_v14 = vld [vmem:[#allocation55_spill] sm:$0xff] }
 0xb3c   :  { %2664 = vmatpush1.bf16.msra.mxu0 %v6658_v20  ;;  %2705 = vmatpush1.bf16.msra.mxu1 %v6659_v61 }
 0xb3d   :  { %2665 = vmatprep.subr.bf16.mxu0 %v6660_v8  ;;  %2706 = vmatprep.subr.bf16.mxu1 %v6661_v50 }
 0xb40   :  { %2666 = vmatpush1.bf16.msra.mxu0 %v6662_v30  ;;  %2707 = vmatpush1.bf16.msra.mxu1 %v6663_v31 }
 0xb41   :  { %2667 = vmatprep.subr.bf16.mxu0 %v6664_v32  ;;  %2708 = vmatprep.subr.bf16.mxu1 %v6665_v33 }
 0xb44   :  { %2668 = vmatpush1.bf16.msra.mxu0 %v6666_v34  ;;  %2709 = vmatpush1.bf16.msra.mxu1 %v6667_v38 }
 0xb45   :  { %2669 = vmatprep.subr.bf16.mxu0 %v6668_v17  ;;  %2710 = vmatprep.subr.bf16.mxu1 %v6669_v6 }
 0xb48   :  { %2670 = vmatpush1.bf16.msra.mxu0 %v6670_v39  ;;  %2711 = vmatpush1.bf16.msra.mxu1 %v6671_v40 }
 0xb49   :  { %2766 = vmatprep.subr.bf16.mxu0 %v6672_v41  ;;  %2807 = vmatprep.subr.bf16.mxu1 %v6673_v42 }
 0xbfe   :  { %v2578_v18 = vpop.f32.mrb[60].mxu0  ;;  %v2619_v53 = vpop.f32.mrb[60].mxu1 }
 0xbff   :  { %v2626_v21 = vadd.f32 %v2578_v18, %v6725_v49  ;;  %v2628_v51 = vadd.f32 %v2619_v53, %v6726_v13  ;;  %v2580_v15 = vpop.f32.mrb[61].mxu0  ;;  %v2621_v62 = vpop.f32.mrb[61].mxu1 }
 0xc00   :  { %v2627_v16 = vadd.f32 %v2580_v15, %v6727_v54  ;;  %v2629_v60 = vadd.f32 %v2621_v62, %v6728_v14  ;;  %v2582_v20 = vpop.f32.mrb[62].mxu0  ;;  %v2623_v61 = vpop.f32.mrb[62].mxu1  ;;  %v6741_v62 = vld [vmem:[#allocation16_spill] sm:$0xff]  ;;  %v6742_v54 = vld [vmem:[#allocation17_spill] sm:$0xff]  ;;  %v6744_v14 = vld [vmem:[#allocation19_spill] sm:$0xff] }
 0xc01   :  { %v3548_v8 = vmul.f32 -1.442695, %v2626_v21  ;;  %v2583_v50 = vpop.f32.mrb[63].mxu0  ;;  %v2624_v30 = vpop.f32.mrb[63].mxu1  ;;  %v3550_v32 = vmul.f32 -1.442695, %v2628_v51 }
 0xc02   :  { %v3549_v31 = vmul.f32 -1.442695, %v2627_v16  ;;  %v6743_v16 = vld [vmem:[#allocation18_spill] sm:$0xff]  ;;  %v6746_v20 = vld [vmem:[#allocation21_spill] sm:$0xff]  ;;  %v6749_v50 = vld [vmem:[#allocation24_spill] sm:$0xff] }
 0xc03   :  { %3980 = vpow2.f32 %v3548_v8  ;;  %v6747_v61 = vld [vmem:[#allocation22_spill] sm:$0xff]  ;;  %v6748_v8 = vld [vmem:[#allocation23_spill] sm:$0xff] }
 0xc04   :  { %3982 = vpow2.f32 %v3549_v31 }
 0xc05   :  { %3984 = vtanh.f32 %v2629_v60  ;;  %v6745_v60 = vld [vmem:[#allocation20_spill] sm:$0xff] }
 0xc06   :  { %3986 = vpow2.f32 %v3550_v32 }
 0xc0d   :  { %v3981_v33 = vpop.eup %3980 }
 0xc0e   :  { %v2639_v34 = vadd.f32 1.0, %v3981_v33  ;;  %v3983_v38 = vpop.eup %3982 }
 0xc0f   :  { %v2640_v17 = vadd.f32 1.0, %v3983_v38  ;;  %v3985_v6 = vpop.eup %3984 }
 0xc10   :  { %3988 = vrcp.f32 %v2639_v34  ;;  %v3987_v39 = vpop.eup %3986 }
 0xc11   :  { %3990 = vrcp.f32 %v2640_v17  ;;  %v2641_v18 = vadd.f32 1.0, %v3987_v39 }
 0xc13   :  { %3992 = vrcp.f32 %v2641_v18 }
 0xc1a   :  { %v3989_v40 = vpop.eup %3988 }
 0xc1b   :  { %v2650_v41 = vmul.f32 %v3989_v40, %v3985_v6  ;;  %v3991_v42 = vpop.eup %3990 }
 0xc1c   :  { %v2649_v53 = vmul.f32 %v3991_v42, %v5567_v35  ;;  %v6734_v35 = vld [vmem:[#allocation90_spill] sm:$0xff] }
 0xc1d   :  { %v3993_v21 = vpop.eup %3992 }
 0xc1e   :  { %v5767_v49 = vadd.f32 %v2650_v41, %v2649_v53 }
 0xc20   :  { %3994 = vtanh.f32 %v5767_v49 }
 0xc2a   :  { %v3995_v13 = vpop.eup %3994 }
 0xc2b   :  { %v2653_v51 = vmul.f32 %v3995_v13, %v3993_v21 }
 0xc2d   :  { %v5770_v15 = vpack.c.bf16 %v2653_v51, %v2653_v51 }
 0xc2f   :  { %2688 = vmatmul.mubr.bf16.vlgmr.msra.gmra.mrb[56].mxu0 %v5770_v15  ;;  %2729 = vmatmul.mubr.bf16.vlgmr.msra.gmra.mrb[56].mxu1 %v5770_v15 }
 0xc30   :  { %2767 = vmatpush1.bf16.msra.mxu0 %v5390_v57  ;;  %2808 = vmatpush1.bf16.msra.mxu1 %v5393_v63  ;;  %v6729_v57 = vld [vmem:[#allocation85_spill] sm:$0xff]  ;;  %v6730_v63 = vld [vmem:[#allocation86_spill] sm:$0xff] }
 0xc31   :  { %2768 = vmatprep.subr.bf16.mxu0 %v5396_v22  ;;  %2809 = vmatprep.subr.bf16.mxu1 %v5399_v2  ;;  %v6731_v22 = vld [vmem:[#allocation87_spill] sm:$0xff]  ;;  %v6732_v2 = vld [vmem:[#allocation88_spill] sm:$0xff] }
 0xc32   :  { %2798 = vmatprep.mubr.bf16.mxu0 %v6431_v4  ;;  %2839 = vmatprep.mubr.bf16.mxu1 %v6431_v4 }
 0xc34   :  { %2769 = vmatpush1.bf16.msra.mxu0 %v5404_v10  ;;  %2810 = vmatpush1.bf16.msra.mxu1 %v6678_v5  ;;  %v6733_v10 = vld [vmem:[#allocation89_spill] sm:$0xff]  ;;  %v6735_v5 = vld [vmem:[#allocation10_spill] sm:$0xff] }
 0xc35   :  { %2770 = vmatprep.subr.bf16.mxu0 %v6679_v19  ;;  %2811 = vmatprep.subr.bf16.mxu1 %v6680_v12  ;;  %v6736_v19 = vld [vmem:[#allocation11_spill] sm:$0xff]  ;;  %v6737_v12 = vld [vmem:[#allocation12_spill] sm:$0xff] }
 0xc38   :  { %2771 = vmatpush1.bf16.msra.mxu0 %v6681_v23  ;;  %2812 = vmatpush1.bf16.msra.mxu1 %v6682_v3  ;;  %v6738_v23 = vld [vmem:[#allocation13_spill] sm:$0xff]  ;;  %v6739_v3 = vld [vmem:[#allocation14_spill] sm:$0xff] }
 0xc39   :  { %2772 = vmatprep.subr.bf16.mxu0 %v6683_v1  ;;  %2813 = vmatprep.subr.bf16.mxu1 %v6729_v57  ;;  %v6740_v1 = vld [vmem:[#allocation15_spill] sm:$0xff] }
 0xc3c   :  { %2773 = vmatpush1.bf16.msra.mxu0 %v6730_v63  ;;  %2814 = vmatpush1.bf16.msra.mxu1 %v6731_v22 }
 0xc3d   :  { %2774 = vmatprep.subr.bf16.mxu0 %v6732_v2  ;;  %2815 = vmatprep.subr.bf16.mxu1 %v6733_v10 }
 0xc40   :  { %2775 = vmatpush1.bf16.msra.mxu0 %v6734_v35  ;;  %2816 = vmatpush1.bf16.msra.mxu1 %v6735_v5 }
 0xc41   :  { %2776 = vmatprep.subr.bf16.mxu0 %v6736_v19  ;;  %2817 = vmatprep.subr.bf16.mxu1 %v6737_v12 }
 0xc44   :  { %2777 = vmatpush1.bf16.msra.mxu0 %v6738_v23  ;;  %2818 = vmatpush1.bf16.msra.mxu1 %v6739_v3 }
 0xc45   :  { %2778 = vmatprep.subr.bf16.mxu0 %v6740_v1  ;;  %2819 = vmatprep.subr.bf16.mxu1 %v6741_v62 }
 0xc48   :  { %2779 = vmatpush1.bf16.msra.mxu0 %v6742_v54  ;;  %2820 = vmatpush1.bf16.msra.mxu1 %v6743_v16  ;;  %v6751_v16 = vld [vmem:[#allocation26_spill] sm:$0xff] }
 0xc49   :  { %2780 = vmatprep.subr.bf16.mxu0 %v6744_v14  ;;  %2821 = vmatprep.subr.bf16.mxu1 %v6745_v60  ;;  %v6752_v14 = vld [vmem:[#allocation27_spill] sm:$0xff]  ;;  %v6753_v60 = vld [vmem:[#allocation28_spill] sm:$0xff] }
 0xc4c   :  { %2781 = vmatpush1.bf16.msra.mxu0 %v6746_v20  ;;  %2822 = vmatpush1.bf16.msra.mxu1 %v6747_v61  ;;  %v6754_v20 = vld [vmem:[#allocation29_spill] sm:$0xff]  ;;  %v6755_v61 = vld [vmem:[#allocation44_spill] sm:$0xff] }
 0xc4d   :  { %2856 = vmatprep.subr.bf16.mxu0 %v6748_v8  ;;  %2897 = vmatprep.subr.bf16.mxu1 %v6749_v50 }
 0xd02   :  { %v2689_v30 = vpop.f32.mrb[56].mxu0  ;;  %v2730_v31 = vpop.f32.mrb[56].mxu1 }
 0xd03   :  { %v3582_v32 = vadd.f32 %v2689_v30, %v4907_v28  ;;  %v2691_v33 = vpop.f32.mrb[57].mxu0  ;;  %v2732_v34 = vpop.f32.mrb[57].mxu1  ;;  %v3584_v18 = vadd.f32 %v2730_v31, %v4917_v0  ;;  %v6756_v30 = vld [vmem:[#allocation45_spill] sm:$0xff]  ;;  %v6757_v31 = vld [vmem:[#allocation46_spill] sm:$0xff] }
 0xd04   :  { %v3583_v38 = vadd.f32 %v2691_v33, %v6523_v46  ;;  %v2693_v17 = vpop.f32.mrb[58].mxu0  ;;  %v2734_v6 = vpop.f32.mrb[58].mxu1  ;;  %v3585_v53 = vadd.f32 %v2732_v34, %v4921_v7  ;;  %v6759_v33 = vld [vmem:[#allocation32_spill] sm:$0xff]  ;;  %v6760_v34 = vld [vmem:[#allocation33_spill] sm:$0xff] }
 0xd05   :  { %v3551_v39 = vmul.f32 -1.442695, %v3582_v32  ;;  %v2694_v40 = vpop.f32.mrb[59].mxu0  ;;  %v2735_v41 = vpop.f32.mrb[59].mxu1  ;;  %v3553_v21 = vmul.f32 -1.442695, %v3584_v18 }
 0xd06   :  { %v3552_v42 = vmul.f32 -1.442695, %v3583_v38  ;;  %v6758_v32 = vld [vmem:[#allocation47_spill] sm:$0xff]  ;;  %v6761_v38 = vld [vmem:[#allocation30_spill] sm:$0xff]  ;;  %v6765_v40 = vld [vmem:[#allocation36_spill] sm:$0xff] }
 0xd07   :  { %3996 = vpow2.f32 %v3551_v39  ;;  %v6762_v17 = vld [vmem:[#allocation31_spill] sm:$0xff]  ;;  %v6763_v6 = vld [vmem:[#allocation34_spill] sm:$0xff]  ;;  %v6766_v41 = vld [vmem:[#allocation37_spill] sm:$0xff] }
 0xd08   :  { %3998 = vpow2.f32 %v3552_v42  ;;  %v6764_v39 = vld [vmem:[#allocation35_spill] sm:$0xff]  ;;  %v6767_v42 = vld [vmem:[#allocation38_spill] sm:$0xff] }
 0xd09   :  { %4000 = vtanh.f32 %v3585_v53  ;;  %v5854_v18 = vld [vmem:[#allocation5 + $0x24] ss:$16 sps:$4 sm:$0xff]   ;;  %v5857_v53 = vld [vmem:[#allocation5 + $0x2c] ss:$16 sps:$4 sm:$0xff]  }
 0xd0a   :  { %4002 = vpow2.f32 %v3553_v21  ;;  %6768 = vst [vmem:[#allocation65_spill] sm:$0xff] %v5854_v18  ;;  %6769 = vst [vmem:[#allocation66_spill] sm:$0xff] %v5857_v53  ;;  %v5867_v21 = vld [vmem:[#allocation5 + $0x4c] ss:$16 sps:$4 sm:$0xff]  }
 0xd0b   :  { %6771 = vst [vmem:[#allocation68_spill] sm:$0xff] %v5867_v21 }
 0xd11   :  { %v3997_v13 = vpop.eup %3996 }
 0xd12   :  { %v2750_v51 = vadd.f32 1.0, %v3997_v13  ;;  %v3999_v57 = vpop.eup %3998  ;;  %v5870_v13 = vld [vmem:[#allocation5 + $0x40] ss:$16 sps:$4 sm:$0xff]  }
 0xd13   :  { %v2751_v63 = vadd.f32 1.0, %v3999_v57  ;;  %v4001_v22 = vpop.eup %4000  ;;  %6772 = vst [vmem:[#allocation69_spill] sm:$0xff] %v5870_v13  ;;  %v5876_v57 = vld [vmem:[#allocation5 + $0x64] ss:$16 sps:$4 sm:$0xff]  }
 0xd14   :  { %4004 = vrcp.f32 %v2750_v51  ;;  %v4003_v2 = vpop.eup %4002  ;;  %v5873_v51 = vld [vmem:[#allocation5 + $0x48] ss:$16 sps:$4 sm:$0xff]   ;;  %6774 = vst [vmem:[#allocation71_spill] sm:$0xff] %v5876_v57 }
 0xd15   :  { %4006 = vrcp.f32 %v2751_v63  ;;  %v2752_v19 = vadd.f32 1.0, %v4003_v2  ;;  %6773 = vst [vmem:[#allocation70_spill] sm:$0xff] %v5873_v51  ;;  %v5879_v63 = vld [vmem:[#allocation5 + $0x6c] ss:$16 sps:$4 sm:$0xff]   ;;  %v5885_v2 = vld [vmem:[#allocation5 + $0x68] ss:$16 sps:$4 sm:$0xff]  }
 0xd16   :  { %6775 = vst [vmem:[#allocation91_spill] sm:$0xff] %v5879_v63  ;;  %6777 = vst [vmem:[#allocation41_spill] sm:$0xff] %v5885_v2 }
 0xd17   :  { %4008 = vrcp.f32 %v2752_v19  ;;  %v5897_v19 = vld [vmem:[#allocation5 + $0x88] ss:$16 sps:$4 sm:$0xff]  }
 0xd18   :  { %6781 = vst [vmem:[#allocation73_spill] sm:$0xff] %v5897_v19 }
 0xd1e   :  { %v4005_v10 = vpop.eup %4004 }
 0xd1f   :  { %v2761_v35 = vmul.f32 %v4005_v10, %v4001_v22  ;;  %v4007_v5 = vpop.eup %4006  ;;  %v5882_v22 = vld [vmem:[#allocation5 + $0x60] ss:$16 sps:$4 sm:$0xff]   ;;  %v5888_v10 = vld [vmem:[#allocation5 + $0x84] ss:$16 sps:$4 sm:$0xff]  }
 0xd20   :  { %v2760_v12 = vmul.f32 %v4007_v5, %v5617_v9  ;;  %v6750_v9 = vld [vmem:[#allocation25_spill] sm:$0xff]  ;;  %6776 = vst [vmem:[#allocation40_spill] sm:$0xff] %v5882_v22  ;;  %6778 = vst [vmem:[#allocation42_spill] sm:$0xff] %v5888_v10  ;;  %v5894_v5 = vld [vmem:[#allocation5 + $0x80] ss:$16 sps:$4 sm:$0xff]  }
 0xd21   :  { %v4009_v3 = vpop.eup %4008  ;;  %6780 = vst [vmem:[#allocation72_spill] sm:$0xff] %v5894_v5 }
 0xd22   :  { %v5813_v23 = vadd.f32 %v2761_v35, %v2760_v12  ;;  %v5891_v35 = vld [vmem:[#allocation5 + $0x8c] ss:$16 sps:$4 sm:$0xff]   ;;  %v5900_v12 = vld [vmem:[#allocation5 + $0xa4] ss:$16 sps:$4 sm:$0xff]  }
 0xd23   :  { %6779 = vst [vmem:[#allocation43_spill] sm:$0xff] %v5891_v35  ;;  %6782 = vst [vmem:[#allocation74_spill] sm:$0xff] %v5900_v12 }
 0xd24   :  { %4010 = vtanh.f32 %v5813_v23 }
 0xd2e   :  { %v4011_v1 = vpop.eup %4010 }
 0xd2f   :  { %v2764_v62 = vmul.f32 %v4011_v1, %v4009_v3  ;;  %v5903_v3 = vld [vmem:[#allocation5 + $0xac] ss:$16 sps:$4 sm:$0xff]   ;;  %v5906_v1 = vld [vmem:[#allocation5 + $0xa0] ss:$16 sps:$4 sm:$0xff]  }
 0xd30   :  { %6783 = vst [vmem:[#allocation75_spill] sm:$0xff] %v5903_v3  ;;  %6784 = vst [vmem:[#allocation76_spill] sm:$0xff] %v5906_v1 }
 0xd31   :  { %v2765_v54 = vpack.c.bf16 %v2764_v62, %v2764_v62  ;;  %v5909_v62 = vld [vmem:[#allocation5 + $0xa8] ss:$16 sps:$4 sm:$0xff]  }
 0xd32   :  { %6785 = vst [vmem:[#allocation77_spill] sm:$0xff] %v5909_v62 }
 0xd33   :  { %2799 = vmatmul.mubr.bf16.vlgmr.msra.gmra.mrb[64].mxu0 %v2765_v54  ;;  %2840 = vmatmul.mubr.bf16.vlgmr.msra.gmra.mrb[64].mxu1 %v2765_v54  ;;  %v5912_v54 = vld [vmem:[#allocation5 + $0xc4] ss:$16 sps:$4 sm:$0xff]  }
 0xd34   :  { %2857 = vmatpush1.bf16.msra.mxu0 %v5620_v59  ;;  %2898 = vmatpush1.bf16.msra.mxu1 %v5623_v36  ;;  %6786 = vst [vmem:[#allocation78_spill] sm:$0xff] %v5912_v54 }
 0xd35   :  { %2858 = vmatprep.subr.bf16.mxu0 %v5626_v56  ;;  %2899 = vmatprep.subr.bf16.mxu1 %v5629_v26 }
 0xd36   :  { %2888 = vmatprep.mubr.bf16.mxu0 %v6431_v4  ;;  %2929 = vmatprep.mubr.bf16.mxu1 %v6431_v4 }
 0xd38   :  { %2859 = vmatpush1.bf16.msra.mxu0 %v5634_v47  ;;  %2900 = vmatpush1.bf16.msra.mxu1 %v5637_v48 }
 0xd39   :  { %2860 = vmatprep.subr.bf16.mxu0 %v5640_v37  ;;  %2901 = vmatprep.subr.bf16.mxu1 %v5643_v44 }
 0xd3c   :  { %2861 = vmatpush1.bf16.msra.mxu0 %v5646_v55  ;;  %2902 = vmatpush1.bf16.msra.mxu1 %v5649_v58 }
 0xd3d   :  { %2862 = vmatprep.subr.bf16.mxu0 %v5652_v52  ;;  %2903 = vmatprep.subr.bf16.mxu1 %v6750_v9 }
 0xd40   :  { %2863 = vmatpush1.bf16.msra.mxu0 %v6751_v16  ;;  %2904 = vmatpush1.bf16.msra.mxu1 %v6752_v14 }
 0xd41   :  { %2864 = vmatprep.subr.bf16.mxu0 %v6753_v60  ;;  %2905 = vmatprep.subr.bf16.mxu1 %v6754_v20 }
 0xd44   :  { %2865 = vmatpush1.bf16.msra.mxu0 %v6755_v61  ;;  %2906 = vmatpush1.bf16.msra.mxu1 %v6756_v30 }
 0xd45   :  { %2866 = vmatprep.subr.bf16.mxu0 %v6757_v31  ;;  %2907 = vmatprep.subr.bf16.mxu1 %v6758_v32 }
 0xd48   :  { %2867 = vmatpush1.bf16.msra.mxu0 %v6759_v33  ;;  %2908 = vmatpush1.bf16.msra.mxu1 %v6760_v34 }
 0xd49   :  { %2868 = vmatprep.subr.bf16.mxu0 %v6761_v38  ;;  %2909 = vmatprep.subr.bf16.mxu1 %v6762_v17 }
 0xd4c   :  { %2869 = vmatpush1.bf16.msra.mxu0 %v6763_v6  ;;  %2910 = vmatpush1.bf16.msra.mxu1 %v6764_v39 }
 0xd4d   :  { %2870 = vmatprep.subr.bf16.mxu0 %v5700_v43  ;;  %2911 = vmatprep.subr.bf16.mxu1 %v6765_v40 }
 0xd50   :  { %2871 = vmatpush1.bf16.msra.mxu0 %v6766_v41  ;;  %2912 = vmatpush1.bf16.msra.mxu1 %v5709_v11 }
 0xd51   :  { %2967 = vmatprep.subr.bf16.mxu0 %v5712_v25  ;;  %3008 = vmatprep.subr.bf16.mxu1 %v6767_v42 }
 0xd53   :  { %2889 = vmatmul.mubr.bf16.vlgmr.msra.gmra.mrb[68].mxu0 %v5770_v15  ;;  %2930 = vmatmul.mubr.bf16.vlgmr.msra.gmra.mrb[68].mxu1 %v5770_v15  ;;  %v5864_v15 = vld [vmem:[#allocation5 + $0x44] ss:$16 sps:$4 sm:$0xff]  }
 0xd54   :  { %2968 = vmatpush1.bf16.msra.mxu0 %v5720_v45  ;;  %3009 = vmatpush1.bf16.msra.mxu1 %v5723_v27  ;;  %6770 = vst [vmem:[#allocation67_spill] sm:$0xff] %v5864_v15 }
 0xd55   :  { %2969 = vmatprep.subr.bf16.mxu0 %v5854_v18  ;;  %3010 = vmatprep.subr.bf16.mxu1 %v5857_v53 }
 0xd56   :  { %2999 = vmatprep.mubr.bf16.mxu0 %v6431_v4  ;;  %3040 = vmatprep.mubr.bf16.mxu1 %v6431_v4 }
 0xd58   :  { %2970 = vmatpush1.bf16.msra.mxu0 %v5730_v29  ;;  %3011 = vmatpush1.bf16.msra.mxu1 %v5733_v24 }
 0xd59   :  { %2971 = vmatprep.subr.bf16.mxu0 %v5864_v15  ;;  %3012 = vmatprep.subr.bf16.mxu1 %v5867_v21 }
 0xd5c   :  { %2972 = vmatpush1.bf16.msra.mxu0 %v5870_v13  ;;  %3013 = vmatpush1.bf16.msra.mxu1 %v5873_v51  ;;  %v6797_v13 = vld [vmem:[#allocation59_spill] sm:$0xff] }
 0xd5d   :  { %2973 = vmatprep.subr.bf16.mxu0 %v5876_v57  ;;  %3014 = vmatprep.subr.bf16.mxu1 %v5879_v63  ;;  %v6796_v57 = vld [vmem:[#allocation58_spill] sm:$0xff] }
 0xd60   :  { %2974 = vmatpush1.bf16.msra.mxu0 %v5882_v22  ;;  %3015 = vmatpush1.bf16.msra.mxu1 %v5885_v2  ;;  %v6795_v2 = vld [vmem:[#allocation57_spill] sm:$0xff] }
 0xd61   :  { %2975 = vmatprep.subr.bf16.mxu0 %v5888_v10  ;;  %3016 = vmatprep.subr.bf16.mxu1 %v5891_v35  ;;  %v6794_v10 = vld [vmem:[#allocation56_spill] sm:$0xff] }
 0xd64   :  { %2976 = vmatpush1.bf16.msra.mxu0 %v5894_v5  ;;  %3017 = vmatpush1.bf16.msra.mxu1 %v5897_v19  ;;  %v5915_v19 = vld [vmem:[#allocation5 + $0xcc] ss:$16 sps:$4 sm:$0xff]  }
 0xd65   :  { %2977 = vmatprep.subr.bf16.mxu0 %v5900_v12  ;;  %3018 = vmatprep.subr.bf16.mxu1 %v5903_v3  ;;  %6787 = vst [vmem:[#allocation48_spill] sm:$0xff] %v5915_v19  ;;  %v5918_v12 = vld [vmem:[#allocation5 + $0xc0] ss:$16 sps:$4 sm:$0xff]   ;;  %v5921_v3 = vld [vmem:[#allocation5 + $0xc8] ss:$16 sps:$4 sm:$0xff]  }
 0xd66   :  { %6788 = vst [vmem:[#allocation49_spill] sm:$0xff] %v5918_v12  ;;  %6789 = vst [vmem:[#allocation50_spill] sm:$0xff] %v5921_v3  ;;  %v4237_v5 = vld [vmem:[#allocation7 + $0xc] ss:$16 sps:$4 sm:$0xff]  }
 0xd68   :  { %2978 = vmatpush1.bf16.msra.mxu0 %v5906_v1  ;;  %3019 = vmatpush1.bf16.msra.mxu1 %v5909_v62  ;;  %v5924_v1 = vld [vmem:[#allocation5 + $0xe4] ss:$16 sps:$4 sm:$0xff]   ;;  %v5927_v62 = vld [vmem:[#allocation5 + $0xec] ss:$16 sps:$4 sm:$0xff]  }
 0xd69   :  { %2979 = vmatprep.subr.bf16.mxu0 %v5912_v54  ;;  %3020 = vmatprep.subr.bf16.mxu1 %v5915_v19  ;;  %6790 = vst [vmem:[#allocation51_spill] sm:$0xff] %v5924_v1  ;;  %6791 = vst [vmem:[#allocation79_spill] sm:$0xff] %v5927_v62  ;;  %v5930_v54 = vld [vmem:[#allocation5 + $0xe0] ss:$16 sps:$4 sm:$0xff]   ;;  %v5933_v19 = vld [vmem:[#allocation5 + $0xe8] ss:$16 sps:$4 sm:$0xff]  }
 0xd6a   :  { %6792 = vst [vmem:[#allocation80_spill] sm:$0xff] %v5930_v54  ;;  %6793 = vst [vmem:[#allocation81_spill] sm:$0xff] %v5933_v19 }
 0xd6c   :  { %2980 = vmatpush1.bf16.msra.mxu0 %v5918_v12  ;;  %3021 = vmatpush1.bf16.msra.mxu1 %v5921_v3  ;;  %v4236_v12 = vld [vmem:[#allocation7 + $0x4] ss:$16 sps:$4 sm:$0xff]  }
 0xd6d   :  { %2981 = vmatprep.subr.bf16.mxu0 %v5924_v1  ;;  %3022 = vmatprep.subr.bf16.mxu1 %v5927_v62 }
 0xd70   :  { %2982 = vmatpush1.bf16.msra.mxu0 %v5930_v54  ;;  %3023 = vmatpush1.bf16.msra.mxu1 %v5933_v19 }
 0xd71   :  { %3078 = vmatprep.subr.bf16.mxu0 %v4236_v12  ;;  %3119 = vmatprep.subr.bf16.mxu1 %v4237_v5 }
 0xe26   :  { %v2890_v3 = vpop.f32.mrb[68].mxu0  ;;  %v2931_v35 = vpop.f32.mrb[68].mxu1 }
 0xe27   :  { %v2938_v1 = vadd.f32 %v2890_v3, %v6794_v10  ;;  %v2940_v22 = vadd.f32 %v2931_v35, %v6795_v2  ;;  %v2892_v63 = vpop.f32.mrb[69].mxu0  ;;  %v2933_v62 = vpop.f32.mrb[69].mxu1  ;;  %v4239_v3 = vld [vmem:[#allocation7 + $0x8] ss:$16 sps:$4 sm:$0xff]  }
 0xe28   :  { %v2939_v51 = vadd.f32 %v2892_v63, %v6796_v57  ;;  %v2941_v54 = vadd.f32 %v2933_v62, %v6797_v13  ;;  %v2894_v21 = vpop.f32.mrb[70].mxu0  ;;  %v2935_v15 = vpop.f32.mrb[70].mxu1  ;;  %v4242_v62 = vld [vmem:[#allocation7 + $0x20] ss:$16 sps:$4 sm:$0xff]  }
 0xe29   :  { %v3554_v24 = vmul.f32 -1.442695, %v2938_v1  ;;  %v2895_v19 = vpop.f32.mrb[71].mxu0  ;;  %v2936_v29 = vpop.f32.mrb[71].mxu1  ;;  %v3556_v5 = vmul.f32 -1.442695, %v2940_v22 }
 0xe2a   :  { %v3555_v12 = vmul.f32 -1.442695, %v2939_v51  ;;  %v4240_v1 = vld [vmem:[#allocation7 + $0x24] ss:$16 sps:$4 sm:$0xff]  }
 0xe2b   :  { %4012 = vpow2.f32 %v3554_v24 }
 0xe2c   :  { %4014 = vpow2.f32 %v3555_v12  ;;  %v4244_v12 = vld [vmem:[#allocation7 + $0x44] ss:$16 sps:$4 sm:$0xff]  }
 0xe2d   :  { %4016 = vtanh.f32 %v2941_v54  ;;  %v4243_v54 = vld [vmem:[#allocation7 + $0x28] ss:$16 sps:$4 sm:$0xff]  }
 0xe2e   :  { %4018 = vpow2.f32 %v3556_v5  ;;  %v4245_v5 = vld [vmem:[#allocation7 + $0x4c] ss:$16 sps:$4 sm:$0xff]  }
 0xe35   :  { %v4013_v53 = vpop.eup %4012 }
 0xe36   :  { %v2951_v18 = vadd.f32 1.0, %v4013_v53  ;;  %v4015_v10 = vpop.eup %4014 }
 0xe37   :  { %v2952_v2 = vadd.f32 1.0, %v4015_v10  ;;  %v4017_v57 = vpop.eup %4016  ;;  %v4246_v10 = vld [vmem:[#allocation7 + $0x40] ss:$16 sps:$4 sm:$0xff]  }
 0xe38   :  { %4020 = vrcp.f32 %v2951_v18  ;;  %v4019_v63 = vpop.eup %4018  ;;  %v4238_v18 = vld [vmem:[#allocation7] ss:$16 sps:$4 sm:$0xff]  }
 0xe39   :  { %4022 = vrcp.f32 %v2952_v2  ;;  %v2953_v35 = vadd.f32 1.0, %v4019_v63  ;;  %v4247_v2 = vld [vmem:[#allocation7 + $0x48] ss:$16 sps:$4 sm:$0xff]   ;;  %v4249_v63 = vld [vmem:[#allocation7 + $0x6c] ss:$16 sps:$4 sm:$0xff]  }
 0xe3b   :  { %4024 = vrcp.f32 %v2953_v35  ;;  %v4253_v35 = vld [vmem:[#allocation7 + $0x8c] ss:$16 sps:$4 sm:$0xff]  }
 0xe42   :  { %v4021_v13 = vpop.eup %4020 }
 0xe43   :  { %v2962_v21 = vmul.f32 %v4021_v13, %v4017_v57  ;;  %v4023_v15 = vpop.eup %4022  ;;  %v4248_v57 = vld [vmem:[#allocation7 + $0x64] ss:$16 sps:$4 sm:$0xff]   ;;  %v4250_v13 = vld [vmem:[#allocation7 + $0x60] ss:$16 sps:$4 sm:$0xff]  }
 0xe44   :  { %v2961_v29 = vmul.f32 %v4023_v15, %v5767_v49  ;;  %v4241_v49 = vld [vmem:[#allocation7 + $0x2c] ss:$16 sps:$4 sm:$0xff]   ;;  %v4252_v15 = vld [vmem:[#allocation7 + $0x84] ss:$16 sps:$4 sm:$0xff]  }
 0xe45   :  { %v4025_v24 = vpop.eup %4024 }
 0xe46   :  { %v5941_v51 = vadd.f32 %v2962_v21, %v2961_v29  ;;  %v4251_v21 = vld [vmem:[#allocation7 + $0x68] ss:$16 sps:$4 sm:$0xff]   ;;  %v4254_v29 = vld [vmem:[#allocation7 + $0x80] ss:$16 sps:$4 sm:$0xff]  }
 0xe48   :  { %4026 = vtanh.f32 %v5941_v51 }
 0xe52   :  { %v4027_v53 = vpop.eup %4026 }
 0xe53   :  { %v2965_v22 = vmul.f32 %v4027_v53, %v4025_v24  ;;  %v4255_v24 = vld [vmem:[#allocation7 + $0x88] ss:$16 sps:$4 sm:$0xff]   ;;  %v4256_v53 = vld [vmem:[#allocation7 + $0xa4] ss:$16 sps:$4 sm:$0xff]  }
 0xe55   :  { %v5944_v19 = vpack.c.bf16 %v2965_v22, %v2965_v22  ;;  %v4257_v22 = vld [vmem:[#allocation7 + $0xac] ss:$16 sps:$4 sm:$0xff]  }
 0xe57   :  { %3000 = vmatmul.mubr.bf16.vlgmr.msra.gmra.mrb[64].mxu0 %v5944_v19  ;;  %3041 = vmatmul.mubr.bf16.vlgmr.msra.gmra.mrb[64].mxu1 %v5944_v19 }
 0xe58   :  { %3079 = vmatpush1.bf16.msra.mxu0 %v4238_v18  ;;  %3120 = vmatpush1.bf16.msra.mxu1 %v4239_v3  ;;  %v4258_v18 = vld [vmem:[#allocation7 + $0xa0] ss:$16 sps:$4 sm:$0xff]   ;;  %v4259_v3 = vld [vmem:[#allocation7 + $0xa8] ss:$16 sps:$4 sm:$0xff]  }
 0xe59   :  { %3080 = vmatprep.subr.bf16.mxu0 %v4240_v1  ;;  %3121 = vmatprep.subr.bf16.mxu1 %v4241_v49  ;;  %v4260_v1 = vld [vmem:[#allocation7 + $0xc4] ss:$16 sps:$4 sm:$0xff]   ;;  %v4261_v49 = vld [vmem:[#allocation7 + $0xcc] ss:$16 sps:$4 sm:$0xff]  }
 0xe5a   :  { %3110 = vmatprep.mubr.bf16.mxu0 %v6431_v4  ;;  %3151 = vmatprep.mubr.bf16.mxu1 %v6431_v4 }
 0xe5c   :  { %3081 = vmatpush1.bf16.msra.mxu0 %v4242_v62  ;;  %3122 = vmatpush1.bf16.msra.mxu1 %v4243_v54  ;;  %v4262_v62 = vld [vmem:[#allocation7 + $0xc0] ss:$16 sps:$4 sm:$0xff]   ;;  %v4263_v54 = vld [vmem:[#allocation7 + $0xc8] ss:$16 sps:$4 sm:$0xff]  }
 0xe5d   :  { %3082 = vmatprep.subr.bf16.mxu0 %v4244_v12  ;;  %3123 = vmatprep.subr.bf16.mxu1 %v4245_v5  ;;  %v4264_v12 = vld [vmem:[#allocation7 + $0xe4] ss:$16 sps:$4 sm:$0xff]   ;;  %v4265_v5 = vld [vmem:[#allocation7 + $0xec] ss:$16 sps:$4 sm:$0xff]  }
 0xe60   :  { %3083 = vmatpush1.bf16.msra.mxu0 %v4246_v10  ;;  %3124 = vmatpush1.bf16.msra.mxu1 %v4247_v2  ;;  %v4266_v10 = vld [vmem:[#allocation7 + $0xe0] ss:$16 sps:$4 sm:$0xff]   ;;  %v4267_v2 = vld [vmem:[#allocation7 + $0xe8] ss:$16 sps:$4 sm:$0xff]  }
 0xe61   :  { %3084 = vmatprep.subr.bf16.mxu0 %v4248_v57  ;;  %3125 = vmatprep.subr.bf16.mxu1 %v4249_v63 }
 0xe64   :  { %3085 = vmatpush1.bf16.msra.mxu0 %v4250_v13  ;;  %3126 = vmatpush1.bf16.msra.mxu1 %v4251_v21 }
 0xe65   :  { %3086 = vmatprep.subr.bf16.mxu0 %v4252_v15  ;;  %3127 = vmatprep.subr.bf16.mxu1 %v4253_v35 }
 0xe68   :  { %3087 = vmatpush1.bf16.msra.mxu0 %v4254_v29  ;;  %3128 = vmatpush1.bf16.msra.mxu1 %v4255_v24 }
 0xe69   :  { %3088 = vmatprep.subr.bf16.mxu0 %v4256_v53  ;;  %3129 = vmatprep.subr.bf16.mxu1 %v4257_v22 }
 0xe6c   :  { %3089 = vmatpush1.bf16.msra.mxu0 %v4258_v18  ;;  %3130 = vmatpush1.bf16.msra.mxu1 %v4259_v3 }
 0xe6d   :  { %3090 = vmatprep.subr.bf16.mxu0 %v4260_v1  ;;  %3131 = vmatprep.subr.bf16.mxu1 %v4261_v49 }
 0xe70   :  { %3091 = vmatpush1.bf16.msra.mxu0 %v4262_v62  ;;  %3132 = vmatpush1.bf16.msra.mxu1 %v4263_v54 }
 0xe71   :  { %3092 = vmatprep.subr.bf16.mxu0 %v4264_v12  ;;  %3133 = vmatprep.subr.bf16.mxu1 %v4265_v5 }
 0xe74   :  { %3093 = vmatpush1.bf16.msra.mxu0 %v4266_v10  ;;  %3134 = vmatpush1.bf16.msra.mxu1 %v4267_v2 }
 0xe75   :  { %3168 = vmatprep.subr.bf16.mxu0 %v6748_v8  ;;  %3209 = vmatprep.subr.bf16.mxu1 %v6749_v50 }
 0xf2a   :  { %v3001_v57 = vpop.f32.mrb[64].mxu0  ;;  %v3042_v63 = vpop.f32.mrb[64].mxu1 }
 0xf2b   :  { %v3586_v13 = vadd.f32 %v3001_v57, %v4907_v28  ;;  %v3003_v21 = vpop.f32.mrb[65].mxu0  ;;  %v3044_v15 = vpop.f32.mrb[65].mxu1  ;;  %v3588_v8 = vadd.f32 %v3042_v63, %v4917_v0 }
 0xf2c   :  { %v3587_v35 = vadd.f32 %v3003_v21, %v6523_v46  ;;  %v3005_v29 = vpop.f32.mrb[66].mxu0  ;;  %v3046_v24 = vpop.f32.mrb[66].mxu1  ;;  %v3589_v50 = vadd.f32 %v3044_v15, %v4921_v7 }
 0xf2d   :  { %v3557_v53 = vmul.f32 -1.442695, %v3586_v13  ;;  %v3006_v22 = vpop.f32.mrb[67].mxu0  ;;  %v3047_v18 = vpop.f32.mrb[67].mxu1  ;;  %v3559_v1 = vmul.f32 -1.442695, %v3588_v8 }
 0xf2e   :  { %v3558_v3 = vmul.f32 -1.442695, %v3587_v35  ;;  %v6829_v18 = vld [vmem:[#allocation63_spill] sm:$0xff] }
 0xf2f   :  { %4028 = vpow2.f32 %v3557_v53 }
 0xf30   :  { %4030 = vpow2.f32 %v3558_v3 }
 0xf31   :  { %4032 = vtanh.f32 %v3589_v50 }
 0xf32   :  { %4034 = vpow2.f32 %v3559_v1 }
 0xf39   :  { %v4029_v49 = vpop.eup %4028 }
 0xf3a   :  { %v3062_v62 = vadd.f32 1.0, %v4029_v49  ;;  %v4031_v54 = vpop.eup %4030 }
 0xf3b   :  { %v3063_v12 = vadd.f32 1.0, %v4031_v54  ;;  %v4033_v5 = vpop.eup %4032 }
 0xf3c   :  { %4036 = vrcp.f32 %v3062_v62  ;;  %v4035_v10 = vpop.eup %4034 }
 0xf3d   :  { %4038 = vrcp.f32 %v3063_v12  ;;  %v3064_v21 = vadd.f32 1.0, %v4035_v10 }
 0xf3f   :  { %4040 = vrcp.f32 %v3064_v21 }
 0xf46   :  { %v4037_v2 = vpop.eup %4036 }
 0xf47   :  { %v3073_v57 = vmul.f32 %v4037_v2, %v4033_v5  ;;  %v4039_v13 = vpop.eup %4038 }
 0xf48   :  { %v3072_v35 = vmul.f32 %v4039_v13, %v5813_v23  ;;  %v6815_v23 = vld [vmem:[#allocation75_spill] sm:$0xff] }
 0xf49   :  { %v4041_v15 = vpop.eup %4040 }
 0xf4a   :  { %v5957_v63 = vadd.f32 %v3073_v57, %v3072_v35 }
 0xf4c   :  { %4042 = vtanh.f32 %v5957_v63 }
 0xf56   :  { %v4043_v29 = vpop.eup %4042 }
 0xf57   :  { %v3076_v24 = vmul.f32 %v4043_v29, %v4041_v15 }
 0xf59   :  { %v3077_v53 = vpack.c.bf16 %v3076_v24, %v3076_v24 }
 0xf5b   :  { %3111 = vmatmul.mubr.bf16.vlgmr.msra.gmra.mrb[72].mxu0 %v3077_v53  ;;  %3152 = vmatmul.mubr.bf16.vlgmr.msra.gmra.mrb[72].mxu1 %v3077_v53 }
 0xf5c   :  { %3169 = vmatpush1.bf16.msra.mxu0 %v5620_v59  ;;  %3210 = vmatpush1.bf16.msra.mxu1 %v5623_v36  ;;  %v6798_v59 = vld [vmem:[#allocation65_spill] sm:$0xff]  ;;  %v6799_v36 = vld [vmem:[#allocation66_spill] sm:$0xff] }
 0xf5d   :  { %3170 = vmatprep.subr.bf16.mxu0 %v5626_v56  ;;  %3211 = vmatprep.subr.bf16.mxu1 %v5629_v26  ;;  %v6800_v56 = vld [vmem:[#allocation39_spill] sm:$0xff]  ;;  %v6801_v26 = vld [vmem:[#allocation64_spill] sm:$0xff] }
 0xf5e   :  { %3200 = vmatprep.mubr.bf16.mxu0 %v6431_v4  ;;  %3241 = vmatprep.mubr.bf16.mxu1 %v6431_v4 }
 0xf60   :  { %3171 = vmatpush1.bf16.msra.mxu0 %v5634_v47  ;;  %3212 = vmatpush1.bf16.msra.mxu1 %v5637_v48  ;;  %v6802_v47 = vld [vmem:[#allocation67_spill] sm:$0xff]  ;;  %v6803_v48 = vld [vmem:[#allocation68_spill] sm:$0xff] }
 0xf61   :  { %3172 = vmatprep.subr.bf16.mxu0 %v5640_v37  ;;  %3213 = vmatprep.subr.bf16.mxu1 %v5643_v44  ;;  %v6804_v37 = vld [vmem:[#allocation69_spill] sm:$0xff]  ;;  %v6805_v44 = vld [vmem:[#allocation70_spill] sm:$0xff] }
 0xf64   :  { %3173 = vmatpush1.bf16.msra.mxu0 %v5646_v55  ;;  %3214 = vmatpush1.bf16.msra.mxu1 %v5649_v58  ;;  %v6806_v55 = vld [vmem:[#allocation71_spill] sm:$0xff] }
 0xf65   :  { %3174 = vmatprep.subr.bf16.mxu0 %v5652_v52  ;;  %3215 = vmatprep.subr.bf16.mxu1 %v6750_v9  ;;  %v6807_v58 = vld [vmem:[#allocation91_spill] sm:$0xff]  ;;  %v6808_v52 = vld [vmem:[#allocation40_spill] sm:$0xff] }
 0xf66   :  { %v6816_v9 = vld [vmem:[#allocation76_spill] sm:$0xff] }
 0xf68   :  { %3175 = vmatpush1.bf16.msra.mxu0 %v6751_v16  ;;  %3216 = vmatpush1.bf16.msra.mxu1 %v6752_v14  ;;  %v6817_v16 = vld [vmem:[#allocation77_spill] sm:$0xff]  ;;  %v6818_v14 = vld [vmem:[#allocation78_spill] sm:$0xff] }
 0xf69   :  { %3176 = vmatprep.subr.bf16.mxu0 %v6753_v60  ;;  %3217 = vmatprep.subr.bf16.mxu1 %v6754_v20  ;;  %v6819_v60 = vld [vmem:[#allocation48_spill] sm:$0xff]  ;;  %v6820_v20 = vld [vmem:[#allocation49_spill] sm:$0xff] }
 0xf6c   :  { %3177 = vmatpush1.bf16.msra.mxu0 %v6755_v61  ;;  %3218 = vmatpush1.bf16.msra.mxu1 %v6756_v30  ;;  %v6821_v61 = vld [vmem:[#allocation50_spill] sm:$0xff]  ;;  %v6822_v30 = vld [vmem:[#allocation51_spill] sm:$0xff] }
 0xf6d   :  { %3178 = vmatprep.subr.bf16.mxu0 %v6757_v31  ;;  %3219 = vmatprep.subr.bf16.mxu1 %v6758_v32  ;;  %v6823_v31 = vld [vmem:[#allocation79_spill] sm:$0xff]  ;;  %v6824_v32 = vld [vmem:[#allocation80_spill] sm:$0xff] }
 0xf70   :  { %3179 = vmatpush1.bf16.msra.mxu0 %v6759_v33  ;;  %3220 = vmatpush1.bf16.msra.mxu1 %v6760_v34  ;;  %v6825_v33 = vld [vmem:[#allocation81_spill] sm:$0xff] }
 0xf71   :  { %3180 = vmatprep.subr.bf16.mxu0 %v6761_v38  ;;  %3221 = vmatprep.subr.bf16.mxu1 %v6762_v17  ;;  %v6826_v17 = vld [vmem:[#allocation60_spill] sm:$0xff] }
 0xf74   :  { %3181 = vmatpush1.bf16.msra.mxu0 %v6763_v6  ;;  %3222 = vmatpush1.bf16.msra.mxu1 %v6764_v39  ;;  %v6827_v39 = vld [vmem:[#allocation61_spill] sm:$0xff] }
 0xf75   :  { %3182 = vmatprep.subr.bf16.mxu0 %v5700_v43  ;;  %3223 = vmatprep.subr.bf16.mxu1 %v6765_v40  ;;  %v6812_v43 = vld [vmem:[#allocation72_spill] sm:$0xff] }
 0xf78   :  { %3183 = vmatpush1.bf16.msra.mxu0 %v6766_v41  ;;  %3224 = vmatpush1.bf16.msra.mxu1 %v5709_v11  ;;  %v6809_v11 = vld [vmem:[#allocation41_spill] sm:$0xff] }
 0xf79   :  { %3279 = vmatprep.subr.bf16.mxu0 %v5712_v25  ;;  %3320 = vmatprep.subr.bf16.mxu1 %v6767_v42  ;;  %v6811_v25 = vld [vmem:[#allocation43_spill] sm:$0xff] }
 0xf7b   :  { %3201 = vmatmul.mubr.bf16.vlgmr.msra.gmra.mrb[76].mxu0 %v5944_v19  ;;  %3242 = vmatmul.mubr.bf16.vlgmr.msra.gmra.mrb[76].mxu1 %v5944_v19  ;;  %v6828_v19 = vld [vmem:[#allocation62_spill] sm:$0xff] }
 0xf7c   :  { %3280 = vmatpush1.bf16.msra.mxu0 %v5720_v45  ;;  %3321 = vmatpush1.bf16.msra.mxu1 %v5723_v27  ;;  %v6813_v45 = vld [vmem:[#allocation73_spill] sm:$0xff]  ;;  %v6814_v27 = vld [vmem:[#allocation74_spill] sm:$0xff] }
 0xf7d   :  { %3281 = vmatprep.subr.bf16.mxu0 %v6798_v59  ;;  %3322 = vmatprep.subr.bf16.mxu1 %v6799_v36 }
 0xf7e   :  { %3311 = vmatprep.mubr.bf16.mxu0 %v6431_v4  ;;  %3352 = vmatprep.mubr.bf16.mxu1 %v6431_v4  ;;  %v6810_v4 = vld [vmem:[#allocation42_spill] sm:$0xff] }
 0xf80   :  { %3282 = vmatpush1.bf16.msra.mxu0 %v6800_v56  ;;  %3323 = vmatpush1.bf16.msra.mxu1 %v6801_v26 }
 0xf81   :  { %3283 = vmatprep.subr.bf16.mxu0 %v6802_v47  ;;  %3324 = vmatprep.subr.bf16.mxu1 %v6803_v48 }
 0xf84   :  { %3284 = vmatpush1.bf16.msra.mxu0 %v6804_v37  ;;  %3325 = vmatpush1.bf16.msra.mxu1 %v6805_v44 }
 0xf85   :  { %3285 = vmatprep.subr.bf16.mxu0 %v6806_v55  ;;  %3326 = vmatprep.subr.bf16.mxu1 %v6807_v58 }
 0xf88   :  { %3286 = vmatpush1.bf16.msra.mxu0 %v6808_v52  ;;  %3327 = vmatpush1.bf16.msra.mxu1 %v6809_v11 }
 0xf89   :  { %3287 = vmatprep.subr.bf16.mxu0 %v6810_v4  ;;  %3328 = vmatprep.subr.bf16.mxu1 %v6811_v25 }
 0xf8c   :  { %3288 = vmatpush1.bf16.msra.mxu0 %v6812_v43  ;;  %3329 = vmatpush1.bf16.msra.mxu1 %v6813_v45 }
 0xf8d   :  { %3289 = vmatprep.subr.bf16.mxu0 %v6814_v27  ;;  %3330 = vmatprep.subr.bf16.mxu1 %v6815_v23 }
 0xf90   :  { %3290 = vmatpush1.bf16.msra.mxu0 %v6816_v9  ;;  %3331 = vmatpush1.bf16.msra.mxu1 %v6817_v16 }
 0xf91   :  { %3291 = vmatprep.subr.bf16.mxu0 %v6818_v14  ;;  %3332 = vmatprep.subr.bf16.mxu1 %v6819_v60 }
 0xf94   :  { %3292 = vmatpush1.bf16.msra.mxu0 %v6820_v20  ;;  %3333 = vmatpush1.bf16.msra.mxu1 %v6821_v61 }
 0xf95   :  { %3293 = vmatprep.subr.bf16.mxu0 %v6822_v30  ;;  %3334 = vmatprep.subr.bf16.mxu1 %v6823_v31 }
 0xf98   :  { %3294 = vmatpush1.bf16.msra.mxu0 %v6824_v32  ;;  %3335 = vmatpush1.bf16.msra.mxu1 %v6825_v33 }
0x104e   :  { %v3202_v34 = vpop.f32.mrb[76].mxu0  ;;  %v3243_v38 = vpop.f32.mrb[76].mxu1 }
0x104f   :  { %v3250_v6 = vadd.f32 %v3202_v34, %v6826_v17  ;;  %v3252_v40 = vadd.f32 %v3243_v38, %v6827_v39  ;;  %v3204_v41 = vpop.f32.mrb[77].mxu0  ;;  %v3245_v42 = vpop.f32.mrb[77].mxu1 }
0x1050   :  { %v3251_v22 = vadd.f32 %v3204_v41, %v6828_v19  ;;  %v3253_v3 = vadd.f32 %v3245_v42, %v6829_v18  ;;  %v3206_v8 = vpop.f32.mrb[78].mxu0  ;;  %v3247_v50 = vpop.f32.mrb[78].mxu1 }
0x1051   :  { %v3560_v1 = vmul.f32 -1.442695, %v3250_v6  ;;  %v3207_v49 = vpop.f32.mrb[79].mxu0  ;;  %v3248_v62 = vpop.f32.mrb[79].mxu1  ;;  %v3562_v12 = vmul.f32 -1.442695, %v3252_v40 }
0x1052   :  { %v3561_v54 = vmul.f32 -1.442695, %v3251_v22 }
0x1053   :  { %4044 = vpow2.f32 %v3560_v1 }
0x1054   :  { %4046 = vpow2.f32 %v3561_v54 }
0x1055   :  { %4048 = vtanh.f32 %v3253_v3 }
0x1056   :  { %4050 = vpow2.f32 %v3562_v12 }
0x105d   :  { %v4045_v5 = vpop.eup %4044 }
0x105e   :  { %v3263_v10 = vadd.f32 1.0, %v4045_v5  ;;  %v4047_v2 = vpop.eup %4046 }
0x105f   :  { %v3264_v57 = vadd.f32 1.0, %v4047_v2  ;;  %v4049_v13 = vpop.eup %4048 }
0x1060   :  { %4052 = vrcp.f32 %v3263_v10  ;;  %v4051_v21 = vpop.eup %4050 }
0x1061   :  { %4054 = vrcp.f32 %v3264_v57  ;;  %v3265_v24 = vadd.f32 1.0, %v4051_v21 }
0x1063   :  { %4056 = vrcp.f32 %v3265_v24 }
0x106a   :  { %v4053_v35 = vpop.eup %4052 }
0x106b   :  { %v3274_v15 = vmul.f32 %v4053_v35, %v4049_v13  ;;  %v4055_v29 = vpop.eup %4054 }
0x106c   :  { %v3273_v53 = vmul.f32 %v4055_v29, %v5941_v51 }
0x106d   :  { %v4057_v36 = vpop.eup %4056 }
0x106e   :  { %v3275_v59 = vadd.f32 %v3274_v15, %v3273_v53 }
0x1070   :  { %4058 = vtanh.f32 %v3275_v59 }
0x107a   :  { %v4059_v56 = vpop.eup %4058 }
0x107b   :  { %v3277_v26 = vmul.f32 %v4059_v56, %v4057_v36 }
0x107d   :  { %v3278_v47 = vpack.c.bf16 %v3277_v26, %v3277_v26 }
0x107f   :  { %3312 = vmatmul.mubr.bf16.vlgmr.msra.gmra.mrb[72].mxu0 %v3278_v47  ;;  %3353 = vmatmul.mubr.bf16.vlgmr.msra.gmra.mrb[72].mxu1 %v3278_v47 }
0x1152   :  { %v3313_v48 = vpop.f32.mrb[72].mxu0  ;;  %v3354_v37 = vpop.f32.mrb[72].mxu1 }
0x1153   :  { %v3590_v44 = vadd.f32 %v3313_v48, %v4907_v28  ;;  %v3315_v55 = vpop.f32.mrb[73].mxu0  ;;  %v3356_v58 = vpop.f32.mrb[73].mxu1  ;;  %v3592_v27 = vadd.f32 %v3354_v37, %v4917_v0 }
0x1154   :  { %v3591_v52 = vadd.f32 %v3315_v55, %v6523_v46  ;;  %v3317_v11 = vpop.f32.mrb[74].mxu0  ;;  %v3358_v4 = vpop.f32.mrb[74].mxu1  ;;  %v3593_v23 = vadd.f32 %v3356_v58, %v4921_v7 }
0x1155   :  { %v3563_v51 = vmul.f32 -1.442695, %v3590_v44  ;;  %v3318_v25 = vpop.f32.mrb[75].mxu0  ;;  %v3359_v43 = vpop.f32.mrb[75].mxu1  ;;  %v3565_v9 = vmul.f32 -1.442695, %v3592_v27 }
0x1156   :  { %v3564_v45 = vmul.f32 -1.442695, %v3591_v52 }
0x1157   :  { %4060 = vpow2.f32 %v3563_v51 }
0x1158   :  { %4062 = vpow2.f32 %v3564_v45 }
0x1159   :  { %4064 = vtanh.f32 %v3593_v23 }
0x115a   :  { %4066 = vpow2.f32 %v3565_v9 }
0x1161   :  { %v4061_v16 = vpop.eup %4060 }
0x1162   :  { %v3374_v14 = vadd.f32 1.0, %v4061_v16  ;;  %v4063_v28 = vpop.eup %4062 }
0x1163   :  { %v3375_v46 = vadd.f32 1.0, %v4063_v28  ;;  %v4065_v60 = vpop.eup %4064 }
0x1164   :  { %4068 = vrcp.f32 %v3374_v14  ;;  %v4067_v20 = vpop.eup %4066 }
0x1165   :  { %4070 = vrcp.f32 %v3375_v46  ;;  %v3376_v32 = vadd.f32 1.0, %v4067_v20 }
0x1167   :  { %4072 = vrcp.f32 %v3376_v32 }
0x116e   :  { %v4069_v61 = vpop.eup %4068 }
0x116f   :  { %v3385_v30 = vmul.f32 %v4069_v61, %v4065_v60  ;;  %v4071_v31 = vpop.eup %4070 }
0x1170   :  { %v3384_v33 = vmul.f32 %v4071_v31, %v5957_v63 }
0x1171   :  { %v4073_v7 = vpop.eup %4072 }
0x1172   :  { %v3386_v0 = vadd.f32 %v3385_v30, %v3384_v33 }
0x1174   :  { %4074 = vtanh.f32 %v3386_v0 }
0x117e   :  { %v4075_v34 = vpop.eup %4074 }
0x117f   :  { %v3388_v38 = vmul.f32 %v4075_v34, %v4073_v7 }
0x1181   :  { %3389 = vst [vmem:[%s6048_s7] sm:$0xff] %v3388_v38 }
0x1182   :  { %3394 = vsyncpa [#allocation4], 1 }
0x1183   :  { %3395 = vsyncpa [#allocation6], 1 }

</bundles_post_ra>
